<compile_context>
chip_gen: v7x
topology: tpu7x:2x2x1
jax: 0.10.0
libtpu: 0.0.40
codegen_flags: <defaults>
</compile_context>

<pallas_src>
import jax
import jax.numpy as jnp
from jax.experimental import pallas as pl
from jax.experimental.pallas import tpu as pltpu

EPS = 1e-5          # nn.BatchNorm2d default eps
NEG_SLOPE = 0.2     # LeakyReLU negative_slope
LANE = 128
SUB = 8


def _round_up(x, m):
    return (x + m - 1) // m * m


def build_mscan_kernel(N, H, W, block_specs, CP, dmax):
    """block_specs: list of (cin, cout, dilation). CP: sublane-padded channels."""
    nblk = len(block_specs)
    Hp, Wp = H + 2 * dmax, W + 2 * dmax
    Lc = _round_up(N * Hp * Wp, LANE)            # lane-dense flattened spatial extent
    margin = _round_up(dmax * Wp + dmax, LANE)   # halo reach of the largest dilation
    Lbuf = margin + Lc + margin
    inv_cnt = 1.0 / float(N * H * W)

    def kernel(*refs):
        x_ref, mask_ref = refs[0], refs[1]
        blk_refs = refs[2:2 + 3 * nblk]
        o_ref = refs[2 + 3 * nblk]
        bufs = [refs[3 + 3 * nblk], refs[4 + 3 * nblk]]

        # Zero ONLY the margin strips, once (interiors are fully overwritten by
        # each block's single dense store, so they never need zeroing).
        zer = jnp.zeros((CP, margin), jnp.float32)
        for b in bufs:
            b[:, 0:margin] = zer
            b[:, margin + Lc:Lbuf] = zer

        # Stage the (already padded, channel-major, lane-dense) input with one
        # aligned dense store.
        bufs[0][:, margin:margin + Lc] = x_ref[...]

        # Interior mask (1 inside the N*H*W image interiors, 0 on per-image
        # halos and trailing lane padding). Broadcast once, reused everywhere.
        mask = jnp.broadcast_to(mask_ref[...], (CP, Lc))

        for k, (cin, cout, d) in enumerate(block_specs):
            w_ref = blk_refs[3 * k]        # (9, CP, CP)  w[t, co, ci], zero-padded
            gb_ref = blk_refs[3 * k + 1]   # (CP, 2)      [:,0]=gamma, [:,1]=beta
            lm_ref = blk_refs[3 * k + 2]   # (2,) SMEM    [L, M]
            src = bufs[k % 2]
            dst = bufs[(k + 1) % 2]

            # ---- dilated 3x3 conv, stride 1, 'same' padding, no bias -------
            # Output flat-position p, tap (kh,kw) reads src flat-position
            # p + (kh-1)*d*Wp + (kw-1)*d; with the `margin` offset that is a
            # plain shifted-window read (one XLU lane shift per tap, same cost
            # class as pltpu.roll but without circular-wrap garbage). One tiny
            # MXU dot per tap contracts cin -> cout for all lanes at once.
            y = jnp.zeros((CP, Lc), jnp.float32)
            for kh in range(3):
                for kw in range(3):
                    off = margin + (kh - 1) * d * Wp + (kw - 1) * d
                    patch = src[:, off:off + Lc]                       # (CP, Lc)
                    y = y + jnp.dot(w_ref[kh * 3 + kw], patch,
                                    preferred_element_type=jnp.float32)
            y = y * mask       # zero the halo / lane-pad garbage before stats

            # ---- AdaptiveNorm (train-mode BN batch stats) + LeakyReLU ------
            # One pass: sum and sum-of-squares; var = E[y^2] - mean^2 (biased).
            s1 = jnp.sum(y, axis=1, keepdims=True)                     # (CP, 1)
            s2 = jnp.sum(y * y, axis=1, keepdims=True)                 # (CP, 1)
            mean = s1 * inv_cnt
            var = jnp.maximum(s2 * inv_cnt - mean * mean, 0.0)
            inv = jax.lax.rsqrt(var + EPS)
            gamma = gb_ref[:, 0:1]                                     # (CP, 1)
            beta = gb_ref[:, 1:2]                                      # (CP, 1)
            L = lm_ref[0]
            M = lm_ref[1]
            # L*y + M*(gamma*(y-mean)*inv + beta) == scale*y + shift
            scale = L + M * gamma * inv                                # (CP, 1)
            shift = M * (beta - mean * gamma * inv)                    # (CP, 1)
            z = scale * y + shift
            z = jnp.where(z >= 0.0, z, NEG_SLOPE * z)
            z = z * mask       # keep halo exactly zero for the next block

            if k == nblk - 1:
                o_ref[...] = z                          # one full-tile dense store
            else:
                dst[:, margin:margin + Lc] = z          # one aligned dense store

    return kernel, Lc, Lbuf, Hp, Wp


def mscan_forward(x_nchw, params):
    """Fused MSCAN forward. Input/output in PyTorch NCHW layout."""
    x = x_nchw.astype(jnp.float32)
    N, c_in, H, W = x.shape

    block_specs = []
    cin = c_in
    for p in params:
        cout = p["w"].shape[3]
        block_specs.append((cin, cout, int(p["dilation"])))
        cin = cout
    cout_last = block_specs[-1][1]
    dmax = max(d for _, _, d in block_specs)
    cmax = max(max(ci, co) for ci, co, _ in block_specs)
    CP = max(_round_up(cmax, SUB), SUB)   # sublane-padded channel count

    kernel, Lc, Lbuf, Hp, Wp = build_mscan_kernel(N, H, W, block_specs, CP, dmax)
    P = Hp * Wp

    # ---- layout plumbing (wrapper side): NCHW -> channel-major padded slab --
    xp = jnp.pad(x, ((0, 0), (0, 0), (dmax, dmax), (dmax, dmax)))       # (N,C,Hp,Wp)
    x_slab = jnp.transpose(xp, (1, 0, 2, 3)).reshape(c_in, N * P)
    x_slab = jnp.pad(x_slab, ((0, CP - c_in), (0, Lc - N * P)))         # (CP, Lc)

    m = jnp.zeros((N, Hp, Wp), jnp.float32)
    m = m.at[:, dmax:dmax + H, dmax:dmax + W].set(1.0)
    mask = jnp.pad(m.reshape(1, N * P), ((0, 0), (0, Lc - N * P)))      # (1, Lc)

    # ---- per-block params. Weights here are HWIO (3,3,cin,cout); NOTE real
    # PyTorch Conv2d checkpoints are OIHW -> transpose (2,3,1,0) first.
    flat = []
    for (cin_k, cout_k, _), p in zip(block_specs, params):
        w = jnp.transpose(p["w"].astype(jnp.float32), (0, 1, 3, 2))     # (3,3,cout,cin)
        w = w.reshape(9, cout_k, cin_k)
        w = jnp.pad(w, ((0, 0), (0, CP - cout_k), (0, CP - cin_k)))     # (9,CP,CP)
        gamma = jnp.pad(p["gamma"].reshape(-1).astype(jnp.float32), (0, CP - cout_k))
        beta = jnp.pad(p["beta"].reshape(-1).astype(jnp.float32), (0, CP - cout_k))
        gb = jnp.stack([gamma, beta], axis=1)                           # (CP, 2)
        lm = jnp.stack([jnp.asarray(p["L"], jnp.float32).reshape(()),
                        jnp.asarray(p["M"], jnp.float32).reshape(())])  # (2,)
        flat += [w, gb, lm]

    vmem = pltpu.MemorySpace.VMEM
    smem = pltpu.MemorySpace.SMEM
    in_specs = [pl.BlockSpec(memory_space=vmem), pl.BlockSpec(memory_space=vmem)]
    for _ in block_specs:
        in_specs += [pl.BlockSpec(memory_space=vmem),
                     pl.BlockSpec(memory_space=vmem),
                     pl.BlockSpec(memory_space=smem)]

    out_slab = pl.pallas_call(
        kernel,
        out_shape=jax.ShapeDtypeStruct((CP, Lc), jnp.float32),
        in_specs=in_specs,
        out_specs=pl.BlockSpec(memory_space=vmem),
        scratch_shapes=[pltpu.VMEM((CP, Lbuf), jnp.float32),
                        pltpu.VMEM((CP, Lbuf), jnp.float32)],
    )(x_slab, mask, *flat)

    # ---- layout plumbing back to NCHW --------------------------------------
    out = out_slab[:cout_last, :N * P].reshape(cout_last, N, Hp, Wp)
    out = out[:, :, dmax:dmax + H, dmax:dmax + W]
    return jnp.transpose(out, (1, 0, 2, 3))


def init_mscan_params(key, channels=4, dilations=(1, 2, 4)):
    """Deterministic synthetic parameters; shapes follow MSCAN.__init__.

    (PyTorch __init__ sets L=1, M=0, gamma=1, beta=0; nonzero synthetic values
    are used so every term of the forward pass is numerically exercised.)
    """
    specs = [(3, channels, 1)]
    specs += [(channels, channels, d) for d in dilations]
    specs += [(channels, 3, 1)]
    params = []
    for (cin, cout, d) in specs:
        key, kw, kg, kb, kl, km = jax.random.split(key, 6)
        w = jax.random.normal(kw, (3, 3, cin, cout), jnp.float32) / jnp.sqrt(9.0 * cin)
        gamma = 1.0 + 0.1 * jax.random.normal(kg, (1, cout), jnp.float32)
        beta = 0.1 * jax.random.normal(kb, (1, cout), jnp.float32)
        L = 1.0 + 0.1 * jax.random.normal(kl, (), jnp.float32)
        M = 0.1 * jax.random.normal(km, (), jnp.float32)
        params.append(dict(w=w, gamma=gamma, beta=beta, L=L, M=M, dilation=d))
    return params


def mscan_reference(x_nchw, params):
    """Pure-JAX reference (no Pallas) for correctness checking."""
    x = x_nchw.astype(jnp.float32)
    for p in params:
        d = int(p["dilation"])
        y = jax.lax.conv_general_dilated(
            x, p["w"], window_strides=(1, 1), padding=[(d, d), (d, d)],
            rhs_dilation=(d, d), dimension_numbers=("NCHW", "HWIO", "NCHW"))
        mean = jnp.mean(y, axis=(0, 2, 3), keepdims=True)
        var = jnp.mean((y - mean) ** 2, axis=(0, 2, 3), keepdims=True)
        bn = (y - mean) * jax.lax.rsqrt(var + EPS) * p["gamma"].reshape(1, -1, 1, 1) \
             + p["beta"].reshape(1, -1, 1, 1)
        z = p["L"] * y + p["M"] * bn
        x = jnp.where(z >= 0, z, NEG_SLOPE * z)
    return x


if __name__ == "__main__":
    key = jax.random.PRNGKey(0)
    kx, kp = jax.random.split(key)
    # Small config consistent with the module: RGB input, NCHW like PyTorch.
    x = jax.random.normal(kx, (2, 3, 16, 16), jnp.float32)
    params = init_mscan_params(kp, channels=4, dilations=(1, 2, 4))

    out = mscan_forward(x, params)
    jax.block_until_ready(out)
    assert out.shape == (2, 3, 16, 16) and out.dtype == jnp.float32

    ref = mscan_reference(x, params)
    err = float(jnp.max(jnp.abs(out - ref)))
    assert err < 1e-3, f"max abs error vs reference: {err}"
    print("KERNEL_OK")
</pallas_src>

<mosaic_0001>
module attributes {stable_mosaic.version = 11 : i64} {
  func.func @kernel(%arg0: memref<8x1152xf32, #tpu.memory_space<vmem>>, %arg1: memref<1x1152xf32, #tpu.memory_space<vmem>>, %arg2: memref<9x8x8xf32, #tpu.memory_space<vmem>>, %arg3: memref<8x2xf32, #tpu.memory_space<vmem>>, %arg4: memref<2xf32, #tpu.memory_space<smem>>, %arg5: memref<9x8x8xf32, #tpu.memory_space<vmem>>, %arg6: memref<8x2xf32, #tpu.memory_space<vmem>>, %arg7: memref<2xf32, #tpu.memory_space<smem>>, %arg8: memref<9x8x8xf32, #tpu.memory_space<vmem>>, %arg9: memref<8x2xf32, #tpu.memory_space<vmem>>, %arg10: memref<2xf32, #tpu.memory_space<smem>>, %arg11: memref<9x8x8xf32, #tpu.memory_space<vmem>>, %arg12: memref<8x2xf32, #tpu.memory_space<vmem>>, %arg13: memref<2xf32, #tpu.memory_space<smem>>, %arg14: memref<9x8x8xf32, #tpu.memory_space<vmem>>, %arg15: memref<8x2xf32, #tpu.memory_space<vmem>>, %arg16: memref<2xf32, #tpu.memory_space<smem>>, %arg17: memref<8x1152xf32, #tpu.memory_space<vmem>>, %arg18: memref<8x1408xf32, #tpu.memory_space<vmem>>, %arg19: memref<8x1408xf32, #tpu.memory_space<vmem>>) attributes {dimension_semantics = [], scalar_prefetch = 0 : i64, scratch_operands = 2 : i64, tpu.core_type = #tpu.core_type<tc>} {
    %cst = arith.constant 0.000000e+00 : f32
    %0 = vector.broadcast %cst : f32 to vector<8x128xf32>
    %c0 = arith.constant 0 : index
    %c0_0 = arith.constant 0 : index
    %1 = vector.load %arg18[%c0, %c0_0] : memref<8x1408xf32, #tpu.memory_space<vmem>>, vector<8x128xf32>
    tpu.vector_store %arg18[%c0, %c0_0], %0 {strides = array<i32>} : memref<8x1408xf32, #tpu.memory_space<vmem>>, vector<8x128xf32>,
    %c0_1 = arith.constant 0 : index
    %c1280 = arith.constant 1280 : index
    %2 = vector.load %arg18[%c0_1, %c1280] : memref<8x1408xf32, #tpu.memory_space<vmem>>, vector<8x128xf32>
    tpu.vector_store %arg18[%c0_1, %c1280], %0 {strides = array<i32>} : memref<8x1408xf32, #tpu.memory_space<vmem>>, vector<8x128xf32>,
    %c0_2 = arith.constant 0 : index
    %c0_3 = arith.constant 0 : index
    %3 = vector.load %arg19[%c0_2, %c0_3] : memref<8x1408xf32, #tpu.memory_space<vmem>>, vector<8x128xf32>
    tpu.vector_store %arg19[%c0_2, %c0_3], %0 {strides = array<i32>} : memref<8x1408xf32, #tpu.memory_space<vmem>>, vector<8x128xf32>,
    %c0_4 = arith.constant 0 : index
    %c1280_5 = arith.constant 1280 : index
    %4 = vector.load %arg19[%c0_4, %c1280_5] : memref<8x1408xf32, #tpu.memory_space<vmem>>, vector<8x128xf32>
    tpu.vector_store %arg19[%c0_4, %c1280_5], %0 {strides = array<i32>} : memref<8x1408xf32, #tpu.memory_space<vmem>>, vector<8x128xf32>,
    %c0_6 = arith.constant 0 : index
    %c0_7 = arith.constant 0 : index
    %5 = vector.load %arg0[%c0_6, %c0_7] : memref<8x1152xf32, #tpu.memory_space<vmem>>, vector<8x1152xf32>
    %c0_8 = arith.constant 0 : index
    %c128 = arith.constant 128 : index
    %6 = vector.load %arg18[%c0_8, %c128] : memref<8x1408xf32, #tpu.memory_space<vmem>>, vector<8x1152xf32>
    tpu.vector_store %arg18[%c0_8, %c128], %5 {strides = array<i32>} : memref<8x1408xf32, #tpu.memory_space<vmem>>, vector<8x1152xf32>,
    %c0_9 = arith.constant 0 : index
    %c0_10 = arith.constant 0 : index
    %7 = vector.load %arg1[%c0_9, %c0_10] : memref<1x1152xf32, #tpu.memory_space<vmem>>, vector<1x1152xf32>
    %8 = vector.shape_cast %7 : vector<1x1152xf32> to vector<1x1152xf32>
    %9 = vector.broadcast %8 : vector<1x1152xf32> to vector<8x1152xf32>
    %cst_11 = arith.constant 0.000000e+00 : f32
    %10 = vector.broadcast %cst_11 : f32 to vector<8x1152xf32>
    %c0_12 = arith.constant 0 : index
    %c103 = arith.constant 103 : index
    %11 = vector.load %arg18[%c0_12, %c103] : memref<8x1408xf32, #tpu.memory_space<vmem>>, vector<8x1152xf32>
    %c0_13 = arith.constant 0 : index
    %c0_14 = arith.constant 0 : index
    %c0_15 = arith.constant 0 : index
    %12 = vector.load %arg2[%c0_13, %c0_14, %c0_15] : memref<9x8x8xf32, #tpu.memory_space<vmem>>, vector<1x8x8xf32>
    %13 = vector.shape_cast %12 : vector<1x8x8xf32> to vector<8x8xf32>
    %cst_16 = arith.constant dense<0.000000e+00> : vector<8x1152xf32>
    %14 = tpu.matmul %13, %11, %cst_16 {dimension_numbers = #tpu.dot_dimension_numbers<[1], [0], [0], [1], [0, 0, 1, 1], [], []>} : vector<8x8xf32>, vector<8x1152xf32>, vector<8x1152xf32> -> vector<8x1152xf32>
    %15 = arith.addf %10, %14 : vector<8x1152xf32>
    %c0_17 = arith.constant 0 : index
    %c104 = arith.constant 104 : index
    %16 = vector.load %arg18[%c0_17, %c104] : memref<8x1408xf32, #tpu.memory_space<vmem>>, vector<8x1152xf32>
    %c1 = arith.constant 1 : index
    %c0_18 = arith.constant 0 : index
    %c0_19 = arith.constant 0 : index
    %17 = vector.load %arg2[%c1, %c0_18, %c0_19] : memref<9x8x8xf32, #tpu.memory_space<vmem>>, vector<1x8x8xf32>
    %18 = vector.shape_cast %17 : vector<1x8x8xf32> to vector<8x8xf32>
    %cst_20 = arith.constant dense<0.000000e+00> : vector<8x1152xf32>
    %19 = tpu.matmul %18, %16, %cst_20 {dimension_numbers = #tpu.dot_dimension_numbers<[1], [0], [0], [1], [0, 0, 1, 1], [], []>} : vector<8x8xf32>, vector<8x1152xf32>, vector<8x1152xf32> -> vector<8x1152xf32>
    %20 = arith.addf %15, %19 : vector<8x1152xf32>
    %c0_21 = arith.constant 0 : index
    %c105 = arith.constant 105 : index
    %21 = vector.load %arg18[%c0_21, %c105] : memref<8x1408xf32, #tpu.memory_space<vmem>>, vector<8x1152xf32>
    %c2 = arith.constant 2 : index
    %c0_22 = arith.constant 0 : index
    %c0_23 = arith.constant 0 : index
    %22 = vector.load %arg2[%c2, %c0_22, %c0_23] : memref<9x8x8xf32, #tpu.memory_space<vmem>>, vector<1x8x8xf32>
    %23 = vector.shape_cast %22 : vector<1x8x8xf32> to vector<8x8xf32>
    %cst_24 = arith.constant dense<0.000000e+00> : vector<8x1152xf32>
    %24 = tpu.matmul %23, %21, %cst_24 {dimension_numbers = #tpu.dot_dimension_numbers<[1], [0], [0], [1], [0, 0, 1, 1], [], []>} : vector<8x8xf32>, vector<8x1152xf32>, vector<8x1152xf32> -> vector<8x1152xf32>
    %25 = arith.addf %20, %24 : vector<8x1152xf32>
    %c0_25 = arith.constant 0 : index
    %c127 = arith.constant 127 : index
    %26 = vector.load %arg18[%c0_25, %c127] : memref<8x1408xf32, #tpu.memory_space<vmem>>, vector<8x1152xf32>
    %c3 = arith.constant 3 : index
    %c0_26 = arith.constant 0 : index
    %c0_27 = arith.constant 0 : index
    %27 = vector.load %arg2[%c3, %c0_26, %c0_27] : memref<9x8x8xf32, #tpu.memory_space<vmem>>, vector<1x8x8xf32>
    %28 = vector.shape_cast %27 : vector<1x8x8xf32> to vector<8x8xf32>
    %cst_28 = arith.constant dense<0.000000e+00> : vector<8x1152xf32>
    %29 = tpu.matmul %28, %26, %cst_28 {dimension_numbers = #tpu.dot_dimension_numbers<[1], [0], [0], [1], [0, 0, 1, 1], [], []>} : vector<8x8xf32>, vector<8x1152xf32>, vector<8x1152xf32> -> vector<8x1152xf32>
    %30 = arith.addf %25, %29 : vector<8x1152xf32>
    %c0_29 = arith.constant 0 : index
    %c128_30 = arith.constant 128 : index
    %31 = vector.load %arg18[%c0_29, %c128_30] : memref<8x1408xf32, #tpu.memory_space<vmem>>, vector<8x1152xf32>
    %c4 = arith.constant 4 : index
    %c0_31 = arith.constant 0 : index
    %c0_32 = arith.constant 0 : index
    %32 = vector.load %arg2[%c4, %c0_31, %c0_32] : memref<9x8x8xf32, #tpu.memory_space<vmem>>, vector<1x8x8xf32>
    %33 = vector.shape_cast %32 : vector<1x8x8xf32> to vector<8x8xf32>
    %cst_33 = arith.constant dense<0.000000e+00> : vector<8x1152xf32>
    %34 = tpu.matmul %33, %31, %cst_33 {dimension_numbers = #tpu.dot_dimension_numbers<[1], [0], [0], [1], [0, 0, 1, 1], [], []>} : vector<8x8xf32>, vector<8x1152xf32>, vector<8x1152xf32> -> vector<8x1152xf32>
    %35 = arith.addf %30, %34 : vector<8x1152xf32>
    %c0_34 = arith.constant 0 : index
    %c129 = arith.constant 129 : index
    %36 = vector.load %arg18[%c0_34, %c129] : memref<8x1408xf32, #tpu.memory_space<vmem>>, vector<8x1152xf32>
    %c5 = arith.constant 5 : index
    %c0_35 = arith.constant 0 : index
    %c0_36 = arith.constant 0 : index
    %37 = vector.load %arg2[%c5, %c0_35, %c0_36] : memref<9x8x8xf32, #tpu.memory_space<vmem>>, vector<1x8x8xf32>
    %38 = vector.shape_cast %37 : vector<1x8x8xf32> to vector<8x8xf32>
    %cst_37 = arith.constant dense<0.000000e+00> : vector<8x1152xf32>
    %39 = tpu.matmul %38, %36, %cst_37 {dimension_numbers = #tpu.dot_dimension_numbers<[1], [0], [0], [1], [0, 0, 1, 1], [], []>} : vector<8x8xf32>, vector<8x1152xf32>, vector<8x1152xf32> -> vector<8x1152xf32>
    %40 = arith.addf %35, %39 : vector<8x1152xf32>
    %c0_38 = arith.constant 0 : index
    %c151 = arith.constant 151 : index
    %41 = vector.load %arg18[%c0_38, %c151] : memref<8x1408xf32, #tpu.memory_space<vmem>>, vector<8x1152xf32>
    %c6 = arith.constant 6 : index
    %c0_39 = arith.constant 0 : index
    %c0_40 = arith.constant 0 : index
    %42 = vector.load %arg2[%c6, %c0_39, %c0_40] : memref<9x8x8xf32, #tpu.memory_space<vmem>>, vector<1x8x8xf32>
    %43 = vector.shape_cast %42 : vector<1x8x8xf32> to vector<8x8xf32>
    %cst_41 = arith.constant dense<0.000000e+00> : vector<8x1152xf32>
    %44 = tpu.matmul %43, %41, %cst_41 {dimension_numbers = #tpu.dot_dimension_numbers<[1], [0], [0], [1], [0, 0, 1, 1], [], []>} : vector<8x8xf32>, vector<8x1152xf32>, vector<8x1152xf32> -> vector<8x1152xf32>
    %45 = arith.addf %40, %44 : vector<8x1152xf32>
    %c0_42 = arith.constant 0 : index
    %c152 = arith.constant 152 : index
    %46 = vector.load %arg18[%c0_42, %c152] : memref<8x1408xf32, #tpu.memory_space<vmem>>, vector<8x1152xf32>
    %c7 = arith.constant 7 : index
    %c0_43 = arith.constant 0 : index
    %c0_44 = arith.constant 0 : index
    %47 = vector.load %arg2[%c7, %c0_43, %c0_44] : memref<9x8x8xf32, #tpu.memory_space<vmem>>, vector<1x8x8xf32>
    %48 = vector.shape_cast %47 : vector<1x8x8xf32> to vector<8x8xf32>
    %cst_45 = arith.constant dense<0.000000e+00> : vector<8x1152xf32>
    %49 = tpu.matmul %48, %46, %cst_45 {dimension_numbers = #tpu.dot_dimension_numbers<[1], [0], [0], [1], [0, 0, 1, 1], [], []>} : vector<8x8xf32>, vector<8x1152xf32>, vector<8x1152xf32> -> vector<8x1152xf32>
    %50 = arith.addf %45, %49 : vector<8x1152xf32>
    %c0_46 = arith.constant 0 : index
    %c153 = arith.constant 153 : index
    %51 = vector.load %arg18[%c0_46, %c153] : memref<8x1408xf32, #tpu.memory_space<vmem>>, vector<8x1152xf32>
    %c8 = arith.constant 8 : index
    %c0_47 = arith.constant 0 : index
    %c0_48 = arith.constant 0 : index
    %52 = vector.load %arg2[%c8, %c0_47, %c0_48] : memref<9x8x8xf32, #tpu.memory_space<vmem>>, vector<1x8x8xf32>
    %53 = vector.shape_cast %52 : vector<1x8x8xf32> to vector<8x8xf32>
    %cst_49 = arith.constant dense<0.000000e+00> : vector<8x1152xf32>
    %54 = tpu.matmul %53, %51, %cst_49 {dimension_numbers = #tpu.dot_dimension_numbers<[1], [0], [0], [1], [0, 0, 1, 1], [], []>} : vector<8x8xf32>, vector<8x1152xf32>, vector<8x1152xf32> -> vector<8x1152xf32>
    %55 = arith.addf %50, %54 : vector<8x1152xf32>
    %56 = arith.mulf %55, %9 : vector<8x1152xf32>
    %cst_50 = arith.constant dense<0.000000e+00> : vector<8xf32>
    %57 = vector.multi_reduction <add>, %56, %cst_50 [1] : vector<8x1152xf32> to vector<8xf32>
    %58 = vector.shape_cast %57 : vector<8xf32> to vector<8x1xf32>
    %59 = arith.mulf %56, %56 : vector<8x1152xf32>
    %cst_51 = arith.constant dense<0.000000e+00> : vector<8xf32>
    %60 = vector.multi_reduction <add>, %59, %cst_51 [1] : vector<8x1152xf32> to vector<8xf32>
    %61 = vector.shape_cast %60 : vector<8xf32> to vector<8x1xf32>
    %cst_52 = arith.constant 0.001953125 : f32
    %62 = vector.broadcast %cst_52 : f32 to vector<8x1xf32>
    %63 = arith.mulf %58, %62 : vector<8x1xf32>
    %cst_53 = arith.constant 0.001953125 : f32
    %64 = vector.broadcast %cst_53 : f32 to vector<8x1xf32>
    %65 = arith.mulf %61, %64 : vector<8x1xf32>
    %66 = arith.mulf %63, %63 : vector<8x1xf32>
    %67 = arith.subf %65, %66 : vector<8x1xf32>
    %cst_54 = arith.constant 0.000000e+00 : f32
    %68 = vector.broadcast %cst_54 : f32 to vector<8x1xf32>
    %69 = arith.maximumf %67, %68 : vector<8x1xf32>
    %cst_55 = arith.constant 9.99999974E-6 : f32
    %70 = vector.broadcast %cst_55 : f32 to vector<8x1xf32>
    %71 = arith.addf %69, %70 : vector<8x1xf32>
    %72 = math.rsqrt %71 : vector<8x1xf32>
    %c0_56 = arith.constant 0 : index
    %c0_57 = arith.constant 0 : index
    %73 = vector.load %arg3[%c0_56, %c0_57] : memref<8x2xf32, #tpu.memory_space<vmem>>, vector<8x1xf32>
    %c0_58 = arith.constant 0 : index
    %c1_59 = arith.constant 1 : index
    %74 = vector.load %arg3[%c0_58, %c1_59] : memref<8x2xf32, #tpu.memory_space<vmem>>, vector<8x1xf32>
    %c0_60 = arith.constant 0 : index
    %75 = memref.load %arg4[%c0_60] : memref<2xf32, #tpu.memory_space<smem>>
    %c1_61 = arith.constant 1 : index
    %76 = memref.load %arg4[%c1_61] : memref<2xf32, #tpu.memory_space<smem>>
    %77 = vector.broadcast %76 : f32 to vector<8x1xf32>
    %78 = arith.mulf %77, %73 : vector<8x1xf32>
    %79 = arith.mulf %78, %72 : vector<8x1xf32>
    %80 = vector.broadcast %75 : f32 to vector<8x1xf32>
    %81 = arith.addf %80, %79 : vector<8x1xf32>
    %82 = arith.mulf %63, %73 : vector<8x1xf32>
    %83 = arith.mulf %82, %72 : vector<8x1xf32>
    %84 = arith.subf %74, %83 : vector<8x1xf32>
    %85 = vector.broadcast %76 : f32 to vector<8x1xf32>
    %86 = arith.mulf %85, %84 : vector<8x1xf32>
    %87 = vector.broadcast %81 : vector<8x1xf32> to vector<8x1152xf32>
    %88 = arith.mulf %87, %56 : vector<8x1152xf32>
    %89 = vector.broadcast %86 : vector<8x1xf32> to vector<8x1152xf32>
    %90 = arith.addf %88, %89 : vector<8x1152xf32>
    %cst_62 = arith.constant 0.000000e+00 : f32
    %91 = vector.broadcast %cst_62 : f32 to vector<8x1152xf32>
    %92 = arith.cmpf oge, %90, %91 : vector<8x1152xf32>
    %cst_63 = arith.constant 2.000000e-01 : f32
    %93 = vector.broadcast %cst_63 : f32 to vector<8x1152xf32>
    %94 = arith.mulf %93, %90 : vector<8x1152xf32>
    %95 = arith.select %92, %90, %94 : vector<8x1152xi1>, vector<8x1152xf32>
    %96 = arith.mulf %95, %9 : vector<8x1152xf32>
    %c0_64 = arith.constant 0 : index
    %c128_65 = arith.constant 128 : index
    %97 = vector.load %arg19[%c0_64, %c128_65] : memref<8x1408xf32, #tpu.memory_space<vmem>>, vector<8x1152xf32>
    tpu.vector_store %arg19[%c0_64, %c128_65], %96 {strides = array<i32>} : memref<8x1408xf32, #tpu.memory_space<vmem>>, vector<8x1152xf32>,
    %cst_66 = arith.constant 0.000000e+00 : f32
    %98 = vector.broadcast %cst_66 : f32 to vector<8x1152xf32>
    %c0_67 = arith.constant 0 : index
    %c103_68 = arith.constant 103 : index
    %99 = vector.load %arg19[%c0_67, %c103_68] : memref<8x1408xf32, #tpu.memory_space<vmem>>, vector<8x1152xf32>
    %c0_69 = arith.constant 0 : index
    %c0_70 = arith.constant 0 : index
    %c0_71 = arith.constant 0 : index
    %100 = vector.load %arg5[%c0_69, %c0_70, %c0_71] : memref<9x8x8xf32, #tpu.memory_space<vmem>>, vector<1x8x8xf32>
    %101 = vector.shape_cast %100 : vector<1x8x8xf32> to vector<8x8xf32>
    %cst_72 = arith.constant dense<0.000000e+00> : vector<8x1152xf32>
    %102 = tpu.matmul %101, %99, %cst_72 {dimension_numbers = #tpu.dot_dimension_numbers<[1], [0], [0], [1], [0, 0, 1, 1], [], []>} : vector<8x8xf32>, vector<8x1152xf32>, vector<8x1152xf32> -> vector<8x1152xf32>
    %103 = arith.addf %98, %102 : vector<8x1152xf32>
    %c0_73 = arith.constant 0 : index
    %c104_74 = arith.constant 104 : index
    %104 = vector.load %arg19[%c0_73, %c104_74] : memref<8x1408xf32, #tpu.memory_space<vmem>>, vector<8x1152xf32>
    %c1_75 = arith.constant 1 : index
    %c0_76 = arith.constant 0 : index
    %c0_77 = arith.constant 0 : index
    %105 = vector.load %arg5[%c1_75, %c0_76, %c0_77] : memref<9x8x8xf32, #tpu.memory_space<vmem>>, vector<1x8x8xf32>
    %106 = vector.shape_cast %105 : vector<1x8x8xf32> to vector<8x8xf32>
    %cst_78 = arith.constant dense<0.000000e+00> : vector<8x1152xf32>
    %107 = tpu.matmul %106, %104, %cst_78 {dimension_numbers = #tpu.dot_dimension_numbers<[1], [0], [0], [1], [0, 0, 1, 1], [], []>} : vector<8x8xf32>, vector<8x1152xf32>, vector<8x1152xf32> -> vector<8x1152xf32>
    %108 = arith.addf %103, %107 : vector<8x1152xf32>
    %c0_79 = arith.constant 0 : index
    %c105_80 = arith.constant 105 : index
    %109 = vector.load %arg19[%c0_79, %c105_80] : memref<8x1408xf32, #tpu.memory_space<vmem>>, vector<8x1152xf32>
    %c2_81 = arith.constant 2 : index
    %c0_82 = arith.constant 0 : index
    %c0_83 = arith.constant 0 : index
    %110 = vector.load %arg5[%c2_81, %c0_82, %c0_83] : memref<9x8x8xf32, #tpu.memory_space<vmem>>, vector<1x8x8xf32>
    %111 = vector.shape_cast %110 : vector<1x8x8xf32> to vector<8x8xf32>
    %cst_84 = arith.constant dense<0.000000e+00> : vector<8x1152xf32>
    %112 = tpu.matmul %111, %109, %cst_84 {dimension_numbers = #tpu.dot_dimension_numbers<[1], [0], [0], [1], [0, 0, 1, 1], [], []>} : vector<8x8xf32>, vector<8x1152xf32>, vector<8x1152xf32> -> vector<8x1152xf32>
    %113 = arith.addf %108, %112 : vector<8x1152xf32>
    %c0_85 = arith.constant 0 : index
    %c127_86 = arith.constant 127 : index
    %114 = vector.load %arg19[%c0_85, %c127_86] : memref<8x1408xf32, #tpu.memory_space<vmem>>, vector<8x1152xf32>
    %c3_87 = arith.constant 3 : index
    %c0_88 = arith.constant 0 : index
    %c0_89 = arith.constant 0 : index
    %115 = vector.load %arg5[%c3_87, %c0_88, %c0_89] : memref<9x8x8xf32, #tpu.memory_space<vmem>>, vector<1x8x8xf32>
    %116 = vector.shape_cast %115 : vector<1x8x8xf32> to vector<8x8xf32>
    %cst_90 = arith.constant dense<0.000000e+00> : vector<8x1152xf32>
    %117 = tpu.matmul %116, %114, %cst_90 {dimension_numbers = #tpu.dot_dimension_numbers<[1], [0], [0], [1], [0, 0, 1, 1], [], []>} : vector<8x8xf32>, vector<8x1152xf32>, vector<8x1152xf32> -> vector<8x1152xf32>
    %118 = arith.addf %113, %117 : vector<8x1152xf32>
    %c0_91 = arith.constant 0 : index
    %c128_92 = arith.constant 128 : index
    %119 = vector.load %arg19[%c0_91, %c128_92] : memref<8x1408xf32, #tpu.memory_space<vmem>>, vector<8x1152xf32>
    %c4_93 = arith.constant 4 : index
    %c0_94 = arith.constant 0 : index
    %c0_95 = arith.constant 0 : index
    %120 = vector.load %arg5[%c4_93, %c0_94, %c0_95] : memref<9x8x8xf32, #tpu.memory_space<vmem>>, vector<1x8x8xf32>
    %121 = vector.shape_cast %120 : vector<1x8x8xf32> to vector<8x8xf32>
    %cst_96 = arith.constant dense<0.000000e+00> : vector<8x1152xf32>
    %122 = tpu.matmul %121, %119, %cst_96 {dimension_numbers = #tpu.dot_dimension_numbers<[1], [0], [0], [1], [0, 0, 1, 1], [], []>} : vector<8x8xf32>, vector<8x1152xf32>, vector<8x1152xf32> -> vector<8x1152xf32>
    %123 = arith.addf %118, %122 : vector<8x1152xf32>
    %c0_97 = arith.constant 0 : index
    %c129_98 = arith.constant 129 : index
    %124 = vector.load %arg19[%c0_97, %c129_98] : memref<8x1408xf32, #tpu.memory_space<vmem>>, vector<8x1152xf32>
    %c5_99 = arith.constant 5 : index
    %c0_100 = arith.constant 0 : index
    %c0_101 = arith.constant 0 : index
    %125 = vector.load %arg5[%c5_99, %c0_100, %c0_101] : memref<9x8x8xf32, #tpu.memory_space<vmem>>, vector<1x8x8xf32>
    %126 = vector.shape_cast %125 : vector<1x8x8xf32> to vector<8x8xf32>
    %cst_102 = arith.constant dense<0.000000e+00> : vector<8x1152xf32>
    %127 = tpu.matmul %126, %124, %cst_102 {dimension_numbers = #tpu.dot_dimension_numbers<[1], [0], [0], [1], [0, 0, 1, 1], [], []>} : vector<8x8xf32>, vector<8x1152xf32>, vector<8x1152xf32> -> vector<8x1152xf32>
    %128 = arith.addf %123, %127 : vector<8x1152xf32>
    %c0_103 = arith.constant 0 : index
    %c151_104 = arith.constant 151 : index
    %129 = vector.load %arg19[%c0_103, %c151_104] : memref<8x1408xf32, #tpu.memory_space<vmem>>, vector<8x1152xf32>
    %c6_105 = arith.constant 6 : index
    %c0_106 = arith.constant 0 : index
    %c0_107 = arith.constant 0 : index
    %130 = vector.load %arg5[%c6_105, %c0_106, %c0_107] : memref<9x8x8xf32, #tpu.memory_space<vmem>>, vector<1x8x8xf32>
    %131 = vector.shape_cast %130 : vector<1x8x8xf32> to vector<8x8xf32>
    %cst_108 = arith.constant dense<0.000000e+00> : vector<8x1152xf32>
    %132 = tpu.matmul %131, %129, %cst_108 {dimension_numbers = #tpu.dot_dimension_numbers<[1], [0], [0], [1], [0, 0, 1, 1], [], []>} : vector<8x8xf32>, vector<8x1152xf32>, vector<8x1152xf32> -> vector<8x1152xf32>
    %133 = arith.addf %128, %132 : vector<8x1152xf32>
    %c0_109 = arith.constant 0 : index
    %c152_110 = arith.constant 152 : index
    %134 = vector.load %arg19[%c0_109, %c152_110] : memref<8x1408xf32, #tpu.memory_space<vmem>>, vector<8x1152xf32>
    %c7_111 = arith.constant 7 : index
    %c0_112 = arith.constant 0 : index
    %c0_113 = arith.constant 0 : index
    %135 = vector.load %arg5[%c7_111, %c0_112, %c0_113] : memref<9x8x8xf32, #tpu.memory_space<vmem>>, vector<1x8x8xf32>
    %136 = vector.shape_cast %135 : vector<1x8x8xf32> to vector<8x8xf32>
    %cst_114 = arith.constant dense<0.000000e+00> : vector<8x1152xf32>
    %137 = tpu.matmul %136, %134, %cst_114 {dimension_numbers = #tpu.dot_dimension_numbers<[1], [0], [0], [1], [0, 0, 1, 1], [], []>} : vector<8x8xf32>, vector<8x1152xf32>, vector<8x1152xf32> -> vector<8x1152xf32>
    %138 = arith.addf %133, %137 : vector<8x1152xf32>
    %c0_115 = arith.constant 0 : index
    %c153_116 = arith.constant 153 : index
    %139 = vector.load %arg19[%c0_115, %c153_116] : memref<8x1408xf32, #tpu.memory_space<vmem>>, vector<8x1152xf32>
    %c8_117 = arith.constant 8 : index
    %c0_118 = arith.constant 0 : index
    %c0_119 = arith.constant 0 : index
    %140 = vector.load %arg5[%c8_117, %c0_118, %c0_119] : memref<9x8x8xf32, #tpu.memory_space<vmem>>, vector<1x8x8xf32>
    %141 = vector.shape_cast %140 : vector<1x8x8xf32> to vector<8x8xf32>
    %cst_120 = arith.constant dense<0.000000e+00> : vector<8x1152xf32>
    %142 = tpu.matmul %141, %139, %cst_120 {dimension_numbers = #tpu.dot_dimension_numbers<[1], [0], [0], [1], [0, 0, 1, 1], [], []>} : vector<8x8xf32>, vector<8x1152xf32>, vector<8x1152xf32> -> vector<8x1152xf32>
    %143 = arith.addf %138, %142 : vector<8x1152xf32>
    %144 = arith.mulf %143, %9 : vector<8x1152xf32>
    %cst_121 = arith.constant dense<0.000000e+00> : vector<8xf32>
    %145 = vector.multi_reduction <add>, %144, %cst_121 [1] : vector<8x1152xf32> to vector<8xf32>
    %146 = vector.shape_cast %145 : vector<8xf32> to vector<8x1xf32>
    %147 = arith.mulf %144, %144 : vector<8x1152xf32>
    %cst_122 = arith.constant dense<0.000000e+00> : vector<8xf32>
    %148 = vector.multi_reduction <add>, %147, %cst_122 [1] : vector<8x1152xf32> to vector<8xf32>
    %149 = vector.shape_cast %148 : vector<8xf32> to vector<8x1xf32>
    %cst_123 = arith.constant 0.001953125 : f32
    %150 = vector.broadcast %cst_123 : f32 to vector<8x1xf32>
    %151 = arith.mulf %146, %150 : vector<8x1xf32>
    %cst_124 = arith.constant 0.001953125 : f32
    %152 = vector.broadcast %cst_124 : f32 to vector<8x1xf32>
    %153 = arith.mulf %149, %152 : vector<8x1xf32>
    %154 = arith.mulf %151, %151 : vector<8x1xf32>
    %155 = arith.subf %153, %154 : vector<8x1xf32>
    %cst_125 = arith.constant 0.000000e+00 : f32
    %156 = vector.broadcast %cst_125 : f32 to vector<8x1xf32>
    %157 = arith.maximumf %155, %156 : vector<8x1xf32>
    %cst_126 = arith.constant 9.99999974E-6 : f32
    %158 = vector.broadcast %cst_126 : f32 to vector<8x1xf32>
    %159 = arith.addf %157, %158 : vector<8x1xf32>
    %160 = math.rsqrt %159 : vector<8x1xf32>
    %c0_127 = arith.constant 0 : index
    %c0_128 = arith.constant 0 : index
    %161 = vector.load %arg6[%c0_127, %c0_128] : memref<8x2xf32, #tpu.memory_space<vmem>>, vector<8x1xf32>
    %c0_129 = arith.constant 0 : index
    %c1_130 = arith.constant 1 : index
    %162 = vector.load %arg6[%c0_129, %c1_130] : memref<8x2xf32, #tpu.memory_space<vmem>>, vector<8x1xf32>
    %c0_131 = arith.constant 0 : index
    %163 = memref.load %arg7[%c0_131] : memref<2xf32, #tpu.memory_space<smem>>
    %c1_132 = arith.constant 1 : index
    %164 = memref.load %arg7[%c1_132] : memref<2xf32, #tpu.memory_space<smem>>
    %165 = vector.broadcast %164 : f32 to vector<8x1xf32>
    %166 = arith.mulf %165, %161 : vector<8x1xf32>
    %167 = arith.mulf %166, %160 : vector<8x1xf32>
    %168 = vector.broadcast %163 : f32 to vector<8x1xf32>
    %169 = arith.addf %168, %167 : vector<8x1xf32>
    %170 = arith.mulf %151, %161 : vector<8x1xf32>
    %171 = arith.mulf %170, %160 : vector<8x1xf32>
    %172 = arith.subf %162, %171 : vector<8x1xf32>
    %173 = vector.broadcast %164 : f32 to vector<8x1xf32>
    %174 = arith.mulf %173, %172 : vector<8x1xf32>
    %175 = vector.broadcast %169 : vector<8x1xf32> to vector<8x1152xf32>
    %176 = arith.mulf %175, %144 : vector<8x1152xf32>
    %177 = vector.broadcast %174 : vector<8x1xf32> to vector<8x1152xf32>
    %178 = arith.addf %176, %177 : vector<8x1152xf32>
    %cst_133 = arith.constant 0.000000e+00 : f32
    %179 = vector.broadcast %cst_133 : f32 to vector<8x1152xf32>
    %180 = arith.cmpf oge, %178, %179 : vector<8x1152xf32>
    %cst_134 = arith.constant 2.000000e-01 : f32
    %181 = vector.broadcast %cst_134 : f32 to vector<8x1152xf32>
    %182 = arith.mulf %181, %178 : vector<8x1152xf32>
    %183 = arith.select %180, %178, %182 : vector<8x1152xi1>, vector<8x1152xf32>
    %184 = arith.mulf %183, %9 : vector<8x1152xf32>
    %c0_135 = arith.constant 0 : index
    %c128_136 = arith.constant 128 : index
    %185 = vector.load %arg18[%c0_135, %c128_136] : memref<8x1408xf32, #tpu.memory_space<vmem>>, vector<8x1152xf32>
    tpu.vector_store %arg18[%c0_135, %c128_136], %184 {strides = array<i32>} : memref<8x1408xf32, #tpu.memory_space<vmem>>, vector<8x1152xf32>,
    %cst_137 = arith.constant 0.000000e+00 : f32
    %186 = vector.broadcast %cst_137 : f32 to vector<8x1152xf32>
    %c0_138 = arith.constant 0 : index
    %c78 = arith.constant 78 : index
    %187 = vector.load %arg18[%c0_138, %c78] : memref<8x1408xf32, #tpu.memory_space<vmem>>, vector<8x1152xf32>
    %c0_139 = arith.constant 0 : index
    %c0_140 = arith.constant 0 : index
    %c0_141 = arith.constant 0 : index
    %188 = vector.load %arg8[%c0_139, %c0_140, %c0_141] : memref<9x8x8xf32, #tpu.memory_space<vmem>>, vector<1x8x8xf32>
    %189 = vector.shape_cast %188 : vector<1x8x8xf32> to vector<8x8xf32>
    %cst_142 = arith.constant dense<0.000000e+00> : vector<8x1152xf32>
    %190 = tpu.matmul %189, %187, %cst_142 {dimension_numbers = #tpu.dot_dimension_numbers<[1], [0], [0], [1], [0, 0, 1, 1], [], []>} : vector<8x8xf32>, vector<8x1152xf32>, vector<8x1152xf32> -> vector<8x1152xf32>
    %191 = arith.addf %186, %190 : vector<8x1152xf32>
    %c0_143 = arith.constant 0 : index
    %c80 = arith.constant 80 : index
    %192 = vector.load %arg18[%c0_143, %c80] : memref<8x1408xf32, #tpu.memory_space<vmem>>, vector<8x1152xf32>
    %c1_144 = arith.constant 1 : index
    %c0_145 = arith.constant 0 : index
    %c0_146 = arith.constant 0 : index
    %193 = vector.load %arg8[%c1_144, %c0_145, %c0_146] : memref<9x8x8xf32, #tpu.memory_space<vmem>>, vector<1x8x8xf32>
    %194 = vector.shape_cast %193 : vector<1x8x8xf32> to vector<8x8xf32>
    %cst_147 = arith.constant dense<0.000000e+00> : vector<8x1152xf32>
    %195 = tpu.matmul %194, %192, %cst_147 {dimension_numbers = #tpu.dot_dimension_numbers<[1], [0], [0], [1], [0, 0, 1, 1], [], []>} : vector<8x8xf32>, vector<8x1152xf32>, vector<8x1152xf32> -> vector<8x1152xf32>
    %196 = arith.addf %191, %195 : vector<8x1152xf32>
    %c0_148 = arith.constant 0 : index
    %c82 = arith.constant 82 : index
    %197 = vector.load %arg18[%c0_148, %c82] : memref<8x1408xf32, #tpu.memory_space<vmem>>, vector<8x1152xf32>
    %c2_149 = arith.constant 2 : index
    %c0_150 = arith.constant 0 : index
    %c0_151 = arith.constant 0 : index
    %198 = vector.load %arg8[%c2_149, %c0_150, %c0_151] : memref<9x8x8xf32, #tpu.memory_space<vmem>>, vector<1x8x8xf32>
    %199 = vector.shape_cast %198 : vector<1x8x8xf32> to vector<8x8xf32>
    %cst_152 = arith.constant dense<0.000000e+00> : vector<8x1152xf32>
    %200 = tpu.matmul %199, %197, %cst_152 {dimension_numbers = #tpu.dot_dimension_numbers<[1], [0], [0], [1], [0, 0, 1, 1], [], []>} : vector<8x8xf32>, vector<8x1152xf32>, vector<8x1152xf32> -> vector<8x1152xf32>
    %201 = arith.addf %196, %200 : vector<8x1152xf32>
    %c0_153 = arith.constant 0 : index
    %c126 = arith.constant 126 : index
    %202 = vector.load %arg18[%c0_153, %c126] : memref<8x1408xf32, #tpu.memory_space<vmem>>, vector<8x1152xf32>
    %c3_154 = arith.constant 3 : index
    %c0_155 = arith.constant 0 : index
    %c0_156 = arith.constant 0 : index
    %203 = vector.load %arg8[%c3_154, %c0_155, %c0_156] : memref<9x8x8xf32, #tpu.memory_space<vmem>>, vector<1x8x8xf32>
    %204 = vector.shape_cast %203 : vector<1x8x8xf32> to vector<8x8xf32>
    %cst_157 = arith.constant dense<0.000000e+00> : vector<8x1152xf32>
    %205 = tpu.matmul %204, %202, %cst_157 {dimension_numbers = #tpu.dot_dimension_numbers<[1], [0], [0], [1], [0, 0, 1, 1], [], []>} : vector<8x8xf32>, vector<8x1152xf32>, vector<8x1152xf32> -> vector<8x1152xf32>
    %206 = arith.addf %201, %205 : vector<8x1152xf32>
    %c0_158 = arith.constant 0 : index
    %c128_159 = arith.constant 128 : index
    %207 = vector.load %arg18[%c0_158, %c128_159] : memref<8x1408xf32, #tpu.memory_space<vmem>>, vector<8x1152xf32>
    %c4_160 = arith.constant 4 : index
    %c0_161 = arith.constant 0 : index
    %c0_162 = arith.constant 0 : index
    %208 = vector.load %arg8[%c4_160, %c0_161, %c0_162] : memref<9x8x8xf32, #tpu.memory_space<vmem>>, vector<1x8x8xf32>
    %209 = vector.shape_cast %208 : vector<1x8x8xf32> to vector<8x8xf32>
    %cst_163 = arith.constant dense<0.000000e+00> : vector<8x1152xf32>
    %210 = tpu.matmul %209, %207, %cst_163 {dimension_numbers = #tpu.dot_dimension_numbers<[1], [0], [0], [1], [0, 0, 1, 1], [], []>} : vector<8x8xf32>, vector<8x1152xf32>, vector<8x1152xf32> -> vector<8x1152xf32>
    %211 = arith.addf %206, %210 : vector<8x1152xf32>
    %c0_164 = arith.constant 0 : index
    %c130 = arith.constant 130 : index
    %212 = vector.load %arg18[%c0_164, %c130] : memref<8x1408xf32, #tpu.memory_space<vmem>>, vector<8x1152xf32>
    %c5_165 = arith.constant 5 : index
    %c0_166 = arith.constant 0 : index
    %c0_167 = arith.constant 0 : index
    %213 = vector.load %arg8[%c5_165, %c0_166, %c0_167] : memref<9x8x8xf32, #tpu.memory_space<vmem>>, vector<1x8x8xf32>
    %214 = vector.shape_cast %213 : vector<1x8x8xf32> to vector<8x8xf32>
    %cst_168 = arith.constant dense<0.000000e+00> : vector<8x1152xf32>
    %215 = tpu.matmul %214, %212, %cst_168 {dimension_numbers = #tpu.dot_dimension_numbers<[1], [0], [0], [1], [0, 0, 1, 1], [], []>} : vector<8x8xf32>, vector<8x1152xf32>, vector<8x1152xf32> -> vector<8x1152xf32>
    %216 = arith.addf %211, %215 : vector<8x1152xf32>
    %c0_169 = arith.constant 0 : index
    %c174 = arith.constant 174 : index
    %217 = vector.load %arg18[%c0_169, %c174] : memref<8x1408xf32, #tpu.memory_space<vmem>>, vector<8x1152xf32>
    %c6_170 = arith.constant 6 : index
    %c0_171 = arith.constant 0 : index
    %c0_172 = arith.constant 0 : index
    %218 = vector.load %arg8[%c6_170, %c0_171, %c0_172] : memref<9x8x8xf32, #tpu.memory_space<vmem>>, vector<1x8x8xf32>
    %219 = vector.shape_cast %218 : vector<1x8x8xf32> to vector<8x8xf32>
    %cst_173 = arith.constant dense<0.000000e+00> : vector<8x1152xf32>
    %220 = tpu.matmul %219, %217, %cst_173 {dimension_numbers = #tpu.dot_dimension_numbers<[1], [0], [0], [1], [0, 0, 1, 1], [], []>} : vector<8x8xf32>, vector<8x1152xf32>, vector<8x1152xf32> -> vector<8x1152xf32>
    %221 = arith.addf %216, %220 : vector<8x1152xf32>
    %c0_174 = arith.constant 0 : index
    %c176 = arith.constant 176 : index
    %222 = vector.load %arg18[%c0_174, %c176] : memref<8x1408xf32, #tpu.memory_space<vmem>>, vector<8x1152xf32>
    %c7_175 = arith.constant 7 : index
    %c0_176 = arith.constant 0 : index
    %c0_177 = arith.constant 0 : index
    %223 = vector.load %arg8[%c7_175, %c0_176, %c0_177] : memref<9x8x8xf32, #tpu.memory_space<vmem>>, vector<1x8x8xf32>
    %224 = vector.shape_cast %223 : vector<1x8x8xf32> to vector<8x8xf32>
    %cst_178 = arith.constant dense<0.000000e+00> : vector<8x1152xf32>
    %225 = tpu.matmul %224, %222, %cst_178 {dimension_numbers = #tpu.dot_dimension_numbers<[1], [0], [0], [1], [0, 0, 1, 1], [], []>} : vector<8x8xf32>, vector<8x1152xf32>, vector<8x1152xf32> -> vector<8x1152xf32>
    %226 = arith.addf %221, %225 : vector<8x1152xf32>
    %c0_179 = arith.constant 0 : index
    %c178 = arith.constant 178 : index
    %227 = vector.load %arg18[%c0_179, %c178] : memref<8x1408xf32, #tpu.memory_space<vmem>>, vector<8x1152xf32>
    %c8_180 = arith.constant 8 : index
    %c0_181 = arith.constant 0 : index
    %c0_182 = arith.constant 0 : index
    %228 = vector.load %arg8[%c8_180, %c0_181, %c0_182] : memref<9x8x8xf32, #tpu.memory_space<vmem>>, vector<1x8x8xf32>
    %229 = vector.shape_cast %228 : vector<1x8x8xf32> to vector<8x8xf32>
    %cst_183 = arith.constant dense<0.000000e+00> : vector<8x1152xf32>
    %230 = tpu.matmul %229, %227, %cst_183 {dimension_numbers = #tpu.dot_dimension_numbers<[1], [0], [0], [1], [0, 0, 1, 1], [], []>} : vector<8x8xf32>, vector<8x1152xf32>, vector<8x1152xf32> -> vector<8x1152xf32>
    %231 = arith.addf %226, %230 : vector<8x1152xf32>
    %232 = arith.mulf %231, %9 : vector<8x1152xf32>
    %cst_184 = arith.constant dense<0.000000e+00> : vector<8xf32>
    %233 = vector.multi_reduction <add>, %232, %cst_184 [1] : vector<8x1152xf32> to vector<8xf32>
    %234 = vector.shape_cast %233 : vector<8xf32> to vector<8x1xf32>
    %235 = arith.mulf %232, %232 : vector<8x1152xf32>
    %cst_185 = arith.constant dense<0.000000e+00> : vector<8xf32>
    %236 = vector.multi_reduction <add>, %235, %cst_185 [1] : vector<8x1152xf32> to vector<8xf32>
    %237 = vector.shape_cast %236 : vector<8xf32> to vector<8x1xf32>
    %cst_186 = arith.constant 0.001953125 : f32
    %238 = vector.broadcast %cst_186 : f32 to vector<8x1xf32>
    %239 = arith.mulf %234, %238 : vector<8x1xf32>
    %cst_187 = arith.constant 0.001953125 : f32
    %240 = vector.broadcast %cst_187 : f32 to vector<8x1xf32>
    %241 = arith.mulf %237, %240 : vector<8x1xf32>
    %242 = arith.mulf %239, %239 : vector<8x1xf32>
    %243 = arith.subf %241, %242 : vector<8x1xf32>
    %cst_188 = arith.constant 0.000000e+00 : f32
    %244 = vector.broadcast %cst_188 : f32 to vector<8x1xf32>
    %245 = arith.maximumf %243, %244 : vector<8x1xf32>
    %cst_189 = arith.constant 9.99999974E-6 : f32
    %246 = vector.broadcast %cst_189 : f32 to vector<8x1xf32>
    %247 = arith.addf %245, %246 : vector<8x1xf32>
    %248 = math.rsqrt %247 : vector<8x1xf32>
    %c0_190 = arith.constant 0 : index
    %c0_191 = arith.constant 0 : index
    %249 = vector.load %arg9[%c0_190, %c0_191] : memref<8x2xf32, #tpu.memory_space<vmem>>, vector<8x1xf32>
    %c0_192 = arith.constant 0 : index
    %c1_193 = arith.constant 1 : index
    %250 = vector.load %arg9[%c0_192, %c1_193] : memref<8x2xf32, #tpu.memory_space<vmem>>, vector<8x1xf32>
    %c0_194 = arith.constant 0 : index
    %251 = memref.load %arg10[%c0_194] : memref<2xf32, #tpu.memory_space<smem>>
    %c1_195 = arith.constant 1 : index
    %252 = memref.load %arg10[%c1_195] : memref<2xf32, #tpu.memory_space<smem>>
    %253 = vector.broadcast %252 : f32 to vector<8x1xf32>
    %254 = arith.mulf %253, %249 : vector<8x1xf32>
    %255 = arith.mulf %254, %248 : vector<8x1xf32>
    %256 = vector.broadcast %251 : f32 to vector<8x1xf32>
    %257 = arith.addf %256, %255 : vector<8x1xf32>
    %258 = arith.mulf %239, %249 : vector<8x1xf32>
    %259 = arith.mulf %258, %248 : vector<8x1xf32>
    %260 = arith.subf %250, %259 : vector<8x1xf32>
    %261 = vector.broadcast %252 : f32 to vector<8x1xf32>
    %262 = arith.mulf %261, %260 : vector<8x1xf32>
    %263 = vector.broadcast %257 : vector<8x1xf32> to vector<8x1152xf32>
    %264 = arith.mulf %263, %232 : vector<8x1152xf32>
    %265 = vector.broadcast %262 : vector<8x1xf32> to vector<8x1152xf32>
    %266 = arith.addf %264, %265 : vector<8x1152xf32>
    %cst_196 = arith.constant 0.000000e+00 : f32
    %267 = vector.broadcast %cst_196 : f32 to vector<8x1152xf32>
    %268 = arith.cmpf oge, %266, %267 : vector<8x1152xf32>
    %cst_197 = arith.constant 2.000000e-01 : f32
    %269 = vector.broadcast %cst_197 : f32 to vector<8x1152xf32>
    %270 = arith.mulf %269, %266 : vector<8x1152xf32>
    %271 = arith.select %268, %266, %270 : vector<8x1152xi1>, vector<8x1152xf32>
    %272 = arith.mulf %271, %9 : vector<8x1152xf32>
    %c0_198 = arith.constant 0 : index
    %c128_199 = arith.constant 128 : index
    %273 = vector.load %arg19[%c0_198, %c128_199] : memref<8x1408xf32, #tpu.memory_space<vmem>>, vector<8x1152xf32>
    tpu.vector_store %arg19[%c0_198, %c128_199], %272 {strides = array<i32>} : memref<8x1408xf32, #tpu.memory_space<vmem>>, vector<8x1152xf32>,
    %cst_200 = arith.constant 0.000000e+00 : f32
    %274 = vector.broadcast %cst_200 : f32 to vector<8x1152xf32>
    %c0_201 = arith.constant 0 : index
    %c28 = arith.constant 28 : index
    %275 = vector.load %arg19[%c0_201, %c28] : memref<8x1408xf32, #tpu.memory_space<vmem>>, vector<8x1152xf32>
    %c0_202 = arith.constant 0 : index
    %c0_203 = arith.constant 0 : index
    %c0_204 = arith.constant 0 : index
    %276 = vector.load %arg11[%c0_202, %c0_203, %c0_204] : memref<9x8x8xf32, #tpu.memory_space<vmem>>, vector<1x8x8xf32>
    %277 = vector.shape_cast %276 : vector<1x8x8xf32> to vector<8x8xf32>
    %cst_205 = arith.constant dense<0.000000e+00> : vector<8x1152xf32>
    %278 = tpu.matmul %277, %275, %cst_205 {dimension_numbers = #tpu.dot_dimension_numbers<[1], [0], [0], [1], [0, 0, 1, 1], [], []>} : vector<8x8xf32>, vector<8x1152xf32>, vector<8x1152xf32> -> vector<8x1152xf32>
    %279 = arith.addf %274, %278 : vector<8x1152xf32>
    %c0_206 = arith.constant 0 : index
    %c32 = arith.constant 32 : index
    %280 = vector.load %arg19[%c0_206, %c32] : memref<8x1408xf32, #tpu.memory_space<vmem>>, vector<8x1152xf32>
    %c1_207 = arith.constant 1 : index
    %c0_208 = arith.constant 0 : index
    %c0_209 = arith.constant 0 : index
    %281 = vector.load %arg11[%c1_207, %c0_208, %c0_209] : memref<9x8x8xf32, #tpu.memory_space<vmem>>, vector<1x8x8xf32>
    %282 = vector.shape_cast %281 : vector<1x8x8xf32> to vector<8x8xf32>
    %cst_210 = arith.constant dense<0.000000e+00> : vector<8x1152xf32>
    %283 = tpu.matmul %282, %280, %cst_210 {dimension_numbers = #tpu.dot_dimension_numbers<[1], [0], [0], [1], [0, 0, 1, 1], [], []>} : vector<8x8xf32>, vector<8x1152xf32>, vector<8x1152xf32> -> vector<8x1152xf32>
    %284 = arith.addf %279, %283 : vector<8x1152xf32>
    %c0_211 = arith.constant 0 : index
    %c36 = arith.constant 36 : index
    %285 = vector.load %arg19[%c0_211, %c36] : memref<8x1408xf32, #tpu.memory_space<vmem>>, vector<8x1152xf32>
    %c2_212 = arith.constant 2 : index
    %c0_213 = arith.constant 0 : index
    %c0_214 = arith.constant 0 : index
    %286 = vector.load %arg11[%c2_212, %c0_213, %c0_214] : memref<9x8x8xf32, #tpu.memory_space<vmem>>, vector<1x8x8xf32>
    %287 = vector.shape_cast %286 : vector<1x8x8xf32> to vector<8x8xf32>
    %cst_215 = arith.constant dense<0.000000e+00> : vector<8x1152xf32>
    %288 = tpu.matmul %287, %285, %cst_215 {dimension_numbers = #tpu.dot_dimension_numbers<[1], [0], [0], [1], [0, 0, 1, 1], [], []>} : vector<8x8xf32>, vector<8x1152xf32>, vector<8x1152xf32> -> vector<8x1152xf32>
    %289 = arith.addf %284, %288 : vector<8x1152xf32>
    %c0_216 = arith.constant 0 : index
    %c124 = arith.constant 124 : index
    %290 = vector.load %arg19[%c0_216, %c124] : memref<8x1408xf32, #tpu.memory_space<vmem>>, vector<8x1152xf32>
    %c3_217 = arith.constant 3 : index
    %c0_218 = arith.constant 0 : index
    %c0_219 = arith.constant 0 : index
    %291 = vector.load %arg11[%c3_217, %c0_218, %c0_219] : memref<9x8x8xf32, #tpu.memory_space<vmem>>, vector<1x8x8xf32>
    %292 = vector.shape_cast %291 : vector<1x8x8xf32> to vector<8x8xf32>
    %cst_220 = arith.constant dense<0.000000e+00> : vector<8x1152xf32>
    %293 = tpu.matmul %292, %290, %cst_220 {dimension_numbers = #tpu.dot_dimension_numbers<[1], [0], [0], [1], [0, 0, 1, 1], [], []>} : vector<8x8xf32>, vector<8x1152xf32>, vector<8x1152xf32> -> vector<8x1152xf32>
    %294 = arith.addf %289, %293 : vector<8x1152xf32>
    %c0_221 = arith.constant 0 : index
    %c128_222 = arith.constant 128 : index
    %295 = vector.load %arg19[%c0_221, %c128_222] : memref<8x1408xf32, #tpu.memory_space<vmem>>, vector<8x1152xf32>
    %c4_223 = arith.constant 4 : index
    %c0_224 = arith.constant 0 : index
    %c0_225 = arith.constant 0 : index
    %296 = vector.load %arg11[%c4_223, %c0_224, %c0_225] : memref<9x8x8xf32, #tpu.memory_space<vmem>>, vector<1x8x8xf32>
    %297 = vector.shape_cast %296 : vector<1x8x8xf32> to vector<8x8xf32>
    %cst_226 = arith.constant dense<0.000000e+00> : vector<8x1152xf32>
    %298 = tpu.matmul %297, %295, %cst_226 {dimension_numbers = #tpu.dot_dimension_numbers<[1], [0], [0], [1], [0, 0, 1, 1], [], []>} : vector<8x8xf32>, vector<8x1152xf32>, vector<8x1152xf32> -> vector<8x1152xf32>
    %299 = arith.addf %294, %298 : vector<8x1152xf32>
    %c0_227 = arith.constant 0 : index
    %c132 = arith.constant 132 : index
    %300 = vector.load %arg19[%c0_227, %c132] : memref<8x1408xf32, #tpu.memory_space<vmem>>, vector<8x1152xf32>
    %c5_228 = arith.constant 5 : index
    %c0_229 = arith.constant 0 : index
    %c0_230 = arith.constant 0 : index
    %301 = vector.load %arg11[%c5_228, %c0_229, %c0_230] : memref<9x8x8xf32, #tpu.memory_space<vmem>>, vector<1x8x8xf32>
    %302 = vector.shape_cast %301 : vector<1x8x8xf32> to vector<8x8xf32>
    %cst_231 = arith.constant dense<0.000000e+00> : vector<8x1152xf32>
    %303 = tpu.matmul %302, %300, %cst_231 {dimension_numbers = #tpu.dot_dimension_numbers<[1], [0], [0], [1], [0, 0, 1, 1], [], []>} : vector<8x8xf32>, vector<8x1152xf32>, vector<8x1152xf32> -> vector<8x1152xf32>
    %304 = arith.addf %299, %303 : vector<8x1152xf32>
    %c0_232 = arith.constant 0 : index
    %c220 = arith.constant 220 : index
    %305 = vector.load %arg19[%c0_232, %c220] : memref<8x1408xf32, #tpu.memory_space<vmem>>, vector<8x1152xf32>
    %c6_233 = arith.constant 6 : index
    %c0_234 = arith.constant 0 : index
    %c0_235 = arith.constant 0 : index
    %306 = vector.load %arg11[%c6_233, %c0_234, %c0_235] : memref<9x8x8xf32, #tpu.memory_space<vmem>>, vector<1x8x8xf32>
    %307 = vector.shape_cast %306 : vector<1x8x8xf32> to vector<8x8xf32>
    %cst_236 = arith.constant dense<0.000000e+00> : vector<8x1152xf32>
    %308 = tpu.matmul %307, %305, %cst_236 {dimension_numbers = #tpu.dot_dimension_numbers<[1], [0], [0], [1], [0, 0, 1, 1], [], []>} : vector<8x8xf32>, vector<8x1152xf32>, vector<8x1152xf32> -> vector<8x1152xf32>
    %309 = arith.addf %304, %308 : vector<8x1152xf32>
    %c0_237 = arith.constant 0 : index
    %c224 = arith.constant 224 : index
    %310 = vector.load %arg19[%c0_237, %c224] : memref<8x1408xf32, #tpu.memory_space<vmem>>, vector<8x1152xf32>
    %c7_238 = arith.constant 7 : index
    %c0_239 = arith.constant 0 : index
    %c0_240 = arith.constant 0 : index
    %311 = vector.load %arg11[%c7_238, %c0_239, %c0_240] : memref<9x8x8xf32, #tpu.memory_space<vmem>>, vector<1x8x8xf32>
    %312 = vector.shape_cast %311 : vector<1x8x8xf32> to vector<8x8xf32>
    %cst_241 = arith.constant dense<0.000000e+00> : vector<8x1152xf32>
    %313 = tpu.matmul %312, %310, %cst_241 {dimension_numbers = #tpu.dot_dimension_numbers<[1], [0], [0], [1], [0, 0, 1, 1], [], []>} : vector<8x8xf32>, vector<8x1152xf32>, vector<8x1152xf32> -> vector<8x1152xf32>
    %314 = arith.addf %309, %313 : vector<8x1152xf32>
    %c0_242 = arith.constant 0 : index
    %c228 = arith.constant 228 : index
    %315 = vector.load %arg19[%c0_242, %c228] : memref<8x1408xf32, #tpu.memory_space<vmem>>, vector<8x1152xf32>
    %c8_243 = arith.constant 8 : index
    %c0_244 = arith.constant 0 : index
    %c0_245 = arith.constant 0 : index
    %316 = vector.load %arg11[%c8_243, %c0_244, %c0_245] : memref<9x8x8xf32, #tpu.memory_space<vmem>>, vector<1x8x8xf32>
    %317 = vector.shape_cast %316 : vector<1x8x8xf32> to vector<8x8xf32>
    %cst_246 = arith.constant dense<0.000000e+00> : vector<8x1152xf32>
    %318 = tpu.matmul %317, %315, %cst_246 {dimension_numbers = #tpu.dot_dimension_numbers<[1], [0], [0], [1], [0, 0, 1, 1], [], []>} : vector<8x8xf32>, vector<8x1152xf32>, vector<8x1152xf32> -> vector<8x1152xf32>
    %319 = arith.addf %314, %318 : vector<8x1152xf32>
    %320 = arith.mulf %319, %9 : vector<8x1152xf32>
    %cst_247 = arith.constant dense<0.000000e+00> : vector<8xf32>
    %321 = vector.multi_reduction <add>, %320, %cst_247 [1] : vector<8x1152xf32> to vector<8xf32>
    %322 = vector.shape_cast %321 : vector<8xf32> to vector<8x1xf32>
    %323 = arith.mulf %320, %320 : vector<8x1152xf32>
    %cst_248 = arith.constant dense<0.000000e+00> : vector<8xf32>
    %324 = vector.multi_reduction <add>, %323, %cst_248 [1] : vector<8x1152xf32> to vector<8xf32>
    %325 = vector.shape_cast %324 : vector<8xf32> to vector<8x1xf32>
    %cst_249 = arith.constant 0.001953125 : f32
    %326 = vector.broadcast %cst_249 : f32 to vector<8x1xf32>
    %327 = arith.mulf %322, %326 : vector<8x1xf32>
    %cst_250 = arith.constant 0.001953125 : f32
    %328 = vector.broadcast %cst_250 : f32 to vector<8x1xf32>
    %329 = arith.mulf %325, %328 : vector<8x1xf32>
    %330 = arith.mulf %327, %327 : vector<8x1xf32>
    %331 = arith.subf %329, %330 : vector<8x1xf32>
    %cst_251 = arith.constant 0.000000e+00 : f32
    %332 = vector.broadcast %cst_251 : f32 to vector<8x1xf32>
    %333 = arith.maximumf %331, %332 : vector<8x1xf32>
    %cst_252 = arith.constant 9.99999974E-6 : f32
    %334 = vector.broadcast %cst_252 : f32 to vector<8x1xf32>
    %335 = arith.addf %333, %334 : vector<8x1xf32>
    %336 = math.rsqrt %335 : vector<8x1xf32>
    %c0_253 = arith.constant 0 : index
    %c0_254 = arith.constant 0 : index
    %337 = vector.load %arg12[%c0_253, %c0_254] : memref<8x2xf32, #tpu.memory_space<vmem>>, vector<8x1xf32>
    %c0_255 = arith.constant 0 : index
    %c1_256 = arith.constant 1 : index
    %338 = vector.load %arg12[%c0_255, %c1_256] : memref<8x2xf32, #tpu.memory_space<vmem>>, vector<8x1xf32>
    %c0_257 = arith.constant 0 : index
    %339 = memref.load %arg13[%c0_257] : memref<2xf32, #tpu.memory_space<smem>>
    %c1_258 = arith.constant 1 : index
    %340 = memref.load %arg13[%c1_258] : memref<2xf32, #tpu.memory_space<smem>>
    %341 = vector.broadcast %340 : f32 to vector<8x1xf32>
    %342 = arith.mulf %341, %337 : vector<8x1xf32>
    %343 = arith.mulf %342, %336 : vector<8x1xf32>
    %344 = vector.broadcast %339 : f32 to vector<8x1xf32>
    %345 = arith.addf %344, %343 : vector<8x1xf32>
    %346 = arith.mulf %327, %337 : vector<8x1xf32>
    %347 = arith.mulf %346, %336 : vector<8x1xf32>
    %348 = arith.subf %338, %347 : vector<8x1xf32>
    %349 = vector.broadcast %340 : f32 to vector<8x1xf32>
    %350 = arith.mulf %349, %348 : vector<8x1xf32>
    %351 = vector.broadcast %345 : vector<8x1xf32> to vector<8x1152xf32>
    %352 = arith.mulf %351, %320 : vector<8x1152xf32>
    %353 = vector.broadcast %350 : vector<8x1xf32> to vector<8x1152xf32>
    %354 = arith.addf %352, %353 : vector<8x1152xf32>
    %cst_259 = arith.constant 0.000000e+00 : f32
    %355 = vector.broadcast %cst_259 : f32 to vector<8x1152xf32>
    %356 = arith.cmpf oge, %354, %355 : vector<8x1152xf32>
    %cst_260 = arith.constant 2.000000e-01 : f32
    %357 = vector.broadcast %cst_260 : f32 to vector<8x1152xf32>
    %358 = arith.mulf %357, %354 : vector<8x1152xf32>
    %359 = arith.select %356, %354, %358 : vector<8x1152xi1>, vector<8x1152xf32>
    %360 = arith.mulf %359, %9 : vector<8x1152xf32>
    %c0_261 = arith.constant 0 : index
    %c128_262 = arith.constant 128 : index
    %361 = vector.load %arg18[%c0_261, %c128_262] : memref<8x1408xf32, #tpu.memory_space<vmem>>, vector<8x1152xf32>
    tpu.vector_store %arg18[%c0_261, %c128_262], %360 {strides = array<i32>} : memref<8x1408xf32, #tpu.memory_space<vmem>>, vector<8x1152xf32>,
    %cst_263 = arith.constant 0.000000e+00 : f32
    %362 = vector.broadcast %cst_263 : f32 to vector<8x1152xf32>
    %c0_264 = arith.constant 0 : index
    %c103_265 = arith.constant 103 : index
    %363 = vector.load %arg18[%c0_264, %c103_265] : memref<8x1408xf32, #tpu.memory_space<vmem>>, vector<8x1152xf32>
    %c0_266 = arith.constant 0 : index
    %c0_267 = arith.constant 0 : index
    %c0_268 = arith.constant 0 : index
    %364 = vector.load %arg14[%c0_266, %c0_267, %c0_268] : memref<9x8x8xf32, #tpu.memory_space<vmem>>, vector<1x8x8xf32>
    %365 = vector.shape_cast %364 : vector<1x8x8xf32> to vector<8x8xf32>
    %cst_269 = arith.constant dense<0.000000e+00> : vector<8x1152xf32>
    %366 = tpu.matmul %365, %363, %cst_269 {dimension_numbers = #tpu.dot_dimension_numbers<[1], [0], [0], [1], [0, 0, 1, 1], [], []>} : vector<8x8xf32>, vector<8x1152xf32>, vector<8x1152xf32> -> vector<8x1152xf32>
    %367 = arith.addf %362, %366 : vector<8x1152xf32>
    %c0_270 = arith.constant 0 : index
    %c104_271 = arith.constant 104 : index
    %368 = vector.load %arg18[%c0_270, %c104_271] : memref<8x1408xf32, #tpu.memory_space<vmem>>, vector<8x1152xf32>
    %c1_272 = arith.constant 1 : index
    %c0_273 = arith.constant 0 : index
    %c0_274 = arith.constant 0 : index
    %369 = vector.load %arg14[%c1_272, %c0_273, %c0_274] : memref<9x8x8xf32, #tpu.memory_space<vmem>>, vector<1x8x8xf32>
    %370 = vector.shape_cast %369 : vector<1x8x8xf32> to vector<8x8xf32>
    %cst_275 = arith.constant dense<0.000000e+00> : vector<8x1152xf32>
    %371 = tpu.matmul %370, %368, %cst_275 {dimension_numbers = #tpu.dot_dimension_numbers<[1], [0], [0], [1], [0, 0, 1, 1], [], []>} : vector<8x8xf32>, vector<8x1152xf32>, vector<8x1152xf32> -> vector<8x1152xf32>
    %372 = arith.addf %367, %371 : vector<8x1152xf32>
    %c0_276 = arith.constant 0 : index
    %c105_277 = arith.constant 105 : index
    %373 = vector.load %arg18[%c0_276, %c105_277] : memref<8x1408xf32, #tpu.memory_space<vmem>>, vector<8x1152xf32>
    %c2_278 = arith.constant 2 : index
    %c0_279 = arith.constant 0 : index
    %c0_280 = arith.constant 0 : index
    %374 = vector.load %arg14[%c2_278, %c0_279, %c0_280] : memref<9x8x8xf32, #tpu.memory_space<vmem>>, vector<1x8x8xf32>
    %375 = vector.shape_cast %374 : vector<1x8x8xf32> to vector<8x8xf32>
    %cst_281 = arith.constant dense<0.000000e+00> : vector<8x1152xf32>
    %376 = tpu.matmul %375, %373, %cst_281 {dimension_numbers = #tpu.dot_dimension_numbers<[1], [0], [0], [1], [0, 0, 1, 1], [], []>} : vector<8x8xf32>, vector<8x1152xf32>, vector<8x1152xf32> -> vector<8x1152xf32>
    %377 = arith.addf %372, %376 : vector<8x1152xf32>
    %c0_282 = arith.constant 0 : index
    %c127_283 = arith.constant 127 : index
    %378 = vector.load %arg18[%c0_282, %c127_283] : memref<8x1408xf32, #tpu.memory_space<vmem>>, vector<8x1152xf32>
    %c3_284 = arith.constant 3 : index
    %c0_285 = arith.constant 0 : index
    %c0_286 = arith.constant 0 : index
    %379 = vector.load %arg14[%c3_284, %c0_285, %c0_286] : memref<9x8x8xf32, #tpu.memory_space<vmem>>, vector<1x8x8xf32>
    %380 = vector.shape_cast %379 : vector<1x8x8xf32> to vector<8x8xf32>
    %cst_287 = arith.constant dense<0.000000e+00> : vector<8x1152xf32>
    %381 = tpu.matmul %380, %378, %cst_287 {dimension_numbers = #tpu.dot_dimension_numbers<[1], [0], [0], [1], [0, 0, 1, 1], [], []>} : vector<8x8xf32>, vector<8x1152xf32>, vector<8x1152xf32> -> vector<8x1152xf32>
    %382 = arith.addf %377, %381 : vector<8x1152xf32>
    %c0_288 = arith.constant 0 : index
    %c128_289 = arith.constant 128 : index
    %383 = vector.load %arg18[%c0_288, %c128_289] : memref<8x1408xf32, #tpu.memory_space<vmem>>, vector<8x1152xf32>
    %c4_290 = arith.constant 4 : index
    %c0_291 = arith.constant 0 : index
    %c0_292 = arith.constant 0 : index
    %384 = vector.load %arg14[%c4_290, %c0_291, %c0_292] : memref<9x8x8xf32, #tpu.memory_space<vmem>>, vector<1x8x8xf32>
    %385 = vector.shape_cast %384 : vector<1x8x8xf32> to vector<8x8xf32>
    %cst_293 = arith.constant dense<0.000000e+00> : vector<8x1152xf32>
    %386 = tpu.matmul %385, %383, %cst_293 {dimension_numbers = #tpu.dot_dimension_numbers<[1], [0], [0], [1], [0, 0, 1, 1], [], []>} : vector<8x8xf32>, vector<8x1152xf32>, vector<8x1152xf32> -> vector<8x1152xf32>
    %387 = arith.addf %382, %386 : vector<8x1152xf32>
    %c0_294 = arith.constant 0 : index
    %c129_295 = arith.constant 129 : index
    %388 = vector.load %arg18[%c0_294, %c129_295] : memref<8x1408xf32, #tpu.memory_space<vmem>>, vector<8x1152xf32>
    %c5_296 = arith.constant 5 : index
    %c0_297 = arith.constant 0 : index
    %c0_298 = arith.constant 0 : index
    %389 = vector.load %arg14[%c5_296, %c0_297, %c0_298] : memref<9x8x8xf32, #tpu.memory_space<vmem>>, vector<1x8x8xf32>
    %390 = vector.shape_cast %389 : vector<1x8x8xf32> to vector<8x8xf32>
    %cst_299 = arith.constant dense<0.000000e+00> : vector<8x1152xf32>
    %391 = tpu.matmul %390, %388, %cst_299 {dimension_numbers = #tpu.dot_dimension_numbers<[1], [0], [0], [1], [0, 0, 1, 1], [], []>} : vector<8x8xf32>, vector<8x1152xf32>, vector<8x1152xf32> -> vector<8x1152xf32>
    %392 = arith.addf %387, %391 : vector<8x1152xf32>
    %c0_300 = arith.constant 0 : index
    %c151_301 = arith.constant 151 : index
    %393 = vector.load %arg18[%c0_300, %c151_301] : memref<8x1408xf32, #tpu.memory_space<vmem>>, vector<8x1152xf32>
    %c6_302 = arith.constant 6 : index
    %c0_303 = arith.constant 0 : index
    %c0_304 = arith.constant 0 : index
    %394 = vector.load %arg14[%c6_302, %c0_303, %c0_304] : memref<9x8x8xf32, #tpu.memory_space<vmem>>, vector<1x8x8xf32>
    %395 = vector.shape_cast %394 : vector<1x8x8xf32> to vector<8x8xf32>
    %cst_305 = arith.constant dense<0.000000e+00> : vector<8x1152xf32>
    %396 = tpu.matmul %395, %393, %cst_305 {dimension_numbers = #tpu.dot_dimension_numbers<[1], [0], [0], [1], [0, 0, 1, 1], [], []>} : vector<8x8xf32>, vector<8x1152xf32>, vector<8x1152xf32> -> vector<8x1152xf32>
    %397 = arith.addf %392, %396 : vector<8x1152xf32>
    %c0_306 = arith.constant 0 : index
    %c152_307 = arith.constant 152 : index
    %398 = vector.load %arg18[%c0_306, %c152_307] : memref<8x1408xf32, #tpu.memory_space<vmem>>, vector<8x1152xf32>
    %c7_308 = arith.constant 7 : index
    %c0_309 = arith.constant 0 : index
    %c0_310 = arith.constant 0 : index
    %399 = vector.load %arg14[%c7_308, %c0_309, %c0_310] : memref<9x8x8xf32, #tpu.memory_space<vmem>>, vector<1x8x8xf32>
    %400 = vector.shape_cast %399 : vector<1x8x8xf32> to vector<8x8xf32>
    %cst_311 = arith.constant dense<0.000000e+00> : vector<8x1152xf32>
    %401 = tpu.matmul %400, %398, %cst_311 {dimension_numbers = #tpu.dot_dimension_numbers<[1], [0], [0], [1], [0, 0, 1, 1], [], []>} : vector<8x8xf32>, vector<8x1152xf32>, vector<8x1152xf32> -> vector<8x1152xf32>
    %402 = arith.addf %397, %401 : vector<8x1152xf32>
    %c0_312 = arith.constant 0 : index
    %c153_313 = arith.constant 153 : index
    %403 = vector.load %arg18[%c0_312, %c153_313] : memref<8x1408xf32, #tpu.memory_space<vmem>>, vector<8x1152xf32>
    %c8_314 = arith.constant 8 : index
    %c0_315 = arith.constant 0 : index
    %c0_316 = arith.constant 0 : index
    %404 = vector.load %arg14[%c8_314, %c0_315, %c0_316] : memref<9x8x8xf32, #tpu.memory_space<vmem>>, vector<1x8x8xf32>
    %405 = vector.shape_cast %404 : vector<1x8x8xf32> to vector<8x8xf32>
    %cst_317 = arith.constant dense<0.000000e+00> : vector<8x1152xf32>
    %406 = tpu.matmul %405, %403, %cst_317 {dimension_numbers = #tpu.dot_dimension_numbers<[1], [0], [0], [1], [0, 0, 1, 1], [], []>} : vector<8x8xf32>, vector<8x1152xf32>, vector<8x1152xf32> -> vector<8x1152xf32>
    %407 = arith.addf %402, %406 : vector<8x1152xf32>
    %408 = arith.mulf %407, %9 : vector<8x1152xf32>
    %cst_318 = arith.constant dense<0.000000e+00> : vector<8xf32>
    %409 = vector.multi_reduction <add>, %408, %cst_318 [1] : vector<8x1152xf32> to vector<8xf32>
    %410 = vector.shape_cast %409 : vector<8xf32> to vector<8x1xf32>
    %411 = arith.mulf %408, %408 : vector<8x1152xf32>
    %cst_319 = arith.constant dense<0.000000e+00> : vector<8xf32>
    %412 = vector.multi_reduction <add>, %411, %cst_319 [1] : vector<8x1152xf32> to vector<8xf32>
    %413 = vector.shape_cast %412 : vector<8xf32> to vector<8x1xf32>
    %cst_320 = arith.constant 0.001953125 : f32
    %414 = vector.broadcast %cst_320 : f32 to vector<8x1xf32>
    %415 = arith.mulf %410, %414 : vector<8x1xf32>
    %cst_321 = arith.constant 0.001953125 : f32
    %416 = vector.broadcast %cst_321 : f32 to vector<8x1xf32>
    %417 = arith.mulf %413, %416 : vector<8x1xf32>
    %418 = arith.mulf %415, %415 : vector<8x1xf32>
    %419 = arith.subf %417, %418 : vector<8x1xf32>
    %cst_322 = arith.constant 0.000000e+00 : f32
    %420 = vector.broadcast %cst_322 : f32 to vector<8x1xf32>
    %421 = arith.maximumf %419, %420 : vector<8x1xf32>
    %cst_323 = arith.constant 9.99999974E-6 : f32
    %422 = vector.broadcast %cst_323 : f32 to vector<8x1xf32>
    %423 = arith.addf %421, %422 : vector<8x1xf32>
    %424 = math.rsqrt %423 : vector<8x1xf32>
    %c0_324 = arith.constant 0 : index
    %c0_325 = arith.constant 0 : index
    %425 = vector.load %arg15[%c0_324, %c0_325] : memref<8x2xf32, #tpu.memory_space<vmem>>, vector<8x1xf32>
    %c0_326 = arith.constant 0 : index
    %c1_327 = arith.constant 1 : index
    %426 = vector.load %arg15[%c0_326, %c1_327] : memref<8x2xf32, #tpu.memory_space<vmem>>, vector<8x1xf32>
    %c0_328 = arith.constant 0 : index
    %427 = memref.load %arg16[%c0_328] : memref<2xf32, #tpu.memory_space<smem>>
    %c1_329 = arith.constant 1 : index
    %428 = memref.load %arg16[%c1_329] : memref<2xf32, #tpu.memory_space<smem>>
    %429 = vector.broadcast %428 : f32 to vector<8x1xf32>
    %430 = arith.mulf %429, %425 : vector<8x1xf32>
    %431 = arith.mulf %430, %424 : vector<8x1xf32>
    %432 = vector.broadcast %427 : f32 to vector<8x1xf32>
    %433 = arith.addf %432, %431 : vector<8x1xf32>
    %434 = arith.mulf %415, %425 : vector<8x1xf32>
    %435 = arith.mulf %434, %424 : vector<8x1xf32>
    %436 = arith.subf %426, %435 : vector<8x1xf32>
    %437 = vector.broadcast %428 : f32 to vector<8x1xf32>
    %438 = arith.mulf %437, %436 : vector<8x1xf32>
    %439 = vector.broadcast %433 : vector<8x1xf32> to vector<8x1152xf32>
    %440 = arith.mulf %439, %408 : vector<8x1152xf32>
    %441 = vector.broadcast %438 : vector<8x1xf32> to vector<8x1152xf32>
    %442 = arith.addf %440, %441 : vector<8x1152xf32>
    %cst_330 = arith.constant 0.000000e+00 : f32
    %443 = vector.broadcast %cst_330 : f32 to vector<8x1152xf32>
    %444 = arith.cmpf oge, %442, %443 : vector<8x1152xf32>
    %cst_331 = arith.constant 2.000000e-01 : f32
    %445 = vector.broadcast %cst_331 : f32 to vector<8x1152xf32>
    %446 = arith.mulf %445, %442 : vector<8x1152xf32>
    %447 = arith.select %444, %442, %446 : vector<8x1152xi1>, vector<8x1152xf32>
    %448 = arith.mulf %447, %9 : vector<8x1152xf32>
    %c0_332 = arith.constant 0 : index
    %c0_333 = arith.constant 0 : index
    %449 = vector.load %arg17[%c0_332, %c0_333] : memref<8x1152xf32, #tpu.memory_space<vmem>>, vector<8x1152xf32>
    tpu.vector_store %arg17[%c0_332, %c0_333], %448 {strides = array<i32>} : memref<8x1152xf32, #tpu.memory_space<vmem>>, vector<8x1152xf32>,
    return
  }
}

</mosaic_0001>

<bundles_post_ra>
// kernel: tpu_custom_call.1
= control target key start
LH: loop header
LB: loop body
LE: loop exit
PB: predicated region body
PF: predicated region fallthrough
CT: control target
= control target key end

     0   :  { %s22753_s0 = inlined_call_operand.vmem [shape: f32[8,1152], index: 0, kind: input, shape index: {}]   ;;  %s22754_s1 = inlined_call_operand.vmem [shape: f32[1,1152], index: 1, kind: input, shape index: {}]   ;;  %s22755_s2 = inlined_call_operand.vmem [shape: f32[9,8,8], index: 2, kind: input, shape index: {}]   ;;  %s22756_s3 = inlined_call_operand.vmem [shape: f32[8,2], index: 3, kind: input, shape index: {}]   ;;  %s22757_s4 = inlined_call_operand.vmem [shape: f32[2], index: 4, kind: input, shape index: {}]   ;;  %s22758_s5 = inlined_call_operand.vmem [shape: f32[9,8,8], index: 5, kind: input, shape index: {}]   ;;  %s22759_s6 = inlined_call_operand.vmem [shape: f32[8,2], index: 6, kind: input, shape index: {}]   ;;  %s22760_s7 = inlined_call_operand.vmem [shape: f32[2], index: 7, kind: input, shape index: {}]   ;;  %s22761_s8 = inlined_call_operand.vmem [shape: f32[9,8,8], index: 8, kind: input, shape index: {}]   ;;  %s22762_s9 = inlined_call_operand.vmem [shape: f32[8,2], index: 9, kind: input, shape index: {}]   ;;  %s22763_s10 = inlined_call_operand.vmem [shape: f32[2], index: 10, kind: input, shape index: {}]   ;;  %s22764_s11 = inlined_call_operand.vmem [shape: f32[9,8,8], index: 11, kind: input, shape index: {}]   ;;  %s22765_s12 = inlined_call_operand.vmem [shape: f32[8,2], index: 12, kind: input, shape index: {}]   ;;  %s22766_s13 = inlined_call_operand.vmem [shape: f32[2], index: 13, kind: input, shape index: {}]   ;;  %s22767_s14 = inlined_call_operand.vmem [shape: f32[9,8,8], index: 14, kind: input, shape index: {}]   ;;  %s22768_s15 = inlined_call_operand.vmem [shape: f32[8,2], index: 15, kind: input, shape index: {}]   ;;  %s22769_s16 = inlined_call_operand.vmem [shape: f32[2], index: 16, kind: input, shape index: {}]   ;;  %s22770_s17 = inlined_call_operand.hbm [shape: f32[8,1152], index: 17, kind: output, shape index: {}]  }
   0x1   :  { %22773 = sst [smem:[#allocation18_spill]] %s22753_s0 }
   0x2   :  { %22774 = sst [smem:[#allocation19_spill]] %s22754_s1 }
   0x3   :  { %22 = vsyncpa [#allocation6], 0 }
   0x4   :  { %23 = vsyncpa [#allocation8], 0 }
   0x5   :  { %24 = vsyncpa [#allocation11], 0  ;;  %s54_s26 = sshll.u32 %s22760_s7, 4  ;;  %s55_s26 = int_to_ptr.vmem [resolvable:$true] %s54_s26 }
   0x6   :  { %25 = vsyncpa [#allocation5], 0  ;;  %s82_s29 = sshll.u32 %s22766_s13, 4  ;;  %s20122_s0 = scalar_lea.vmem %s55_s26, 16  ;;  %s83_s29 = int_to_ptr.vmem [resolvable:$true] %s82_s29 }
   0x7   :  { %p20123_p0 = scmp.ne.s32.totalorder %s55_s26, %s20122_s0  ;;  %p20127_p1 = scmp.lt.s32.totalorder %s55_s26, %s55_s26 }
   0x8   :  { %p20128_p2 = scmp.lt.s32.totalorder %s20122_s0, %s20122_s0 }
   0xa   :  { %p20129_p3 = por %p20128_p2, %p20127_p1 }
   0xc   :  { %p20130_p4 = pnand %p20129_p3, %p20123_p0 }
   0xe   :  { %20133 = shalt.err (!%p20130_p4)
}
   0xf   :  { %s20212_s30 = smov [#allocation7]   ;;  %s20134_s18 = scalar_lea.vmem %s83_s29, 16 }
  0x10   :  { %57 = dma.vmem_to_smem %s55_s26, 16, %s20212_s30, [#allocation8]  }
  0x11   :  { %p20135_p5 = scmp.ne.s32.totalorder %s83_s29, %s20134_s18  ;;  %p20139_p6 = scmp.lt.s32.totalorder %s83_s29, %s83_s29 }
  0x12   :  { %p20140_p7 = scmp.lt.s32.totalorder %s20134_s18, %s20134_s18 }
  0x14   :  { %p20141_p8 = por %p20140_p7, %p20139_p6 }
  0x16   :  { %p20142_p9 = pnand %p20141_p8, %p20135_p5 }
  0x18   :  { %20145 = shalt.err (!%p20142_p9)
}
  0x19   :  { %s20213_s7 = smov [#allocation10]   ;;  %s40_s1 = sshll.u32 %s22757_s4, 4  ;;  %s41_s1 = int_to_ptr.vmem [resolvable:$true] %s40_s1 }
  0x1a   :  { %85 = dma.vmem_to_smem %s83_s29, 16, %s20213_s7, [#allocation11]  }
  0x1b   :  { %s68_s22 = sshll.u32 %s22763_s10, 4  ;;  %s20146_s23 = scalar_lea.vmem %s41_s1, 16  ;;  %s69_s22 = int_to_ptr.vmem [resolvable:$true] %s68_s22 }
  0x1c   :  { %p20147_p10 = scmp.ne.s32.totalorder %s41_s1, %s20146_s23  ;;  %p20151_p11 = scmp.lt.s32.totalorder %s41_s1, %s41_s1 }
  0x1d   :  { %p20152_p12 = scmp.lt.s32.totalorder %s20146_s23, %s20146_s23 }
  0x1f   :  { %p20153_p13 = por %p20152_p12, %p20151_p11 }
  0x21   :  { %p20154_p0 = pnand %p20153_p13, %p20147_p10 }
  0x23   :  { %20157 = shalt.err (!%p20154_p0)
}
  0x24   :  { %s20214_s24 = smov [#allocation4]   ;;  %s20158_s25 = scalar_lea.vmem %s69_s22, 16 }
  0x25   :  { %43 = dma.vmem_to_smem %s41_s1, 16, %s20214_s24, [#allocation6]  }
  0x26   :  { %p20159_p1 = scmp.ne.s32.totalorder %s69_s22, %s20158_s25  ;;  %p20163_p2 = scmp.lt.s32.totalorder %s69_s22, %s69_s22 }
  0x27   :  { %p20164_p3 = scmp.lt.s32.totalorder %s20158_s25, %s20158_s25 }
  0x29   :  { %p20165_p4 = por %p20164_p3, %p20163_p2 }
  0x2b   :  { %p20166_p5 = pnand %p20165_p4, %p20159_p1 }
  0x2d   :  { %20169 = shalt.err (!%p20166_p5)
}
  0x2e   :  { %s20215_s4 = smov [#allocation9]   ;;  %s96_s27 = sshll.u32 %s22769_s16, 4  ;;  %s97_s27 = int_to_ptr.vmem [resolvable:$true] %s96_s27 }
  0x2f   :  { %71 = dma.vmem_to_smem %s69_s22, 16, %s20215_s4, [#allocation8]  }
  0x30   :  { %s20170_s28 = scalar_lea.vmem %s97_s27, 16  ;;  %p20175_p7 = scmp.lt.s32.totalorder %s97_s27, %s97_s27 }
  0x31   :  { %p20171_p6 = scmp.ne.s32.totalorder %s97_s27, %s20170_s28  ;;  %p20176_p8 = scmp.lt.s32.totalorder %s20170_s28, %s20170_s28 }
  0x33   :  { %p20177_p9 = por %p20176_p8, %p20175_p7 }
  0x35   :  { %p20178_p10 = pnand %p20177_p9, %p20171_p6 }
  0x37   :  { %20181 = shalt.err (!%p20178_p10)
}
  0x38   :  { %s20216_s29 = smov [#allocation12]  }
  0x39   :  { %99 = dma.vmem_to_smem %s97_s27, 16, %s20216_s29, [#allocation11]  }
  0x3a   :  { %20204 = dma.done.wait [#allocation6], 16  }
  0x3b   :  { %20205 = vsyncadd [#allocation6], 4294967280 }
  0x3c   :  { %20206 = dma.done.wait [#allocation8], 32  }
  0x3d   :  { %20207 = vsyncadd [#allocation8], 4294967264 }
  0x3e   :  { %20208 = dma.done.wait [#allocation11], 32  }
  0x3f   :  { %20209 = vsyncadd [#allocation11], 4294967264 }
  0x40   :  { %115 = sfence }
  0x41   :  { %s22775_s16 = sld [smem:[#allocation18_spill]]  ;;  %s20217_s13 = smov 25   ;;  %v20218_v4 = vmov 0.0   ;;  %vm627_vm0 = vcmask 203776   ;;  %v20527_v15 = vld [vmem:[%s22755_s2] sm:$0xff]  ;;  %vm249_vm1 = vcmask 64512  }
  0x42   :  { %855 = vmatprep.mubr.f32.mxu0 %v20218_v4  ;;  %317 = vmatprep.mubr.f32.mxu1 %v20218_v4  ;;  %s20219_s22 = smov 24   ;;  %s20220_s27 = smov 23   ;;  %vm230_vm2 = vcmask 195584   ;;  %vm20225_vm3 = vmmov 0   ;;  %v20553_v24 = vld [vmem:[%s22755_s2 + $0x8] sm:$0xff]  ;;  %vm1025_vm4 = vcmask 187392  }
  0x43   :  { %s20221_s18 = smov 1   ;;  %s20223_s7 = smov 105   ;;  %v20582_v34 = vld [vmem:[%s22755_s2 + $0x10] sm:$0xff]  ;;  %vm1432_vm5 = vcmask 7168   ;;  %v20650_v56 = vld [vmem:[%s22755_s2 + $0x18] sm:$0xff]  ;;  %vm2227_vm6 = vcmask 1039360  }
  0x44   :  { %s20224_s19 = smov 104   ;;  %s20226_s24 = smov 103   ;;  %vm2634_vm7 = vcmask 859136   ;;  %vm3041_vm8 = vcmask 850944   ;;  %vm3448_vm9 = vcmask 842752  }
  0x45   :  { %s22776_s26 = sld [smem:[#allocation19_spill]]  ;;  %s19138_s0 = sld [smem:[#allocation4 + $0x1]] }
  0x46   :  { %s3879_s30 = sld [smem:[#allocation4]]  ;;  %s19192_s10 = sld [smem:[#allocation7 + $0x1]] }
  0x47   :  { %v20354_v0 = vld [vmem:[%s22775_s16 + $0x20] sm:$0xff]  ;;  %v20359_v1 = vld [vmem:[%s22775_s16 + $0x18] sm:$0xff]  ;;  %v20368_v2 = vld [vmem:[%s22775_s16 + $0x28] sm:$0xff]  ;;  %s7650_s28 = sld [smem:[#allocation7]]  ;;  %s20231_s1 = smov 46  }
  0x48   :  { %617 = vrot.lane.b32.xlu0 %v20354_v0, %s20217_s13  ;;  %615 = vrot.lane.b32.xlu1 %v20359_v1, %s20217_s13  ;;  %v20373_v3 = vld [vmem:[%s22775_s16] sm:$0xff]  ;;  %v20384_v5 = vld [vmem:[%s22775_s16 + $0x8] sm:$0xff]  ;;  %s20232_s20 = smov 2   ;;  %s20234_s21 = smov 82  }
  0x49   :  { %v20389_v6 = vld [vmem:[%s22775_s16 + $0x38] sm:$0xff]  ;;  %v20398_v7 = vld [vmem:[%s22775_s16 + $0x40] sm:$0xff]  ;;  %v20411_v8 = vld [vmem:[%s22775_s16 + $0x10] sm:$0xff]  ;;  %s20235_s23 = smov 80   ;;  %s11429_s29 = sld [smem:[#allocation9]] }
  0x4a   :  { %v20432_v9 = vld [vmem:[%s22775_s16 + $0x30] sm:$0xff]  ;;  %s20222_s16 = smov 127   ;;  %s19354_s4 = sld [smem:[#allocation12 + $0x1]] }
  0x4c   :  { %619 = vrot.lane.b32.xlu0 %v20368_v2, %s20217_s13  ;;  %212 = vrot.lane.b32.xlu1 %v20373_v3, %s20219_s22 }
  0x50   :  { %214 = vrot.lane.b32.xlu0 %v20384_v5, %s20219_s22  ;;  %623 = vrot.lane.b32.xlu1 %v20389_v6, %s20217_s13 }
  0x54   :  { %625 = vrot.lane.b32.xlu0 %v20398_v7, %s20217_s13  ;;  %210 = vrot.lane.b32.xlu1 %v20218_v4, %s20219_s22 }
  0x58   :  { %1007 = vrot.lane.b32.xlu0 %v20373_v3, %s20220_s27  ;;  %1009 = vrot.lane.b32.xlu1 %v20384_v5, %s20220_s27 }
  0x5c   :  { %216 = vrot.lane.b32.xlu0 %v20411_v8, %s20219_s22  ;;  %218 = vrot.lane.b32.xlu1 %v20359_v1, %s20219_s22 }
  0x60   :  { %1005 = vrot.lane.b32.xlu0 %v20218_v4, %s20220_s27  ;;  %1015 = vrot.lane.b32.xlu1 %v20354_v0, %s20220_s27 }
  0x64   :  { %1017 = vrot.lane.b32.xlu0 %v20368_v2, %s20220_s27  ;;  %220 = vrot.lane.b32.xlu1 %v20354_v0, %s20219_s22 }
  0x68   :  { %222 = vrot.lane.b32.xlu0 %v20368_v2, %s20219_s22  ;;  %1013 = vrot.lane.b32.xlu1 %v20359_v1, %s20220_s27 }
  0x6c   :  { %224 = vrot.lane.b32.xlu0 %v20432_v9, %s20219_s22  ;;  %226 = vrot.lane.b32.xlu1 %v20389_v6, %s20219_s22 }
  0x70   :  { %1021 = vrot.lane.b32.xlu0 %v20389_v6, %s20220_s27  ;;  %1023 = vrot.lane.b32.xlu1 %v20398_v7, %s20220_s27 }
  0x74   :  { %1414 = vrot.lane.b32.xlu0 %v20373_v3, %s20221_s18  ;;  %1416 = vrot.lane.b32.xlu1 %v20384_v5, %s20221_s18 }
  0x78   :  { %1412 = vrot.lane.b32.xlu0 %v20218_v4, %s20221_s18  ;;  %228 = vrot.lane.b32.xlu1 %v20398_v7, %s20219_s22 }
  0x7c   :  { %1422 = vrot.lane.b32.xlu0 %v20354_v0, %s20221_s18  ;;  %1424 = vrot.lane.b32.xlu1 %v20368_v2, %s20221_s18 }
  0x80   :  { %609 = vrot.lane.b32.xlu0 %v20373_v3, %s20217_s13  ;;  %611 = vrot.lane.b32.xlu1 %v20384_v5, %s20217_s13 }
  0x84   :  { %1420 = vrot.lane.b32.xlu0 %v20359_v1, %s20221_s18  ;;  %607 = vrot.lane.b32.xlu1 %v20218_v4, %s20217_s13 }
  0x88   :  { %613 = vrot.lane.b32.xlu0 %v20411_v8, %s20217_s13  ;;  %1428 = vrot.lane.b32.xlu1 %v20389_v6, %s20221_s18 }
  0x8c   :  { %1430 = vrot.lane.b32.xlu0 %v20398_v7, %s20221_s18  ;;  %621 = vrot.lane.b32.xlu1 %v20432_v9, %s20217_s13 }
  0x90   :  { %1011 = vrot.lane.b32.xlu0 %v20411_v8, %s20220_s27  ;;  %1019 = vrot.lane.b32.xlu1 %v20432_v9, %s20220_s27 }
  0x94   :  { %2209 = vrot.lane.b32.xlu0 %v20384_v5, %s20222_s16  ;;  %2211 = vrot.lane.b32.xlu1 %v20411_v8, %s20222_s16 }
  0x98   :  { %1418 = vrot.lane.b32.xlu0 %v20411_v8, %s20221_s18  ;;  %2207 = vrot.lane.b32.xlu1 %v20373_v3, %s20222_s16 }
  0x9c   :  { %2217 = vrot.lane.b32.xlu0 %v20368_v2, %s20222_s16  ;;  %2219 = vrot.lane.b32.xlu1 %v20432_v9, %s20222_s16 }
  0xa0   :  { %1426 = vrot.lane.b32.xlu0 %v20432_v9, %s20221_s18  ;;  %2215 = vrot.lane.b32.xlu1 %v20354_v0, %s20222_s16 }
  0xa4   :  { %2223 = vrot.lane.b32.xlu0 %v20398_v7, %s20222_s16  ;;  %2225 = vrot.lane.b32.xlu1 %v20218_v4, %s20222_s16 }
  0xa8   :  { %2616 = vrot.lane.b32.xlu0 %v20384_v5, %s20223_s7  ;;  %2618 = vrot.lane.b32.xlu1 %v20411_v8, %s20223_s7 }
  0xac   :  { %2614 = vrot.lane.b32.xlu0 %v20373_v3, %s20223_s7  ;;  %2624 = vrot.lane.b32.xlu1 %v20368_v2, %s20223_s7 }
  0xb0   :  { %2626 = vrot.lane.b32.xlu0 %v20432_v9, %s20223_s7  ;;  %2213 = vrot.lane.b32.xlu1 %v20359_v1, %s20222_s16 }
  0xb4   :  { %2622 = vrot.lane.b32.xlu0 %v20354_v0, %s20223_s7  ;;  %2221 = vrot.lane.b32.xlu1 %v20389_v6, %s20222_s16 }
  0xb8   :  { %2630 = vrot.lane.b32.xlu0 %v20398_v7, %s20223_s7  ;;  %2632 = vrot.lane.b32.xlu1 %v20218_v4, %s20223_s7 }
  0xba   :  { %v618_v10 = vpop.permute.xlu0 %617  ;;  %v20514_v11 = vpop.permute.xlu1 %615 }
  0xbb   :  { %v632_v16 = vsel %vm627_vm0, %v20514_v11, %v618_v10 }
  0xbc   :  { %3023 = vrot.lane.b32.xlu0 %v20384_v5, %s20224_s19  ;;  %3025 = vrot.lane.b32.xlu1 %v20411_v8, %s20224_s19 }
  0xbe   :  { %v20520_v12 = vpop.permute.xlu0 %619  ;;  %v213_v13 = vpop.permute.xlu1 %212 }
  0xbf   :  { %v633_v14 = vsel %vm627_vm0, %v618_v10, %v20520_v12 }
  0xc0   :  { %791 = vmatprep.subr.mxu0 %v633_v14  ;;  %2620 = vrot.lane.b32.xlu0 %v20359_v1, %s20223_s7 }
  0xc1   :  { %3021 = vrot.lane.b32.xlu1 %v20373_v3, %s20224_s19  ;;  %792 = vmatpush1.msra.mxu0 %v632_v16 }
  0xc2   :  { %v215_v17 = vpop.permute.xlu0 %214  ;;  %v20535_v18 = vpop.permute.xlu1 %623  ;;  %19450 = vmatprep.subr.mxu0 %v20218_v4  ;;  %19093 = vmatmul.mubr.msk.f32.vlgmr.msra.gmra.mrb[0].mxu0 %vm249_vm1, %v20527_v15 }
  0xc3   :  { %v232_v19 = vsel %vm230_vm2, %v213_v13, %v215_v17  ;;  %19452 = vmatprep.mubr.msk.f32.mxu0 %vm20225_vm3, %v20218_v4 }
  0xc4   :  { %3031 = vrot.lane.b32.xlu0 %v20368_v2, %s20224_s19  ;;  %253 = vmatprep.subr.mxu1 %v232_v19 }
  0xc5   :  { %3033 = vrot.lane.b32.xlu1 %v20432_v9, %s20224_s19 }
  0xc6   :  { %v626_v20 = vpop.permute.xlu0 %625  ;;  %v211_v21 = vpop.permute.xlu1 %210 }
  0xc7   :  { %v636_v22 = vsel %vm627_vm0, %v20535_v18, %v626_v20  ;;  %v231_v23 = vsel %vm230_vm2, %v211_v21, %v213_v13 }
  0xc8   :  { %2628 = vrot.lane.b32.xlu0 %v20389_v6, %s20223_s7  ;;  %254 = vmatpush1.msra.mxu1 %v231_v23 }
  0xc9   :  { %3029 = vrot.lane.b32.xlu1 %v20354_v0, %s20224_s19  ;;  %19451 = vmatpush3.msra.mxu0 %v636_v22 }
  0xca   :  { %v1008_v25 = vpop.permute.xlu0 %1007  ;;  %v20559_v26 = vpop.permute.xlu1 %1009  ;;  %19086 = vmatmul.mubr.msk.f32.vlgmr.msra.gmra.mrb[0].mxu1 %vm249_vm1, %v20553_v24  ;;  %19453 = vmatmul.mubr.msk.f32.vlgmr.msra.gmra.mrb[2].mxu0 %vm249_vm1, %v20527_v15 }
  0xcb   :  { %v1027_v27 = vsel %vm1025_vm4, %v1008_v25, %v20559_v26  ;;  %1111 = vmatprep.mubr.f32.mxu0 %v20218_v4  ;;  %388 = vmatprep.mubr.f32.mxu1 %v20218_v4 }
  0xcc   :  { %3027 = vrot.lane.b32.xlu0 %v20359_v1, %s20224_s19  ;;  %1047 = vmatprep.subr.mxu0 %v1027_v27 }
  0xcd   :  { %3037 = vrot.lane.b32.xlu1 %v20398_v7, %s20224_s19 }
  0xce   :  { %v217_v28 = vpop.permute.xlu0 %216  ;;  %v219_v29 = vpop.permute.xlu1 %218 }
  0xcf   :  { %v234_v30 = vsel %vm230_vm2, %v217_v28, %v219_v29  ;;  %v233_v31 = vsel %vm230_vm2, %v215_v17, %v217_v28 }
  0xd0   :  { %3039 = vrot.lane.b32.xlu0 %v20218_v4, %s20224_s19  ;;  %324 = vmatprep.subr.mxu1 %v234_v30 }
  0xd1   :  { %3430 = vrot.lane.b32.xlu1 %v20384_v5, %s20226_s24  ;;  %325 = vmatpush1.msra.mxu1 %v233_v31 }
  0xd2   :  { %v1006_v32 = vpop.permute.xlu0 %1005  ;;  %v1016_v33 = vpop.permute.xlu1 %1015  ;;  %19087 = vmatmul.mubr.msk.f32.vlgmr.msra.gmra.mrb[2].mxu1 %vm249_vm1, %v20553_v24 }
  0xd3   :  { %v1026_v35 = vsel %vm1025_vm4, %v1006_v32, %v1008_v25  ;;  %459 = vmatprep.mubr.f32.mxu1 %v20218_v4 }
  0xd4   :  { %3432 = vrot.lane.b32.xlu0 %v20411_v8, %s20226_s24  ;;  %1048 = vmatpush1.msra.mxu0 %v1026_v35 }
  0xd5   :  { %3035 = vrot.lane.b32.xlu1 %v20389_v6, %s20224_s19  ;;  %19097 = vmatmul.mubr.msk.f32.vlgmr.msra.gmra.mrb[4].mxu0 %vm249_vm1, %v20582_v34 }
  0xd6   :  { %v20594_v36 = vpop.permute.xlu0 %1017  ;;  %v221_v37 = vpop.permute.xlu1 %220  ;;  %1253 = vmatprep.mubr.f32.mxu0 %v20218_v4 }
  0xd7   :  { %v1031_v38 = vsel %vm1025_vm4, %v1016_v33, %v20594_v36  ;;  %v235_v43 = vsel %vm230_vm2, %v219_v29, %v221_v37 }
  0xd8   :  { %3428 = vrot.lane.b32.xlu0 %v20373_v3, %s20226_s24  ;;  %1189 = vmatprep.subr.mxu0 %v1031_v38 }
  0xd9   :  { %3434 = vrot.lane.b32.xlu1 %v20359_v1, %s20226_s24 }
  0xda   :  { %v223_v39 = vpop.permute.xlu0 %222  ;;  %v20603_v40 = vpop.permute.xlu1 %1013 }
  0xdb   :  { %v236_v41 = vsel %vm230_vm2, %v221_v37, %v223_v39  ;;  %v1030_v42 = vsel %vm1025_vm4, %v20603_v40, %v1016_v33  ;;  %v20742_v37 = vld [vmem:[%s22755_s2 + $0x28] sm:$0xff] }
  0xdc   :  { %3436 = vrot.lane.b32.xlu0 %v20354_v0, %s20226_s24  ;;  %395 = vmatprep.subr.mxu1 %v236_v41 }
  0xdd   :  { %3438 = vrot.lane.b32.xlu1 %v20368_v2, %s20226_s24  ;;  %1190 = vmatpush1.msra.mxu0 %v1030_v42 }
  0xde   :  { %396 = vmatpush1.msra.mxu1 %v235_v43  ;;  %v225_v44 = vpop.permute.xlu0 %224  ;;  %v227_v45 = vpop.permute.xlu1 %226  ;;  %19455 = vmatprep.subr.mxu0 %v20218_v4 }
  0xdf   :  { %v238_v46 = vsel %vm230_vm2, %v225_v44, %v227_v45  ;;  %19088 = vmatmul.mubr.msk.f32.vlgmr.msra.gmra.mrb[4].mxu1 %vm249_vm1, %v20553_v24  ;;  %v237_v47 = vsel %vm230_vm2, %v223_v39, %v225_v44  ;;  %19099 = vmatmul.mubr.msk.f32.vlgmr.msra.gmra.mrb[0].mxu0 %vm249_vm1, %v20582_v34 }
  0xe0   :  { %3440 = vrot.lane.b32.xlu0 %v20432_v9, %s20226_s24  ;;  %466 = vmatprep.subr.mxu1 %v238_v46 }
  0xe1   :  { %3442 = vrot.lane.b32.xlu1 %v20389_v6, %s20226_s24  ;;  %467 = vmatpush1.msra.mxu1 %v237_v47 }
  0xe2   :  { %v20624_v48 = vpop.permute.xlu0 %1021  ;;  %v1024_v49 = vpop.permute.xlu1 %1023  ;;  %530 = vmatprep.mubr.f32.mxu1 %v20218_v4  ;;  %19445 = vmatprep.subr.mxu1 %v20218_v4 }
  0xe3   :  { %v1034_v50 = vsel %vm1025_vm4, %v20624_v48, %v1024_v49  ;;  %19457 = vmatprep.mubr.msk.f32.mxu0 %vm20225_vm3, %v20218_v4  ;;  %19089 = vmatmul.mubr.msk.f32.vlgmr.msra.gmra.mrb[6].mxu1 %vm249_vm1, %v20553_v24 }
  0xe4   :  { %3444 = vrot.lane.b32.xlu0 %v20398_v7, %s20226_s24  ;;  %19456 = vmatpush3.msra.mxu0 %v1034_v50 }
  0xe5   :  { %3446 = vrot.lane.b32.xlu1 %v20218_v4, %s20226_s24  ;;  %19458 = vmatmul.mubr.msk.f32.vlgmr.msra.gmra.mrb[2].mxu0 %vm249_vm1, %v20582_v34 }
  0xe6   :  { %v1415_v51 = vpop.permute.xlu0 %1414  ;;  %v20640_v52 = vpop.permute.xlu1 %1416  ;;  %19447 = vmatprep.mubr.msk.f32.mxu1 %vm20225_vm3, %v20218_v4  ;;  %1518 = vmatprep.mubr.f32.mxu0 %v20218_v4 }
  0xe7   :  { %v1434_v53 = vsel %vm1432_vm5, %v1415_v51, %v20640_v52 }
  0xe8   :  { %1454 = vmatprep.subr.mxu0 %v1434_v53 }
  0xea   :  { %v1413_v54 = vpop.permute.xlu0 %1412  ;;  %v229_v55 = vpop.permute.xlu1 %228 }
  0xeb   :  { %v1433_v57 = vsel %vm1432_vm5, %v1413_v54, %v1415_v51  ;;  %v239_v58 = vsel %vm230_vm2, %v227_v45, %v229_v55 }
  0xec   :  { %19446 = vmatpush3.msra.mxu1 %v239_v58  ;;  %1455 = vmatpush1.msra.mxu0 %v1433_v57 }
  0xed   :  { %19448 = vmatmul.mubr.msk.f32.vlgmr.msra.gmra.mrb[8].mxu1 %vm249_vm1, %v20553_v24  ;;  %19103 = vmatmul.mubr.msk.f32.vlgmr.msra.gmra.mrb[4].mxu0 %vm249_vm1, %v20650_v56 }
  0xee   :  { %v1423_v59 = vpop.permute.xlu0 %1422  ;;  %v20658_v60 = vpop.permute.xlu1 %1424  ;;  %713 = vmatprep.mubr.f32.mxu1 %v20218_v4  ;;  %1660 = vmatprep.mubr.f32.mxu0 %v20218_v4 }
  0xef   :  { %v1438_v61 = vsel %vm1432_vm5, %v1423_v59, %v20658_v60 }
  0xf0   :  { %1596 = vmatprep.subr.mxu0 %v1438_v61 }
  0xf2   :  { %v610_v62 = vpop.permute.xlu0 %609  ;;  %v612_v63 = vpop.permute.xlu1 %611 }
  0xf3   :  { %v629_v10 = vsel %vm627_vm0, %v610_v62, %v612_v63 }
  0xf4   :  { %649 = vmatprep.subr.mxu1 %v629_v10 }
  0xf6   :  { %v1421_v13 = vpop.permute.xlu0 %1420  ;;  %v608_v14 = vpop.permute.xlu1 %607 }
  0xf7   :  { %v628_v16 = vsel %vm627_vm0, %v608_v14, %v610_v62  ;;  %v1437_v17 = vsel %vm1432_vm5, %v1421_v13, %v1423_v59 }
  0xf8   :  { %650 = vmatpush1.msra.mxu1 %v628_v16  ;;  %1597 = vmatpush1.msra.mxu0 %v1437_v17 }
  0xf9   :  { %19091 = vmatmul.mubr.msk.f32.vlgmr.msra.gmra.mrb[0].mxu1 %vm249_vm1, %v20527_v15  ;;  %19105 = vmatmul.mubr.msk.f32.vlgmr.msra.gmra.mrb[0].mxu0 %vm249_vm1, %v20650_v56 }
  0xfa   :  { %v614_v19 = vpop.permute.xlu0 %613  ;;  %v20671_v20 = vpop.permute.xlu1 %1428  ;;  %784 = vmatprep.mubr.f32.mxu1 %v20218_v4  ;;  %19460 = vmatprep.subr.mxu0 %v20218_v4 }
  0xfb   :  { %v631_v21 = vsel %vm627_vm0, %v614_v19, %v20514_v11  ;;  %v630_v22 = vsel %vm627_vm0, %v612_v63, %v614_v19  ;;  %19462 = vmatprep.mubr.msk.f32.mxu0 %vm20225_vm3, %v20218_v4  ;;  %v19126_v19 = vld [vmem:[%s22755_s2 + $0x38] sm:$0xff] }
  0xfc   :  { %720 = vmatprep.subr.mxu1 %v631_v21 }
  0xfd   :  { %721 = vmatpush1.msra.mxu1 %v630_v22 }
  0xfe   :  { %v1431_v23 = vpop.permute.xlu0 %1430  ;;  %v622_v24 = vpop.permute.xlu1 %621  ;;  %19092 = vmatmul.mubr.msk.f32.vlgmr.msra.gmra.mrb[2].mxu1 %vm249_vm1, %v20527_v15 }
  0xff   :  { %v1441_v25 = vsel %vm1432_vm5, %v20671_v20, %v1431_v23  ;;  %v635_v27 = vsel %vm627_vm0, %v622_v24, %v20535_v18  ;;  %v634_v11 = vsel %vm627_vm0, %v20520_v12, %v622_v24  ;;  %926 = vmatprep.mubr.f32.mxu1 %v20218_v4  ;;  %v20697_v18 = vld [vmem:[%s22755_s2 + $0x20] sm:$0xff] }
 0x100   :  { %862 = vmatprep.subr.mxu1 %v635_v27  ;;  %19461 = vmatpush3.msra.mxu0 %v1441_v25 }
 0x101   :  { %863 = vmatpush1.msra.mxu1 %v634_v11  ;;  %19463 = vmatmul.mubr.msk.f32.vlgmr.msra.gmra.mrb[2].mxu0 %vm249_vm1, %v20650_v56 }
 0x102   :  { %v1012_v28 = vpop.permute.xlu0 %1011  ;;  %v1020_v29 = vpop.permute.xlu1 %1019  ;;  %19094 = vmatmul.mubr.msk.f32.vlgmr.msra.gmra.mrb[6].mxu1 %vm249_vm1, %v20527_v15  ;;  %1822 = vmatprep.subr.mxu0 %v20384_v5 }
 0x103   :  { %v1029_v12 = vsel %vm1025_vm4, %v1012_v28, %v20603_v40  ;;  %1823 = vmatpush1.msra.mxu0 %v20373_v3  ;;  %1886 = vmatprep.mubr.f32.mxu0 %v20218_v4  ;;  %v1028_v30 = vsel %vm1025_vm4, %v20559_v26, %v1012_v28  ;;  %v1033_v5 = vsel %vm1025_vm4, %v1020_v29, %v20624_v48 }
 0x104   :  { %1118 = vmatprep.subr.mxu1 %v1029_v12  ;;  %1182 = vmatprep.mubr.f32.mxu1 %v20218_v4  ;;  %v1032_v26 = vsel %vm1025_vm4, %v20594_v36, %v1020_v29 }
 0x105   :  { %1119 = vmatpush1.msra.mxu1 %v1028_v30  ;;  %19109 = vmatmul.mubr.msk.f32.vlgmr.msra.gmra.mrb[4].mxu0 %vm249_vm1, %v20697_v18 }
 0x106   :  { %v2210_v15 = vpop.permute.xlu0 %2209  ;;  %1260 = vmatprep.subr.mxu1 %v1033_v5  ;;  %1964 = vmatprep.subr.mxu0 %v20368_v2  ;;  %v20711_v3 = vpop.permute.xlu1 %2211 }
 0x107   :  { %19098 = vmatmul.mubr.msk.f32.vlgmr.msra.gmra.mrb[2].mxu1 %vm249_vm1, %v20582_v34  ;;  %1965 = vmatpush1.msra.mxu0 %v20354_v0  ;;  %v2229_v31 = vsel %vm2227_vm6, %v2210_v15, %v20711_v3 }
 0x108   :  { %1261 = vmatpush1.msra.mxu1 %v1032_v26  ;;  %2028 = vmatprep.mubr.f32.mxu0 %v20218_v4 }
 0x109   :  { %19465 = vmatprep.subr.mxu0 %v20218_v4  ;;  %19111 = vmatmul.mubr.msk.f32.vlgmr.msra.gmra.mrb[0].mxu0 %vm249_vm1, %v20697_v18 }
 0x10a   :  { %19466 = vmatpush3.msra.mxu0 %v20398_v7  ;;  %v1419_v2 = vpop.permute.xlu0 %1418  ;;  %v2208_v32 = vpop.permute.xlu1 %2207  ;;  %1324 = vmatprep.mubr.f32.mxu1 %v20218_v4 }
 0x10b   :  { %2249 = vmatprep.subr.mxu0 %v2229_v31  ;;  %v2228_v0 = vsel %vm2227_vm6, %v2208_v32, %v2210_v15  ;;  %v1436_v33 = vsel %vm1432_vm5, %v1419_v2, %v1421_v13  ;;  %19467 = vmatprep.mubr.msk.f32.mxu0 %vm20225_vm3, %v20218_v4  ;;  %v1435_v35 = vsel %vm1432_vm5, %v20640_v52, %v1419_v2 }
 0x10c   :  { %1525 = vmatprep.subr.mxu1 %v1436_v33  ;;  %19100 = vmatmul.mubr.msk.f32.vlgmr.msra.gmra.mrb[6].mxu1 %vm249_vm1, %v20582_v34 }
 0x10d   :  { %1526 = vmatpush1.msra.mxu1 %v1435_v35  ;;  %19468 = vmatmul.mubr.msk.f32.vlgmr.msra.gmra.mrb[2].mxu0 %vm249_vm1, %v20697_v18  ;;  %v19132_v35 = vld [vmem:[%s22755_s2 + $0x40] sm:$0xff] }
 0x10e   :  { %2250 = vmatpush1.msra.mxu0 %v2228_v0  ;;  %v2218_v7 = vpop.permute.xlu0 %2217  ;;  %v20736_v36 = vpop.permute.xlu1 %2219  ;;  %2313 = vmatprep.mubr.f32.mxu0 %v20218_v4 }
 0x10f   :  { %v2233_v38 = vsel %vm2227_vm6, %v2218_v7, %v20736_v36  ;;  %1589 = vmatprep.mubr.f32.mxu1 %v20218_v4 }
 0x110   :  { %2391 = vmatprep.subr.mxu0 %v2233_v38  ;;  %19104 = vmatmul.mubr.msk.f32.vlgmr.msra.gmra.mrb[2].mxu1 %vm249_vm1, %v20650_v56 }
 0x111   :  { %19115 = vmatmul.mubr.msk.f32.vlgmr.msra.gmra.mrb[4].mxu0 %vm249_vm1, %v20742_v37  ;;  %1731 = vmatprep.mubr.f32.mxu1 %v20218_v4 }
 0x112   :  { %v1427_v34 = vpop.permute.xlu0 %1426  ;;  %v2216_v39 = vpop.permute.xlu1 %2215  ;;  %2455 = vmatprep.mubr.f32.mxu0 %v20218_v4 }
 0x113   :  { %v1440_v40 = vsel %vm1432_vm5, %v1427_v34, %v20671_v20  ;;  %v2232_v41 = vsel %vm2227_vm6, %v2216_v39, %v2218_v7  ;;  %v1439_v42 = vsel %vm1432_vm5, %v20658_v60, %v1427_v34 }
 0x114   :  { %1667 = vmatprep.subr.mxu1 %v1440_v40  ;;  %2392 = vmatpush1.msra.mxu0 %v2232_v41 }
 0x115   :  { %1668 = vmatpush1.msra.mxu1 %v1439_v42  ;;  %19470 = vmatprep.subr.mxu0 %v20218_v4 }
 0x116   :  { %v2224_v43 = vpop.permute.xlu0 %2223  ;;  %v2226_v44 = vpop.permute.xlu1 %2225  ;;  %19117 = vmatmul.mubr.msk.f32.vlgmr.msra.gmra.mrb[0].mxu0 %vm249_vm1, %v20742_v37  ;;  %19106 = vmatmul.mubr.msk.f32.vlgmr.msra.gmra.mrb[6].mxu1 %vm249_vm1, %v20650_v56 }
 0x117   :  { %v2236_v45 = vsel %vm2227_vm6, %v2224_v43, %v2226_v44  ;;  %1893 = vmatprep.subr.mxu1 %v20359_v1  ;;  %19472 = vmatprep.mubr.msk.f32.mxu0 %vm20225_vm3, %v20218_v4 }
 0x118   :  { %19471 = vmatpush3.msra.mxu0 %v2236_v45  ;;  %1894 = vmatpush1.msra.mxu1 %v20411_v8 }
 0x119   :  { %1957 = vmatprep.mubr.f32.mxu1 %v20218_v4  ;;  %2035 = vmatprep.subr.mxu1 %v20389_v6  ;;  %v20783_v6 = vld [vmem:[%s22755_s2 + $0x30] sm:$0xff]  ;;  %s19300_s2 = sld [smem:[#allocation10 + $0x1]] }
 0x11a   :  { %v2617_v46 = vpop.permute.xlu0 %2616  ;;  %v2619_v47 = vpop.permute.xlu1 %2618  ;;  %19473 = vmatmul.mubr.msk.f32.vlgmr.msra.gmra.mrb[2].mxu0 %vm249_vm1, %v20742_v37  ;;  %19110 = vmatmul.mubr.msk.f32.vlgmr.msra.gmra.mrb[2].mxu1 %vm249_vm1, %v20697_v18 }
 0x11b   :  { %v2636_v1 = vsel %vm2634_vm7, %v2617_v46, %v2619_v47  ;;  %2036 = vmatpush1.msra.mxu1 %v20432_v9  ;;  %2099 = vmatprep.mubr.f32.mxu1 %v20218_v4 }
 0x11c   :  { %2656 = vmatprep.subr.mxu0 %v2636_v1  ;;  %2720 = vmatprep.mubr.f32.mxu0 %v20218_v4 }
 0x11e   :  { %v2615_v8 = vpop.permute.xlu0 %2614  ;;  %v2625_v48 = vpop.permute.xlu1 %2624  ;;  %19112 = vmatmul.mubr.msk.f32.vlgmr.msra.gmra.mrb[6].mxu1 %vm249_vm1, %v20697_v18 }
 0x11f   :  { %v2635_v49 = vsel %vm2634_vm7, %v2615_v8, %v2617_v46  ;;  %2384 = vmatprep.mubr.f32.mxu1 %v20218_v4 }
 0x120   :  { %2657 = vmatpush1.msra.mxu0 %v2635_v49 }
 0x121   :  { %19121 = vmatmul.mubr.msk.f32.vlgmr.msra.gmra.mrb[4].mxu0 %vm249_vm1, %v20783_v6 }
 0x122   :  { %v2627_v9 = vpop.permute.xlu0 %2626  ;;  %v2214_v50 = vpop.permute.xlu1 %2213  ;;  %2862 = vmatprep.mubr.f32.mxu0 %v20218_v4 }
 0x123   :  { %v2231_v51 = vsel %vm2227_vm6, %v2214_v50, %v2216_v39  ;;  %v2640_v52 = vsel %vm2634_vm7, %v2625_v48, %v2627_v9  ;;  %v2230_v53 = vsel %vm2227_vm6, %v20711_v3, %v2214_v50 }
 0x124   :  { %2320 = vmatprep.subr.mxu1 %v2231_v51  ;;  %2798 = vmatprep.subr.mxu0 %v2640_v52  ;;  %v142_v51 = vlaneseq }
 0x125   :  { %2321 = vmatpush1.msra.mxu1 %v2230_v53 }
 0x126   :  { %v2623_v54 = vpop.permute.xlu0 %2622  ;;  %v2222_v55 = vpop.permute.xlu1 %2221  ;;  %19116 = vmatmul.mubr.msk.f32.vlgmr.msra.gmra.mrb[2].mxu1 %vm249_vm1, %v20742_v37  ;;  %v143_v52 = vshrl.u32 %v142_v51, 7 }
 0x127   :  { %v2235_v56 = vsel %vm2227_vm6, %v2222_v55, %v2224_v43  ;;  %v2639_v57 = vsel %vm2634_vm7, %v2623_v54, %v2625_v48  ;;  %v2234_v58 = vsel %vm2227_vm6, %v20736_v36, %v2222_v55  ;;  %2526 = vmatprep.mubr.f32.mxu1 %v20218_v4 }
 0x128   :  { %2462 = vmatprep.subr.mxu1 %v2235_v56  ;;  %2799 = vmatpush1.msra.mxu0 %v2639_v57  ;;  %v144_v53 = vsub.s32 0, %v143_v52  ;;  %v148_v55 = vsub.s32 1, %v143_v52  ;;  %v152_v56 = vsub.s32 2, %v143_v52 }
 0x129   :  { %2463 = vmatpush1.msra.mxu1 %v2234_v58  ;;  %19475 = vmatprep.subr.mxu0 %v20218_v4  ;;  %v156_v58 = vsub.s32 3, %v143_v52 }
 0x12a   :  { %v2631_v59 = vpop.permute.xlu0 %2630  ;;  %v2633_v60 = vpop.permute.xlu1 %2632  ;;  %19123 = vmatmul.mubr.msk.f32.vlgmr.msra.gmra.mrb[0].mxu0 %vm249_vm1, %v20783_v6  ;;  %19118 = vmatmul.mubr.msk.f32.vlgmr.msra.gmra.mrb[6].mxu1 %vm249_vm1, %v20742_v37 }
 0x12b   :  { %v2643_v61 = vsel %vm2634_vm7, %v2631_v59, %v2633_v60  ;;  %19477 = vmatprep.mubr.msk.f32.mxu0 %vm20225_vm3, %v20218_v4  ;;  %2791 = vmatprep.mubr.f32.mxu1 %v20218_v4 }
 0x12c   :  { %19476 = vmatpush3.msra.mxu0 %v2643_v61 }
 0x12e   :  { %v3024_v62 = vpop.permute.xlu0 %3023  ;;  %v3026_v63 = vpop.permute.xlu1 %3025  ;;  %19478 = vmatmul.mubr.msk.f32.vlgmr.msra.gmra.mrb[2].mxu0 %vm249_vm1, %v20783_v6 }
 0x12f   :  { %v3043_v10 = vsel %vm3041_vm8, %v3024_v62, %v3026_v63  ;;  %3127 = vmatprep.mubr.f32.mxu0 %v20218_v4 }
 0x130   :  { %3063 = vmatprep.subr.mxu0 %v3043_v10 }
 0x132   :  { %v2621_v13 = vpop.permute.xlu0 %2620 }
 0x133   :  { %v3022_v14 = vpop.permute.xlu1 %3021  ;;  %v2638_v16 = vsel %vm2634_vm7, %v2621_v13, %v2623_v54  ;;  %v2637_v17 = vsel %vm2634_vm7, %v2619_v47, %v2621_v13  ;;  %v138_v54 = vld [vmem:[%s22776_s26] sm:$0xff] }
 0x134   :  { %v3042_v20 = vsel %vm3041_vm8, %v3022_v14, %v3024_v62  ;;  %2727 = vmatprep.subr.mxu1 %v2638_v16  ;;  %v20874_v57 = vrot.slane %v138_v54, %v144_v53  ;;  %v20876_v60 = vrot.slane %v138_v54, %v148_v55  ;;  %v20878_v10 = vrot.slane %v138_v54, %v152_v56 }
 0x135   :  { %3064 = vmatpush1.msra.mxu0 %v3042_v20  ;;  %2728 = vmatpush1.msra.mxu1 %v2637_v17  ;;  %v20883_v14 = vrot.slane %v138_v54, %v156_v58  ;;  %v160_v16 = vsub.s32 4, %v143_v52  ;;  %v20227_v58 = vmov 0  }
 0x136   :  { %v3032_v21 = vpop.permute.xlu0 %3031  ;;  %19127 = vmatmul.mubr.msk.f32.vlgmr.msra.gmra.mrb[4].mxu0 %vm249_vm1, %v19126_v19  ;;  %19122 = vmatmul.mubr.msk.f32.vlgmr.msra.gmra.mrb[2].mxu1 %vm249_vm1, %v20783_v6 }
 0x137   :  { %v3034_v22 = vpop.permute.xlu1 %3033  ;;  %2933 = vmatprep.mubr.f32.mxu1 %v20218_v4  ;;  %3269 = vmatprep.mubr.f32.mxu0 %v20218_v4 }
 0x138   :  { %v3047_v23 = vsel %vm3041_vm8, %v3032_v21, %v3034_v22  ;;  %20103 = vset.pattern.permute.xlu1 %v20227_v58 }
 0x139   :  { %3205 = vmatprep.subr.mxu0 %v3047_v23 }
 0x13a   :  { %v2629_v24 = vpop.permute.xlu0 %2628 }
 0x13b   :  { %v3030_v25 = vpop.permute.xlu1 %3029  ;;  %v2642_v27 = vsel %vm2634_vm7, %v2629_v24, %v2631_v59  ;;  %v2641_v11 = vsel %vm2634_vm7, %v2627_v9, %v2629_v24 }
 0x13c   :  { %2869 = vmatprep.subr.mxu1 %v2642_v27  ;;  %v3046_v28 = vsel %vm3041_vm8, %v3030_v25, %v3032_v21  ;;  %v164_v21 = vsub.s32 5, %v143_v52  ;;  %v168_v27 = vsub.s32 6, %v143_v52 }
 0x13d   :  { %3206 = vmatpush1.msra.mxu0 %v3046_v28  ;;  %2870 = vmatpush1.msra.mxu1 %v2641_v11  ;;  %v20900_v28 = vrot.slane %v138_v54, %v160_v16 }
 0x13e   :  { %v3028_v29 = vpop.permute.xlu0 %3027  ;;  %19124 = vmatmul.mubr.msk.f32.vlgmr.msra.gmra.mrb[6].mxu1 %vm249_vm1, %v20783_v6  ;;  %19480 = vmatprep.subr.mxu0 %v20218_v4 }
 0x13f   :  { %v3038_v18 = vpop.permute.xlu1 %3037  ;;  %v3045_v12 = vsel %vm3041_vm8, %v3028_v29, %v3030_v25  ;;  %v3044_v30 = vsel %vm3041_vm8, %v3026_v63, %v3028_v29  ;;  %19129 = vmatmul.mubr.msk.f32.vlgmr.msra.gmra.mrb[0].mxu0 %vm249_vm1, %v19126_v19  ;;  %3198 = vmatprep.mubr.f32.mxu1 %v20218_v4 }
 0x140   :  { %3134 = vmatprep.subr.mxu1 %v3045_v12  ;;  %19482 = vmatprep.mubr.msk.f32.mxu0 %vm20225_vm3, %v20218_v4 }
 0x141   :  { %3135 = vmatpush1.msra.mxu1 %v3044_v30  ;;  %v172_v30 = vsub.s32 7, %v143_v52 }
 0x142   :  { %v3040_v5 = vpop.permute.xlu0 %3039  ;;  %19128 = vmatmul.mubr.msk.f32.vlgmr.msra.gmra.mrb[2].mxu1 %vm249_vm1, %v19126_v19 }
 0x143   :  { %v3050_v15 = vsel %vm3041_vm8, %v3038_v18, %v3040_v5  ;;  %v3431_v3 = vpop.permute.xlu1 %3430  ;;  %3340 = vmatprep.mubr.f32.mxu1 %v20218_v4 }
 0x144   :  { %19481 = vmatpush3.msra.mxu0 %v3050_v15 }
 0x145   :  { %19483 = vmatmul.mubr.msk.f32.vlgmr.msra.gmra.mrb[2].mxu0 %vm249_vm1, %v19126_v19 }
 0x146   :  { %v3433_v26 = vpop.permute.xlu0 %3432  ;;  %3534 = vmatprep.mubr.f32.mxu0 %v20218_v4 }
 0x147   :  { %v3036_v2 = vpop.permute.xlu1 %3035  ;;  %v3450_v31 = vsel %vm3448_vm9, %v3431_v3, %v3433_v26 }
 0x148   :  { %v3049_v32 = vsel %vm3041_vm8, %v3036_v2, %v3038_v18  ;;  %3470 = vmatprep.subr.mxu0 %v3450_v31  ;;  %v3048_v0 = vsel %vm3041_vm8, %v3034_v22, %v3036_v2 }
 0x149   :  { %3276 = vmatprep.subr.mxu1 %v3049_v32  ;;  %v20909_v32 = vrot.slane %v138_v54, %v168_v27 }
 0x14a   :  { %3277 = vmatpush1.msra.mxu1 %v3048_v0  ;;  %v3429_v33 = vpop.permute.xlu0 %3428 }
 0x14b   :  { %v3449_v7 = vsel %vm3448_vm9, %v3429_v33, %v3431_v3  ;;  %v3435_v36 = vpop.permute.xlu1 %3434  ;;  %19130 = vmatmul.mubr.msk.f32.vlgmr.msra.gmra.mrb[6].mxu1 %vm249_vm1, %v19126_v19  ;;  %v20907_v3 = vrot.slane %v138_v54, %v164_v21 }
 0x14c   :  { %3471 = vmatpush1.msra.mxu0 %v3449_v7  ;;  %3605 = vmatprep.mubr.f32.mxu1 %v20218_v4  ;;  %v3451_v39 = vsel %vm3448_vm9, %v3433_v26, %v3435_v36  ;;  %v20915_v7 = vrot.slane %v138_v54, %v172_v30 }
 0x14d   :  { %19133 = vmatmul.mubr.msk.f32.vlgmr.msra.gmra.mrb[4].mxu0 %vm249_vm1, %v19132_v35 }
 0x14e   :  { %v3437_v37 = vpop.permute.xlu0 %3436  ;;  %3676 = vmatprep.mubr.f32.mxu0 %v20218_v4 }
 0x14f   :  { %v3439_v38 = vpop.permute.xlu1 %3438  ;;  %v3452_v34 = vsel %vm3448_vm9, %v3435_v36, %v3437_v37 }
 0x150   :  { %3541 = vmatprep.subr.mxu1 %v3452_v34  ;;  %v3453_v43 = vsel %vm3448_vm9, %v3437_v37, %v3439_v38 }
 0x151   :  { %3542 = vmatpush1.msra.mxu1 %v3451_v39 }
 0x152   :  { %v3441_v40 = vpop.permute.xlu0 %3440  ;;  %19134 = vmatmul.mubr.msk.f32.vlgmr.msra.gmra.mrb[2].mxu1 %vm249_vm1, %v19132_v35 }
 0x153   :  { %v3443_v41 = vpop.permute.xlu1 %3442  ;;  %v3454_v42 = vsel %vm3448_vm9, %v3439_v38, %v3441_v40  ;;  %3747 = vmatprep.mubr.f32.mxu1 %v20218_v4 }
 0x154   :  { %3612 = vmatprep.subr.mxu0 %v3454_v42  ;;  %v3455_v1 = vsel %vm3448_vm9, %v3441_v40, %v3443_v41 }
 0x155   :  { %3613 = vmatpush1.msra.mxu0 %v3453_v43 }
 0x156   :  { %v3445_v44 = vpop.permute.xlu0 %3444  ;;  %19135 = vmatmul.mubr.msk.f32.vlgmr.msra.gmra.mrb[0].mxu0 %vm249_vm1, %v19132_v35  ;;  %19485 = vmatprep.subr.mxu0 %v20218_v4 }
 0x157   :  { %v3447_v45 = vpop.permute.xlu1 %3446  ;;  %v3456_v46 = vsel %vm3448_vm9, %v3443_v41, %v3445_v44  ;;  %19487 = vmatprep.mubr.msk.f32.mxu0 %vm20225_vm3, %v20218_v4 }
 0x158   :  { %v3457_v47 = vsel %vm3448_vm9, %v3445_v44, %v3447_v45  ;;  %3683 = vmatprep.subr.mxu1 %v3456_v46  ;;  %v20931_v46 = vld [vmem:[%s22776_s26 + $0x8] ss:$0 sm:$0xff] }
 0x159   :  { %3684 = vmatpush1.msra.mxu1 %v3455_v1  ;;  %19486 = vmatpush3.msra.mxu0 %v3457_v47 }
 0x15a   :  { %19136 = vmatmul.mubr.msk.f32.vlgmr.msra.gmra.mrb[6].mxu1 %vm249_vm1, %v19132_v35  ;;  %19488 = vmatmul.mubr.msk.f32.vlgmr.msra.gmra.mrb[2].mxu0 %vm249_vm1, %v19132_v35 }
 0x15b   :  { %4095 = vmatprep.mubr.f32.mxu1 %v20218_v4  ;;  %7867 = vmatprep.mubr.f32.mxu0 %v20218_v4 }
 0x1b2   :  { %v461_v8 = vpop.f32.mrb[4].mxu1 }
 0x1b3   :  { %v463_v48 = vpop.f32.mrb[5].mxu1 }
 0x1c0   :  { %v603_v6 = vpop.f32.mrb[8].mxu1 }
 0x1c1   :  { %v19449_v49 = vpop.f32.mrb[9].mxu1 }
 0x1cc   :  { %v715_v9 = vpop.f32.mrb[0].mxu1 }
 0x1cd   :  { %v717_v50 = vpop.f32.mrb[1].mxu1 }
 0x220   :  { %v3536_v59 = vpop.f32.mrb[4].mxu0 }
 0x221   :  { %v19670_v61 = vadd.f32 %v3536_v59, %v715_v9  ;;  %v3538_v62 = vpop.f32.mrb[5].mxu0 }
 0x222   :  { %v19671_v63 = vadd.f32 %v3538_v62, %v717_v50 }
 0x223   :  { %v20881_v13 = vmul.f32 %v19670_v61, %v20874_v57 }
 0x224   :  { %v20886_v17 = vmul.f32 %v19671_v63, %v20876_v60 }
 0x225   :  { %v3852_v19 = vmul.f32 %v20881_v13, %v20881_v13  ;;  %v3607_v20 = vpop.f32.mrb[2].mxu1 }
 0x226   :  { %v3853_v22 = vmul.f32 %v20886_v17, %v20886_v17  ;;  %v20893_v23 = vmul.f32 %v3607_v20, %v20878_v10  ;;  %v3842_v24 = vadd.f32 %v20886_v17, %v20881_v13  ;;  %v3609_v25 = vpop.f32.mrb[3].mxu1 }
 0x227   :  { %v20898_v11 = vmul.f32 %v3609_v25, %v20883_v14  ;;  %v3878_v25 = vld [vmem:[%s22756_s3] sm:$0xff]  ;;  %s20233_s3 = smov 126  }
 0x228   :  { %v3843_v29 = vadd.f32 %v3842_v24, %v20893_v23  ;;  %v3854_v18 = vmul.f32 %v20893_v23, %v20893_v23  ;;  %v3861_v12 = vadd.f32 %v3853_v22, %v3852_v19  ;;  %v20228_v22 = vmov 1  }
 0x229   :  { %v3855_v5 = vmul.f32 %v20898_v11, %v20898_v11  ;;  %v3678_v15 = vpop.f32.mrb[0].mxu0  ;;  %20104 = vset.pattern.permute.xlu0 %v20228_v22  ;;  %v3881_v24 = vstv %s19138_s0 }
 0x22a   :  { %v3862_v26 = vadd.f32 %v3861_v12, %v3854_v18  ;;  %v19672_v2 = vadd.f32 %v3678_v15, %v461_v8  ;;  %v3680_v31 = vpop.f32.mrb[1].mxu0  ;;  %v3844_v33 = vadd.f32 %v3843_v29, %v20898_v11  ;;  %v3882_v27 = vmul.f32 %v3881_v24, %v3878_v25 }
 0x22b   :  { %v19673_v0 = vadd.f32 %v3680_v31, %v463_v48  ;;  %v3884_v12 = vstv %s3879_s30  ;;  %s20229_s30 = smov 48  }
 0x22c   :  { %v20913_v35 = vmul.f32 %v19672_v2, %v20900_v28  ;;  %v3863_v36 = vadd.f32 %v3862_v26, %v3855_v5 }
 0x22d   :  { %v20918_v37 = vmul.f32 %v19673_v0, %v20907_v3  ;;  %v3749_v38 = vpop.f32.mrb[6].mxu1  ;;  %v3820_v34 = vpop.f32.mrb[2].mxu0 }
 0x22e   :  { %v3845_v39 = vadd.f32 %v3844_v33, %v20913_v35  ;;  %v3856_v40 = vmul.f32 %v20913_v35, %v20913_v35  ;;  %v20924_v41 = vmul.f32 %v3749_v38, %v20909_v32  ;;  %v19674_v42 = vadd.f32 %v3820_v34, %v603_v6  ;;  %v3751_v43 = vpop.f32.mrb[7].mxu1  ;;  %v19489_v44 = vpop.f32.mrb[3].mxu0 }
 0x22f   :  { %v3857_v45 = vmul.f32 %v20918_v37, %v20918_v37  ;;  %v3840_v8 = vmul.f32 %v3751_v43, %v20915_v7 }
 0x230   :  { %v3864_v47 = vadd.f32 %v3863_v36, %v3856_v40  ;;  %v3846_v1 = vadd.f32 %v3845_v39, %v20918_v37  ;;  %v3858_v6 = vmul.f32 %v20924_v41, %v20924_v41  ;;  %v20939_v49 = vmul.f32 %v19674_v42, %v20931_v46 }
 0x231   :  { %v3859_v50 = vmul.f32 %v3840_v8, %v3840_v8 }
 0x232   :  { %v3847_v48 = vadd.f32 %v3846_v1, %v20924_v41  ;;  %v3865_v9 = vadd.f32 %v3864_v47, %v3857_v45  ;;  %v3860_v54 = vmul.f32 %v20939_v49, %v20939_v49 }
 0x234   :  { %v3848_v51 = vadd.f32 %v3847_v48, %v3840_v8  ;;  %v3866_v52 = vadd.f32 %v3865_v9, %v3858_v6 }
 0x236   :  { %v3849_v53 = vadd.f32 %v3848_v51, %v20939_v49  ;;  %v3867_v55 = vadd.f32 %v3866_v52, %v3859_v50 }
 0x238   :  { %3850 = vadd.xlane.f32.xlu0 %v3849_v53  ;;  %v3868_v56 = vadd.f32 %v3867_v55, %v3860_v54 }
 0x23a   :  { %3869 = vadd.xlane.f32.xlu1 %v3868_v56 }
 0x2c5   :  { %v3851_v59 = vpop.xlane.xlu0 %3850 }
 0x2c6   :  { %v3871_v61 = vmul.f32 0.001953125, %v3851_v59 }
 0x2c7   :  { %v3870_v62 = vpop.xlane.xlu1 %3869 }
 0x2c8   :  { %v3873_v63 = vmul.f32 %v3871_v61, %v3871_v61  ;;  %v3872_v16 = vmul.f32 0.001953125, %v3870_v62  ;;  %v3886_v29 = vmul.f32 %v3878_v25, %v3871_v61 }
 0x2ca   :  { %v3874_v19 = vsub.f32 %v3872_v16, %v3873_v63 }
 0x2cc   :  { %v3875_v20 = vmax.f32 %v3874_v19, 0.0 }
 0x2ce   :  { %v3876_v21 = vadd.f32 1e-05, %v3875_v20 }
 0x2d0   :  { %20108 = vrsqrt.f32 %v3876_v21 }
 0x2da   :  { %v20109_v18 = vpop.eup %20108 }
 0x2db   :  { %v3887_v30 = vmul.f32 %v20109_v18, %v3886_v29  ;;  %v3883_v5 = vmul.f32 %v20109_v18, %v3882_v27 }
 0x2dd   :  { %3889 = vrot.lane.b32.xlu0 %v3887_v30, %s20221_s18  ;;  %v3885_v15 = vadd.f32 %v3884_v12, %v3883_v5 }
 0x2df   :  { %3896 = vperm.xlu1 %20103, %v3885_v15  }
 0x34f   :  { %v3890_v26 = vpop.permute.xlu0 %3889 }
 0x350   :  { %v3892_v2 = vsub.f32 %v3878_v25, %v3890_v26 }
 0x352   :  { %v3893_v31 = vmul.f32 %v3892_v2, %v3881_v24 }
 0x354   :  { %3910 = vperm.xlu0 %20104, %v3893_v31  }
 0x358   :  { %3990 = vrot.lane.b32.xlu0 %v20218_v4, %s20219_s22 }
 0x35e   :  { %v3897_v0 = vpop.permute.xlu1 %3896 }
 0x35f   :  { %v3899_v33 = vmul.f32 %v3897_v0, %v20881_v13  ;;  %v3902_v36 = vmul.f32 %v3897_v0, %v20898_v11  ;;  %v3900_v34 = vmul.f32 %v3897_v0, %v20886_v17  ;;  %v3904_v42 = vmul.f32 %v3897_v0, %v20918_v37 }
 0x360   :  { %v3901_v45 = vmul.f32 %v3897_v0, %v20893_v23  ;;  %v3906_v1 = vmul.f32 %v3897_v0, %v3840_v8  ;;  %v3903_v51 = vmul.f32 %v3897_v0, %v20913_v35  ;;  %v3905_v56 = vmul.f32 %v3897_v0, %v20924_v41 }
 0x361   :  { %v3907_v41 = vmul.f32 %v3897_v0, %v20939_v49  ;;  %v19139_v0 = vld [vmem:[%s22758_s5 + $0x8] sm:$0xff] }
 0x3d3   :  { %v3911_v38 = vpop.permute.xlu0 %3910 }
 0x3d4   :  { %v3913_v39 = vadd.f32 %v3911_v38, %v3899_v33  ;;  %v3916_v40 = vadd.f32 %v3911_v38, %v3902_v36  ;;  %v3914_v43 = vadd.f32 %v3911_v38, %v3900_v34  ;;  %v3918_v44 = vadd.f32 %v3911_v38, %v3904_v42 }
 0x3d5   :  { %v3915_v6 = vadd.f32 %v3911_v38, %v3901_v45  ;;  %v3920_v11 = vadd.f32 %v3911_v38, %v3906_v1  ;;  %v3917_v52 = vadd.f32 %v3911_v38, %v3903_v51  ;;  %v3919_v59 = vadd.f32 %v3911_v38, %v3905_v56  ;;  %v3977_v51 = vld [vmem:[%s22758_s5] sm:$0xff] }
 0x3d6   :  { %vm3922_vm10 = vcmp.ge.f32.partialorder %v3913_v39, 0.0  ;;  %vm3925_vm11 = vcmp.ge.f32.partialorder %v3916_v40, 0.0  ;;  %v3931_v47 = vmul.f32 0.2, %v3913_v39  ;;  %v3934_v48 = vmul.f32 0.2, %v3916_v40 }
 0x3d7   :  { %v3932_v13 = vmul.f32 0.2, %v3914_v43  ;;  %vm3923_vm12 = vcmp.ge.f32.partialorder %v3914_v43, 0.0  ;;  %v3936_v50 = vmul.f32 0.2, %v3918_v44  ;;  %vm3927_vm13 = vcmp.ge.f32.partialorder %v3918_v44, 0.0 }
 0x3d8   :  { %v3940_v9 = vsel %vm3922_vm10, %v3913_v39, %v3931_v47  ;;  %v3943_v17 = vsel %vm3925_vm11, %v3916_v40, %v3934_v48  ;;  %v3933_v53 = vmul.f32 0.2, %v3915_v6  ;;  %vm3924_vm14 = vcmp.ge.f32.partialorder %v3915_v6, 0.0 }
 0x3d9   :  { %v20959_v37 = vmul.f32 %v3940_v9, %v20874_v57  ;;  %v3941_v23 = vsel %vm3923_vm12, %v3914_v43, %v3932_v13  ;;  %v20962_v54 = vmul.f32 %v3943_v17, %v20883_v14  ;;  %v3938_v8 = vmul.f32 0.2, %v3920_v11 }
 0x3da   :  { %v3945_v55 = vsel %vm3927_vm13, %v3918_v44, %v3936_v50  ;;  %vm3929_vm15 = vcmp.ge.f32.partialorder %v3920_v11, 0.0  ;;  %v20970_v35 = vmul.f32 %v3941_v23, %v20876_v60  ;;  %v3935_v61 = vmul.f32 0.2, %v3917_v52 }
 0x3db   :  { %3992 = vrot.lane.b32.xlu1 %v20959_v37, %s20219_s22  ;;  %3998 = vrot.lane.b32.xlu0 %v20962_v54, %s20219_s22  ;;  %v3942_v62 = vsel %vm3924_vm14, %v3915_v6, %v3933_v53  ;;  %v20973_v63 = vmul.f32 %v3945_v55, %v20907_v3  ;;  %vm3926_vm10 = vcmp.ge.f32.partialorder %v3917_v52, 0.0  ;;  %v3947_v16 = vsel %vm3929_vm15, %v3920_v11, %v3938_v8 }
 0x3dc   :  { %v20981_v19 = vmul.f32 %v3942_v62, %v20878_v10  ;;  %v3921_v20 = vadd.f32 %v3911_v38, %v3907_v41  ;;  %v3937_v21 = vmul.f32 0.2, %v3919_v59  ;;  %v3944_v24 = vsel %vm3926_vm10, %v3917_v52, %v3935_v61 }
 0x3dd   :  { %v20984_v25 = vmul.f32 %v3947_v16, %v20915_v7  ;;  %vm3928_vm11 = vcmp.ge.f32.partialorder %v3919_v59, 0.0  ;;  %v20991_v49 = vmul.f32 %v3944_v24, %v20900_v28 }
 0x3de   :  { %v3939_v27 = vmul.f32 0.2, %v3921_v20  ;;  %v3946_v29 = vsel %vm3928_vm11, %v3919_v59, %v3937_v21  ;;  %vm3930_vm12 = vcmp.ge.f32.partialorder %v3921_v20, 0.0 }
 0x3df   :  { %3994 = vrot.lane.b32.xlu1 %v20970_v35, %s20219_s22  ;;  %4002 = vrot.lane.b32.xlu0 %v20973_v63, %s20219_s22  ;;  %v20998_v18 = vmul.f32 %v3946_v29, %v20909_v32 }
 0x3e0   :  { %v3948_v12 = vsel %vm3930_vm12, %v3921_v20, %v3939_v27 }
 0x3e1   :  { %v21005_v30 = vmul.f32 %v20931_v46, %v3948_v12  ;;  %v3991_v46 = vpop.permute.xlu0 %3990 }
 0x3e3   :  { %3996 = vrot.lane.b32.xlu1 %v20981_v19, %s20219_s22  ;;  %4006 = vrot.lane.b32.xlu0 %v20984_v25, %s20219_s22 }
 0x3e7   :  { %4000 = vrot.lane.b32.xlu1 %v20991_v49, %s20219_s22  ;;  %4385 = vrot.lane.b32.xlu0 %v20218_v4, %s20217_s13 }
 0x3eb   :  { %4004 = vrot.lane.b32.xlu1 %v20998_v18, %s20219_s22  ;;  %4387 = vrot.lane.b32.xlu0 %v20959_v37, %s20217_s13 }
 0x3ef   :  { %4008 = vrot.lane.b32.xlu1 %v21005_v30, %s20219_s22  ;;  %4393 = vrot.lane.b32.xlu0 %v20962_v54, %s20217_s13 }
 0x3f3   :  { %4389 = vrot.lane.b32.xlu1 %v20970_v35, %s20217_s13  ;;  %4397 = vrot.lane.b32.xlu0 %v20973_v63, %s20217_s13 }
 0x3f7   :  { %4391 = vrot.lane.b32.xlu1 %v20981_v19, %s20217_s13  ;;  %4401 = vrot.lane.b32.xlu0 %v20984_v25, %s20217_s13 }
 0x3fb   :  { %4395 = vrot.lane.b32.xlu1 %v20991_v49, %s20217_s13  ;;  %4782 = vrot.lane.b32.xlu0 %v20218_v4, %s20220_s27 }
 0x3ff   :  { %4399 = vrot.lane.b32.xlu1 %v20998_v18, %s20217_s13  ;;  %4784 = vrot.lane.b32.xlu0 %v20959_v37, %s20220_s27 }
 0x403   :  { %4403 = vrot.lane.b32.xlu1 %v21005_v30, %s20217_s13  ;;  %4790 = vrot.lane.b32.xlu0 %v20962_v54, %s20220_s27 }
 0x407   :  { %4786 = vrot.lane.b32.xlu1 %v20970_v35, %s20220_s27  ;;  %4794 = vrot.lane.b32.xlu0 %v20973_v63, %s20220_s27 }
 0x40b   :  { %4788 = vrot.lane.b32.xlu1 %v20981_v19, %s20220_s27  ;;  %4798 = vrot.lane.b32.xlu0 %v20984_v25, %s20220_s27 }
 0x40f   :  { %4792 = vrot.lane.b32.xlu1 %v20991_v49, %s20220_s27  ;;  %5188 = vrot.lane.b32.xlu0 %v20218_v4, %s20221_s18 }
 0x413   :  { %4796 = vrot.lane.b32.xlu1 %v20998_v18, %s20220_s27  ;;  %5190 = vrot.lane.b32.xlu0 %v20959_v37, %s20221_s18 }
 0x417   :  { %4800 = vrot.lane.b32.xlu1 %v21005_v30, %s20220_s27  ;;  %5196 = vrot.lane.b32.xlu0 %v20962_v54, %s20221_s18 }
 0x41b   :  { %5192 = vrot.lane.b32.xlu1 %v20970_v35, %s20221_s18  ;;  %5200 = vrot.lane.b32.xlu0 %v20973_v63, %s20221_s18 }
 0x41f   :  { %5194 = vrot.lane.b32.xlu1 %v20981_v19, %s20221_s18  ;;  %5204 = vrot.lane.b32.xlu0 %v20984_v25, %s20221_s18 }
 0x423   :  { %5198 = vrot.lane.b32.xlu1 %v20991_v49, %s20221_s18  ;;  %5984 = vrot.lane.b32.xlu0 %v20970_v35, %s20222_s16 }
 0x427   :  { %5202 = vrot.lane.b32.xlu1 %v20998_v18, %s20221_s18  ;;  %5982 = vrot.lane.b32.xlu0 %v20959_v37, %s20222_s16 }
 0x42b   :  { %5206 = vrot.lane.b32.xlu1 %v21005_v30, %s20221_s18  ;;  %5990 = vrot.lane.b32.xlu0 %v20991_v49, %s20222_s16 }
 0x42f   :  { %5986 = vrot.lane.b32.xlu1 %v20981_v19, %s20222_s16  ;;  %5994 = vrot.lane.b32.xlu0 %v20998_v18, %s20222_s16 }
 0x433   :  { %5988 = vrot.lane.b32.xlu1 %v20962_v54, %s20222_s16  ;;  %5998 = vrot.lane.b32.xlu0 %v21005_v30, %s20222_s16 }
 0x437   :  { %5992 = vrot.lane.b32.xlu1 %v20973_v63, %s20222_s16  ;;  %6390 = vrot.lane.b32.xlu0 %v20970_v35, %s20223_s7 }
 0x43b   :  { %5996 = vrot.lane.b32.xlu1 %v20984_v25, %s20222_s16  ;;  %6388 = vrot.lane.b32.xlu0 %v20959_v37, %s20223_s7 }
 0x43f   :  { %6000 = vrot.lane.b32.xlu1 %v20218_v4, %s20222_s16  ;;  %6396 = vrot.lane.b32.xlu0 %v20991_v49, %s20223_s7 }
 0x443   :  { %6392 = vrot.lane.b32.xlu1 %v20981_v19, %s20223_s7  ;;  %6400 = vrot.lane.b32.xlu0 %v20998_v18, %s20223_s7 }
 0x447   :  { %6394 = vrot.lane.b32.xlu1 %v20962_v54, %s20223_s7  ;;  %6404 = vrot.lane.b32.xlu0 %v21005_v30, %s20223_s7 }
 0x44b   :  { %6398 = vrot.lane.b32.xlu1 %v20973_v63, %s20223_s7  ;;  %6796 = vrot.lane.b32.xlu0 %v20970_v35, %s20224_s19 }
 0x44d   :  { %v3993_v5 = vpop.permute.xlu1 %3992  ;;  %v3999_v15 = vpop.permute.xlu0 %3998 }
 0x44e   :  { %v4010_v33 = vsel %vm230_vm2, %v3991_v46, %v3993_v5 }
 0x44f   :  { %6402 = vrot.lane.b32.xlu1 %v20984_v25, %s20223_s7  ;;  %6794 = vrot.lane.b32.xlu0 %v20959_v37, %s20224_s19 }
 0x451   :  { %v3995_v26 = vpop.permute.xlu1 %3994  ;;  %v4003_v2 = vpop.permute.xlu0 %4002 }
 0x452   :  { %v4011_v31 = vsel %vm230_vm2, %v3993_v5, %v3995_v26 }
 0x453   :  { %6406 = vrot.lane.b32.xlu1 %v20218_v4, %s20223_s7  ;;  %4031 = vmatprep.subr.mxu1 %v4011_v31 }
 0x454   :  { %6802 = vrot.lane.b32.xlu0 %v20991_v49, %s20224_s19  ;;  %4032 = vmatpush1.msra.mxu1 %v4010_v33 }
 0x455   :  { %19140 = vmatmul.mubr.msk.f32.vlgmr.msra.gmra.mrb[10].mxu1 %vm249_vm1, %v19139_v0  ;;  %v3997_v36 = vpop.permute.xlu1 %3996  ;;  %v4007_v38 = vpop.permute.xlu0 %4006 }
 0x456   :  { %v4013_v34 = vsel %vm230_vm2, %v3997_v36, %v3999_v15  ;;  %v4012_v39 = vsel %vm230_vm2, %v3995_v26, %v3997_v36  ;;  %4166 = vmatprep.mubr.f32.mxu1 %v20218_v4 }
 0x457   :  { %6798 = vrot.lane.b32.xlu1 %v20981_v19, %s20224_s19  ;;  %4102 = vmatprep.subr.mxu1 %v4013_v34 }
 0x458   :  { %6806 = vrot.lane.b32.xlu0 %v20998_v18, %s20224_s19  ;;  %4103 = vmatpush1.msra.mxu1 %v4012_v39 }
 0x459   :  { %19141 = vmatmul.mubr.msk.f32.vlgmr.msra.gmra.mrb[12].mxu1 %vm249_vm1, %v19139_v0  ;;  %v4001_v40 = vpop.permute.xlu1 %4000  ;;  %v4386_v42 = vpop.permute.xlu0 %4385 }
 0x45a   :  { %v4015_v43 = vsel %vm230_vm2, %v4001_v40, %v4003_v2  ;;  %v4014_v44 = vsel %vm230_vm2, %v3999_v15, %v4001_v40  ;;  %4237 = vmatprep.mubr.f32.mxu1 %v20218_v4  ;;  %v19150_v15 = vld [vmem:[%s22758_s5 + $0x10] sm:$0xff] }
 0x45b   :  { %6800 = vrot.lane.b32.xlu1 %v20962_v54, %s20224_s19  ;;  %4173 = vmatprep.subr.mxu1 %v4015_v43 }
 0x45c   :  { %6810 = vrot.lane.b32.xlu0 %v21005_v30, %s20224_s19  ;;  %4174 = vmatpush1.msra.mxu1 %v4014_v44 }
 0x45d   :  { %19142 = vmatmul.mubr.msk.f32.vlgmr.msra.gmra.mrb[14].mxu1 %vm249_vm1, %v19139_v0  ;;  %v4005_v45 = vpop.permute.xlu1 %4004  ;;  %v4388_v47 = vpop.permute.xlu0 %4387 }
 0x45e   :  { %v4017_v1 = vsel %vm230_vm2, %v4005_v45, %v4007_v38  ;;  %v4016_v48 = vsel %vm230_vm2, %v4003_v2, %v4005_v45  ;;  %4308 = vmatprep.mubr.f32.mxu1 %v20218_v4  ;;  %v4405_v52 = vsel %vm627_vm0, %v4386_v42, %v4388_v47 }
 0x45f   :  { %6804 = vrot.lane.b32.xlu1 %v20973_v63, %s20224_s19  ;;  %4244 = vmatprep.subr.mxu1 %v4017_v1 }
 0x460   :  { %7202 = vrot.lane.b32.xlu0 %v20970_v35, %s20226_s24  ;;  %4245 = vmatpush1.msra.mxu1 %v4016_v48 }
 0x461   :  { %19143 = vmatmul.mubr.msk.f32.vlgmr.msra.gmra.mrb[16].mxu1 %vm249_vm1, %v19139_v0  ;;  %v4009_v6 = vpop.permute.xlu1 %4008  ;;  %19490 = vmatprep.subr.mxu1 %v20218_v4  ;;  %v4394_v13 = vpop.permute.xlu0 %4393 }
 0x462   :  { %v4018_v9 = vsel %vm230_vm2, %v4007_v38, %v4009_v6  ;;  %19492 = vmatprep.mubr.msk.f32.mxu1 %vm20225_vm3, %v20218_v4 }
 0x463   :  { %6808 = vrot.lane.b32.xlu1 %v20984_v25, %s20224_s19  ;;  %19491 = vmatpush3.msra.mxu1 %v4018_v9  ;;  %v19156_v9 = vld [vmem:[%s22758_s5 + $0x18] sm:$0xff] }
 0x464   :  { %7200 = vrot.lane.b32.xlu0 %v20959_v37, %s20226_s24 }
 0x465   :  { %19493 = vmatmul.mubr.msk.f32.vlgmr.msra.gmra.mrb[18].mxu1 %vm249_vm1, %v19139_v0  ;;  %v4390_v11 = vpop.permute.xlu1 %4389  ;;  %v4398_v50 = vpop.permute.xlu0 %4397 }
 0x466   :  { %v4406_v17 = vsel %vm627_vm0, %v4388_v47, %v4390_v11  ;;  %4490 = vmatprep.mubr.f32.mxu1 %v20218_v4 }
 0x467   :  { %6812 = vrot.lane.b32.xlu1 %v20218_v4, %s20224_s19  ;;  %4426 = vmatprep.subr.mxu1 %v4406_v17 }
 0x468   :  { %7208 = vrot.lane.b32.xlu0 %v20991_v49, %s20226_s24  ;;  %4427 = vmatpush1.msra.mxu1 %v4405_v52 }
 0x469   :  { %19145 = vmatmul.mubr.msk.f32.vlgmr.msra.gmra.mrb[10].mxu1 %vm249_vm1, %v3977_v51  ;;  %v4392_v53 = vpop.permute.xlu1 %4391  ;;  %v4402_v23 = vpop.permute.xlu0 %4401 }
 0x46a   :  { %v4408_v8 = vsel %vm627_vm0, %v4392_v53, %v4394_v13  ;;  %v4407_v55 = vsel %vm627_vm0, %v4390_v11, %v4392_v53  ;;  %4561 = vmatprep.mubr.f32.mxu1 %v20218_v4 }
 0x46b   :  { %7204 = vrot.lane.b32.xlu1 %v20981_v19, %s20226_s24  ;;  %4497 = vmatprep.subr.mxu1 %v4408_v8 }
 0x46c   :  { %7212 = vrot.lane.b32.xlu0 %v20998_v18, %s20226_s24  ;;  %4498 = vmatpush1.msra.mxu1 %v4407_v55 }
 0x46d   :  { %19146 = vmatmul.mubr.msk.f32.vlgmr.msra.gmra.mrb[12].mxu1 %vm249_vm1, %v3977_v51  ;;  %v4396_v56 = vpop.permute.xlu1 %4395  ;;  %v4783_v59 = vpop.permute.xlu0 %4782 }
 0x46e   :  { %v4410_v61 = vsel %vm627_vm0, %v4396_v56, %v4398_v50  ;;  %v4409_v62 = vsel %vm627_vm0, %v4394_v13, %v4396_v56  ;;  %4632 = vmatprep.mubr.f32.mxu1 %v20218_v4 }
 0x46f   :  { %7206 = vrot.lane.b32.xlu1 %v20962_v54, %s20226_s24  ;;  %4568 = vmatprep.subr.mxu1 %v4410_v61 }
 0x470   :  { %7216 = vrot.lane.b32.xlu0 %v21005_v30, %s20226_s24  ;;  %4569 = vmatpush1.msra.mxu1 %v4409_v62 }
 0x471   :  { %19147 = vmatmul.mubr.msk.f32.vlgmr.msra.gmra.mrb[14].mxu1 %vm249_vm1, %v3977_v51  ;;  %v4400_v16 = vpop.permute.xlu1 %4399  ;;  %v4785_v41 = vpop.permute.xlu0 %4784 }
 0x472   :  { %v4412_v20 = vsel %vm627_vm0, %v4400_v16, %v4402_v23  ;;  %v4411_v21 = vsel %vm627_vm0, %v4398_v50, %v4400_v16  ;;  %4703 = vmatprep.mubr.f32.mxu1 %v20218_v4  ;;  %v4802_v26 = vsel %vm1025_vm4, %v4783_v59, %v4785_v41 }
 0x473   :  { %7210 = vrot.lane.b32.xlu1 %v20973_v63, %s20226_s24  ;;  %4639 = vmatprep.subr.mxu1 %v4412_v20 }
 0x474   :  { %4640 = vmatpush1.msra.mxu1 %v4411_v21 }
 0x475   :  { %19148 = vmatmul.mubr.msk.f32.vlgmr.msra.gmra.mrb[16].mxu1 %vm249_vm1, %v3977_v51  ;;  %v4404_v24 = vpop.permute.xlu1 %4403  ;;  %19495 = vmatprep.subr.mxu1 %v20218_v4  ;;  %v4791_v27 = vpop.permute.xlu0 %4790 }
 0x476   :  { %v4413_v29 = vsel %vm627_vm0, %v4402_v23, %v4404_v24  ;;  %19497 = vmatprep.mubr.msk.f32.mxu1 %vm20225_vm3, %v20218_v4 }
 0x477   :  { %7214 = vrot.lane.b32.xlu1 %v20984_v25, %s20226_s24  ;;  %19496 = vmatpush3.msra.mxu1 %v4413_v29 }
 0x479   :  { %19498 = vmatmul.mubr.msk.f32.vlgmr.msra.gmra.mrb[18].mxu1 %vm249_vm1, %v3977_v51  ;;  %v4787_v12 = vpop.permute.xlu1 %4786  ;;  %v4795_v46 = vpop.permute.xlu0 %4794 }
 0x47a   :  { %v4803_v5 = vsel %vm1025_vm4, %v4785_v41, %v4787_v12  ;;  %4887 = vmatprep.mubr.f32.mxu1 %v20218_v4 }
 0x47b   :  { %7218 = vrot.lane.b32.xlu1 %v20218_v4, %s20226_s24  ;;  %4823 = vmatprep.subr.mxu1 %v4803_v5 }
 0x47c   :  { %4824 = vmatpush1.msra.mxu1 %v4802_v26 }
 0x47d   :  { %19151 = vmatmul.mubr.msk.f32.vlgmr.msra.gmra.mrb[10].mxu1 %vm249_vm1, %v19150_v15  ;;  %v4789_v2 = vpop.permute.xlu1 %4788  ;;  %v4799_v31 = vpop.permute.xlu0 %4798 }
 0x47e   :  { %v4805_v0 = vsel %vm1025_vm4, %v4789_v2, %v4791_v27  ;;  %v4804_v33 = vsel %vm1025_vm4, %v4787_v12, %v4789_v2  ;;  %4958 = vmatprep.mubr.f32.mxu1 %v20218_v4 }
 0x47f   :  { %4894 = vmatprep.subr.mxu1 %v4805_v0 }
 0x480   :  { %4895 = vmatpush1.msra.mxu1 %v4804_v33 }
 0x481   :  { %19152 = vmatmul.mubr.msk.f32.vlgmr.msra.gmra.mrb[12].mxu1 %vm249_vm1, %v19150_v15  ;;  %v4793_v36 = vpop.permute.xlu1 %4792  ;;  %v5189_v38 = vpop.permute.xlu0 %5188 }
 0x482   :  { %v4807_v34 = vsel %vm1025_vm4, %v4793_v36, %v4795_v46  ;;  %v4806_v39 = vsel %vm1025_vm4, %v4791_v27, %v4793_v36  ;;  %5029 = vmatprep.mubr.f32.mxu1 %v20218_v4  ;;  %v19162_v27 = vld [vmem:[%s22758_s5 + $0x20] sm:$0xff] }
 0x483   :  { %4965 = vmatprep.subr.mxu1 %v4807_v34 }
 0x484   :  { %4966 = vmatpush1.msra.mxu1 %v4806_v39 }
 0x485   :  { %19153 = vmatmul.mubr.msk.f32.vlgmr.msra.gmra.mrb[14].mxu1 %vm249_vm1, %v19150_v15  ;;  %v4797_v40 = vpop.permute.xlu1 %4796  ;;  %v5191_v42 = vpop.permute.xlu0 %5190 }
 0x486   :  { %v4809_v43 = vsel %vm1025_vm4, %v4797_v40, %v4799_v31  ;;  %v4808_v44 = vsel %vm1025_vm4, %v4795_v46, %v4797_v40  ;;  %5100 = vmatprep.mubr.f32.mxu1 %v20218_v4  ;;  %v5208_v11 = vsel %vm1432_vm5, %v5189_v38, %v5191_v42 }
 0x487   :  { %5036 = vmatprep.subr.mxu1 %v4809_v43 }
 0x488   :  { %5037 = vmatpush1.msra.mxu1 %v4808_v44 }
 0x489   :  { %19154 = vmatmul.mubr.msk.f32.vlgmr.msra.gmra.mrb[16].mxu1 %vm249_vm1, %v19150_v15  ;;  %v4801_v45 = vpop.permute.xlu1 %4800  ;;  %19500 = vmatprep.subr.mxu1 %v20218_v4  ;;  %v5197_v47 = vpop.permute.xlu0 %5196 }
 0x48a   :  { %v4810_v1 = vsel %vm1025_vm4, %v4799_v31, %v4801_v45  ;;  %19502 = vmatprep.mubr.msk.f32.mxu1 %vm20225_vm3, %v20218_v4 }
 0x48b   :  { %19501 = vmatpush3.msra.mxu1 %v4810_v1 }
 0x48d   :  { %19503 = vmatmul.mubr.msk.f32.vlgmr.msra.gmra.mrb[18].mxu1 %vm249_vm1, %v19150_v15  ;;  %v5193_v48 = vpop.permute.xlu1 %5192  ;;  %v5201_v6 = vpop.permute.xlu0 %5200 }
 0x48e   :  { %v5209_v13 = vsel %vm1432_vm5, %v5191_v42, %v5193_v48  ;;  %5293 = vmatprep.mubr.f32.mxu1 %v20218_v4 }
 0x48f   :  { %5229 = vmatprep.subr.mxu1 %v5209_v13 }
 0x490   :  { %5230 = vmatpush1.msra.mxu1 %v5208_v11 }
 0x491   :  { %19157 = vmatmul.mubr.msk.f32.vlgmr.msra.gmra.mrb[10].mxu1 %vm249_vm1, %v19156_v9  ;;  %v5195_v50 = vpop.permute.xlu1 %5194  ;;  %v5205_v17 = vpop.permute.xlu0 %5204 }
 0x492   :  { %v5211_v51 = vsel %vm1432_vm5, %v5195_v50, %v5197_v47  ;;  %v5210_v52 = vsel %vm1432_vm5, %v5193_v48, %v5195_v50  ;;  %5364 = vmatprep.mubr.f32.mxu1 %v20218_v4 }
 0x493   :  { %5300 = vmatprep.subr.mxu1 %v5211_v51 }
 0x494   :  { %5301 = vmatpush1.msra.mxu1 %v5210_v52 }
 0x495   :  { %19158 = vmatmul.mubr.msk.f32.vlgmr.msra.gmra.mrb[12].mxu1 %vm249_vm1, %v19156_v9  ;;  %v5199_v53 = vpop.permute.xlu1 %5198  ;;  %v5985_v23 = vpop.permute.xlu0 %5984 }
 0x496   :  { %v5213_v8 = vsel %vm1432_vm5, %v5199_v53, %v5201_v6  ;;  %v5212_v55 = vsel %vm1432_vm5, %v5197_v47, %v5199_v53  ;;  %5435 = vmatprep.mubr.f32.mxu1 %v20218_v4 }
 0x497   :  { %5371 = vmatprep.subr.mxu1 %v5213_v8 }
 0x498   :  { %5372 = vmatpush1.msra.mxu1 %v5212_v55 }
 0x499   :  { %19159 = vmatmul.mubr.msk.f32.vlgmr.msra.gmra.mrb[14].mxu1 %vm249_vm1, %v19156_v9  ;;  %v5203_v56 = vpop.permute.xlu1 %5202  ;;  %v5983_v59 = vpop.permute.xlu0 %5982 }
 0x49a   :  { %v5215_v61 = vsel %vm1432_vm5, %v5203_v56, %v5205_v17  ;;  %v5214_v62 = vsel %vm1432_vm5, %v5201_v6, %v5203_v56  ;;  %5506 = vmatprep.mubr.f32.mxu1 %v20218_v4  ;;  %v19174_v6 = vld [vmem:[%s22758_s5 + $0x30] sm:$0xff] }
 0x49b   :  { %5442 = vmatprep.subr.mxu1 %v5215_v61 }
 0x49c   :  { %5443 = vmatpush1.msra.mxu1 %v5214_v62 }
 0x49d   :  { %19160 = vmatmul.mubr.msk.f32.vlgmr.msra.gmra.mrb[16].mxu1 %vm249_vm1, %v19156_v9  ;;  %v5207_v16 = vpop.permute.xlu1 %5206  ;;  %19505 = vmatprep.subr.mxu1 %v20218_v4  ;;  %v5991_v41 = vpop.permute.xlu0 %5990 }
 0x49e   :  { %v5216_v20 = vsel %vm1432_vm5, %v5205_v17, %v5207_v16  ;;  %19507 = vmatprep.mubr.msk.f32.mxu1 %vm20225_vm3, %v20218_v4  ;;  %v19180_v16 = vld [vmem:[%s22758_s5 + $0x38] sm:$0xff] }
 0x49f   :  { %19506 = vmatpush3.msra.mxu1 %v5216_v20 }
 0x4a0   :  { %5597 = vmatprep.subr.mxu1 %v20970_v35 }
 0x4a1   :  { %19508 = vmatmul.mubr.msk.f32.vlgmr.msra.gmra.mrb[18].mxu1 %vm249_vm1, %v19156_v9  ;;  %v5987_v21 = vpop.permute.xlu1 %5986  ;;  %v5995_v24 = vpop.permute.xlu0 %5994 }
 0x4a2   :  { %5598 = vmatpush1.msra.mxu1 %v20959_v37  ;;  %5661 = vmatprep.mubr.f32.mxu1 %v20218_v4 }
 0x4a3   :  { %5668 = vmatprep.subr.mxu1 %v20962_v54 }
 0x4a5   :  { %19163 = vmatmul.mubr.msk.f32.vlgmr.msra.gmra.mrb[10].mxu1 %vm249_vm1, %v19162_v27  ;;  %v5989_v29 = vpop.permute.xlu1 %5988  ;;  %v5999_v12 = vpop.permute.xlu0 %5998 }
 0x4a6   :  { %5669 = vmatpush1.msra.mxu1 %v20981_v19  ;;  %5732 = vmatprep.mubr.f32.mxu1 %v20218_v4  ;;  %v6005_v5 = vsel %vm2227_vm6, %v5989_v29, %v5991_v41  ;;  %v6004_v26 = vsel %vm2227_vm6, %v5987_v21, %v5989_v29 }
 0x4a7   :  { %5739 = vmatprep.subr.mxu1 %v20973_v63 }
 0x4a9   :  { %19164 = vmatmul.mubr.msk.f32.vlgmr.msra.gmra.mrb[12].mxu1 %vm249_vm1, %v19162_v27  ;;  %v5993_v37 = vpop.permute.xlu1 %5992  ;;  %v6391_v35 = vpop.permute.xlu0 %6390 }
 0x4aa   :  { %5740 = vmatpush1.msra.mxu1 %v20991_v49  ;;  %5803 = vmatprep.mubr.f32.mxu1 %v20218_v4  ;;  %v6003_v49 = vsel %vm2227_vm6, %v5985_v23, %v5987_v21  ;;  %v6007_v31 = vsel %vm2227_vm6, %v5993_v37, %v5995_v24  ;;  %v6006_v33 = vsel %vm2227_vm6, %v5991_v41, %v5993_v37 }
 0x4ab   :  { %5810 = vmatprep.subr.mxu1 %v20984_v25  ;;  %v6002_v25 = vsel %vm2227_vm6, %v5983_v59, %v5985_v23 }
 0x4ad   :  { %19165 = vmatmul.mubr.msk.f32.vlgmr.msra.gmra.mrb[14].mxu1 %vm249_vm1, %v19162_v27  ;;  %v5997_v54 = vpop.permute.xlu1 %5996  ;;  %v6389_v46 = vpop.permute.xlu0 %6388 }
 0x4ae   :  { %5811 = vmatpush1.msra.mxu1 %v20998_v18  ;;  %5874 = vmatprep.mubr.f32.mxu1 %v20218_v4  ;;  %v6009_v38 = vsel %vm2227_vm6, %v5997_v54, %v5999_v12  ;;  %v6008_v34 = vsel %vm2227_vm6, %v5995_v24, %v5997_v54  ;;  %v6408_v45 = vsel %vm2634_vm7, %v6389_v46, %v6391_v35 }
 0x4af   :  { %19510 = vmatprep.subr.mxu1 %v20218_v4 }
 0x4b1   :  { %19166 = vmatmul.mubr.msk.f32.vlgmr.msra.gmra.mrb[16].mxu1 %vm249_vm1, %v19162_v27  ;;  %v6001_v63 = vpop.permute.xlu1 %6000  ;;  %v6397_v19 = vpop.permute.xlu0 %6396 }
 0x4b2   :  { %19511 = vmatpush3.msra.mxu1 %v21005_v30  ;;  %19512 = vmatprep.mubr.msk.f32.mxu1 %vm20225_vm3, %v20218_v4  ;;  %v19168_v30 = vld [vmem:[%s22758_s5 + $0x28] sm:$0xff]  ;;  %v6010_v42 = vsel %vm2227_vm6, %v5999_v12, %v6001_v63 }
 0x4b3   :  { %6023 = vmatprep.subr.mxu1 %v6003_v49 }
 0x4b5   :  { %19513 = vmatmul.mubr.msk.f32.vlgmr.msra.gmra.mrb[18].mxu1 %vm249_vm1, %v19162_v27  ;;  %v6393_v18 = vpop.permute.xlu1 %6392  ;;  %v6401_v15 = vpop.permute.xlu0 %6400 }
 0x4b6   :  { %6024 = vmatpush1.msra.mxu1 %v6002_v25  ;;  %6087 = vmatprep.mubr.f32.mxu1 %v20218_v4  ;;  %v6409_v44 = vsel %vm2634_vm7, %v6391_v35, %v6393_v18 }
 0x4b7   :  { %6094 = vmatprep.subr.mxu1 %v6005_v5  ;;  %v19186_v5 = vld [vmem:[%s22758_s5 + $0x40] sm:$0xff]  ;;  %s20236_s5 = smov 78  }
 0x4b9   :  { %19169 = vmatmul.mubr.msk.f32.vlgmr.msra.gmra.mrb[10].mxu1 %vm249_vm1, %v19168_v30  ;;  %v6395_v2 = vpop.permute.xlu1 %6394  ;;  %v6405_v0 = vpop.permute.xlu0 %6404 }
 0x4ba   :  { %6095 = vmatpush1.msra.mxu1 %v6004_v26  ;;  %6158 = vmatprep.mubr.f32.mxu1 %v20218_v4  ;;  %v6411_v48 = vsel %vm2634_vm7, %v6395_v2, %v6397_v19  ;;  %v6410_v13 = vsel %vm2634_vm7, %v6393_v18, %v6395_v2 }
 0x4bb   :  { %6165 = vmatprep.subr.mxu1 %v6007_v31 }
 0x4bd   :  { %19170 = vmatmul.mubr.msk.f32.vlgmr.msra.gmra.mrb[12].mxu1 %vm249_vm1, %v19168_v30  ;;  %v6399_v36 = vpop.permute.xlu1 %6398  ;;  %v6797_v40 = vpop.permute.xlu0 %6796 }
 0x4be   :  { %6166 = vmatpush1.msra.mxu1 %v6006_v33  ;;  %6229 = vmatprep.mubr.f32.mxu1 %v20218_v4  ;;  %v6413_v11 = vsel %vm2634_vm7, %v6399_v36, %v6401_v15  ;;  %v6412_v17 = vsel %vm2634_vm7, %v6397_v19, %v6399_v36 }
 0x4bf   :  { %6236 = vmatprep.subr.mxu1 %v6009_v38 }
 0x4c1   :  { %19171 = vmatmul.mubr.msk.f32.vlgmr.msra.gmra.mrb[14].mxu1 %vm249_vm1, %v19168_v30  ;;  %v6403_v39 = vpop.permute.xlu1 %6402  ;;  %v6795_v47 = vpop.permute.xlu0 %6794 }
 0x4c2   :  { %6237 = vmatpush1.msra.mxu1 %v6008_v34  ;;  %6300 = vmatprep.mubr.f32.mxu1 %v20218_v4  ;;  %v6415_v51 = vsel %vm2634_vm7, %v6403_v39, %v6405_v0  ;;  %v6414_v23 = vsel %vm2634_vm7, %v6401_v15, %v6403_v39  ;;  %v6814_v61 = vsel %vm3041_vm8, %v6795_v47, %v6797_v40 }
 0x4c3   :  { %19515 = vmatprep.subr.mxu1 %v20218_v4 }
 0x4c5   :  { %19172 = vmatmul.mubr.msk.f32.vlgmr.msra.gmra.mrb[16].mxu1 %vm249_vm1, %v19168_v30  ;;  %v6407_v43 = vpop.permute.xlu1 %6406 }
 0x4c6   :  { %19516 = vmatpush3.msra.mxu1 %v6010_v42  ;;  %19517 = vmatprep.mubr.msk.f32.mxu1 %vm20225_vm3, %v20218_v4  ;;  %v6803_v50 = vpop.permute.xlu0 %6802  ;;  %v6416_v8 = vsel %vm2634_vm7, %v6405_v0, %v6407_v43 }
 0x4c7   :  { %6429 = vmatprep.subr.mxu1 %v6409_v44 }
 0x4c9   :  { %19518 = vmatmul.mubr.msk.f32.vlgmr.msra.gmra.mrb[18].mxu1 %vm249_vm1, %v19168_v30  ;;  %v6799_v1 = vpop.permute.xlu1 %6798 }
 0x4ca   :  { %6430 = vmatpush1.msra.mxu1 %v6408_v45  ;;  %6493 = vmatprep.mubr.f32.mxu1 %v20218_v4  ;;  %v6807_v53 = vpop.permute.xlu0 %6806  ;;  %v6815_v56 = vsel %vm3041_vm8, %v6797_v40, %v6799_v1 }
 0x4cb   :  { %6500 = vmatprep.subr.mxu1 %v6411_v48 }
 0x4cd   :  { %19175 = vmatmul.mubr.msk.f32.vlgmr.msra.gmra.mrb[10].mxu1 %vm249_vm1, %v19174_v6  ;;  %v6801_v9 = vpop.permute.xlu1 %6800 }
 0x4ce   :  { %6501 = vmatpush1.msra.mxu1 %v6410_v13  ;;  %6564 = vmatprep.mubr.f32.mxu1 %v20218_v4  ;;  %v6811_v59 = vpop.permute.xlu0 %6810  ;;  %v6817_v62 = vsel %vm3041_vm8, %v6801_v9, %v6803_v50  ;;  %v6816_v21 = vsel %vm3041_vm8, %v6799_v1, %v6801_v9 }
 0x4cf   :  { %6571 = vmatprep.subr.mxu1 %v6413_v11 }
 0x4d1   :  { %19176 = vmatmul.mubr.msk.f32.vlgmr.msra.gmra.mrb[12].mxu1 %vm249_vm1, %v19174_v6  ;;  %v6805_v52 = vpop.permute.xlu1 %6804 }
 0x4d2   :  { %6572 = vmatpush1.msra.mxu1 %v6412_v17  ;;  %6635 = vmatprep.mubr.f32.mxu1 %v20218_v4  ;;  %v7203_v20 = vpop.permute.xlu0 %7202  ;;  %v6819_v24 = vsel %vm3041_vm8, %v6805_v52, %v6807_v53  ;;  %v6818_v29 = vsel %vm3041_vm8, %v6803_v50, %v6805_v52 }
 0x4d3   :  { %6642 = vmatprep.subr.mxu1 %v6415_v51 }
 0x4d5   :  { %19177 = vmatmul.mubr.msk.f32.vlgmr.msra.gmra.mrb[14].mxu1 %vm249_vm1, %v19174_v6  ;;  %v6809_v55 = vpop.permute.xlu1 %6808 }
 0x4d6   :  { %6643 = vmatpush1.msra.mxu1 %v6414_v23  ;;  %6706 = vmatprep.mubr.f32.mxu1 %v20218_v4  ;;  %v6821_v12 = vsel %vm3041_vm8, %v6809_v55, %v6811_v59  ;;  %v7201_v37 = vpop.permute.xlu0 %7200  ;;  %v6820_v35 = vsel %vm3041_vm8, %v6807_v53, %v6809_v55 }
 0x4d7   :  { %19520 = vmatprep.subr.mxu1 %v20218_v4  ;;  %v7220_v49 = vsel %vm3448_vm9, %v7201_v37, %v7203_v20 }
 0x4d9   :  { %19178 = vmatmul.mubr.msk.f32.vlgmr.msra.gmra.mrb[16].mxu1 %vm249_vm1, %v19174_v6  ;;  %v6813_v41 = vpop.permute.xlu1 %6812 }
 0x4da   :  { %19521 = vmatpush3.msra.mxu1 %v6416_v8  ;;  %19522 = vmatprep.mubr.msk.f32.mxu1 %vm20225_vm3, %v20218_v4  ;;  %v7209_v46 = vpop.permute.xlu0 %7208  ;;  %v6822_v63 = vsel %vm3041_vm8, %v6811_v59, %v6813_v41 }
 0x4db   :  { %6835 = vmatprep.subr.mxu1 %v6815_v56 }
 0x4dd   :  { %19523 = vmatmul.mubr.msk.f32.vlgmr.msra.gmra.mrb[18].mxu1 %vm249_vm1, %v19174_v6  ;;  %v7205_v27 = vpop.permute.xlu1 %7204 }
 0x4de   :  { %6836 = vmatpush1.msra.mxu1 %v6814_v61  ;;  %6899 = vmatprep.mubr.f32.mxu1 %v20218_v4  ;;  %v7221_v19 = vsel %vm3448_vm9, %v7203_v20, %v7205_v27  ;;  %v7213_v30 = vpop.permute.xlu0 %7212 }
 0x4df   :  { %6906 = vmatprep.subr.mxu1 %v6817_v62 }
 0x4e1   :  { %19181 = vmatmul.mubr.msk.f32.vlgmr.msra.gmra.mrb[10].mxu1 %vm249_vm1, %v19180_v16  ;;  %v7207_v54 = vpop.permute.xlu1 %7206 }
 0x4e2   :  { %6907 = vmatpush1.msra.mxu1 %v6816_v21  ;;  %6970 = vmatprep.mubr.f32.mxu1 %v20218_v4  ;;  %v7223_v18 = vsel %vm3448_vm9, %v7207_v54, %v7209_v46  ;;  %v7222_v15 = vsel %vm3448_vm9, %v7205_v27, %v7207_v54  ;;  %v7217_v31 = vpop.permute.xlu0 %7216 }
 0x4e3   :  { %6977 = vmatprep.subr.mxu1 %v6819_v24 }
 0x4e5   :  { %19182 = vmatmul.mubr.msk.f32.vlgmr.msra.gmra.mrb[12].mxu1 %vm249_vm1, %v19180_v16  ;;  %v7211_v25 = vpop.permute.xlu1 %7210 }
 0x4e6   :  { %6978 = vmatpush1.msra.mxu1 %v6818_v29  ;;  %7041 = vmatprep.mubr.f32.mxu1 %v20218_v4  ;;  %v7225_v26 = vsel %vm3448_vm9, %v7211_v25, %v7213_v30  ;;  %v7224_v0 = vsel %vm3448_vm9, %v7209_v46, %v7211_v25 }
 0x4e7   :  { %7048 = vmatprep.subr.mxu1 %v6821_v12 }
 0x4e9   :  { %19183 = vmatmul.mubr.msk.f32.vlgmr.msra.gmra.mrb[14].mxu1 %vm249_vm1, %v19180_v16  ;;  %v7215_v2 = vpop.permute.xlu1 %7214 }
 0x4ea   :  { %7049 = vmatpush1.msra.mxu1 %v6820_v35  ;;  %7112 = vmatprep.mubr.f32.mxu1 %v20218_v4  ;;  %v7227_v33 = vsel %vm3448_vm9, %v7215_v2, %v7217_v31  ;;  %v7226_v36 = vsel %vm3448_vm9, %v7213_v30, %v7215_v2 }
 0x4eb   :  { %19525 = vmatprep.subr.mxu1 %v20218_v4 }
 0x4ed   :  { %19184 = vmatmul.mubr.msk.f32.vlgmr.msra.gmra.mrb[16].mxu1 %vm249_vm1, %v19180_v16  ;;  %v7219_v38 = vpop.permute.xlu1 %7218 }
 0x4ee   :  { %19526 = vmatpush3.msra.mxu1 %v6822_v63  ;;  %19527 = vmatprep.mubr.msk.f32.mxu1 %vm20225_vm3, %v20218_v4  ;;  %v7228_v34 = vsel %vm3448_vm9, %v7217_v31, %v7219_v38 }
 0x4ef   :  { %7241 = vmatprep.subr.mxu1 %v7221_v19  ;;  %v21412_v19 = vld [vmem:[%s22776_s26 + $0x8] ss:$0 sm:$0xff] }
 0x4f1   :  { %19528 = vmatmul.mubr.msk.f32.vlgmr.msra.gmra.mrb[18].mxu1 %vm249_vm1, %v19180_v16 }
 0x4f2   :  { %7242 = vmatpush1.msra.mxu1 %v7220_v49  ;;  %7305 = vmatprep.mubr.f32.mxu1 %v20218_v4 }
 0x4f3   :  { %7312 = vmatprep.subr.mxu1 %v7223_v18 }
 0x4f5   :  { %19187 = vmatmul.mubr.msk.f32.vlgmr.msra.gmra.mrb[10].mxu1 %vm249_vm1, %v19186_v5 }
 0x4f6   :  { %7313 = vmatpush1.msra.mxu1 %v7222_v15  ;;  %7376 = vmatprep.mubr.f32.mxu1 %v20218_v4 }
 0x4f7   :  { %7383 = vmatprep.subr.mxu1 %v7225_v26 }
 0x4f9   :  { %19188 = vmatmul.mubr.msk.f32.vlgmr.msra.gmra.mrb[12].mxu1 %vm249_vm1, %v19186_v5 }
 0x4fa   :  { %7384 = vmatpush1.msra.mxu1 %v7224_v0  ;;  %7447 = vmatprep.mubr.f32.mxu1 %v20218_v4 }
 0x4fb   :  { %7454 = vmatprep.subr.mxu1 %v7227_v33 }
 0x4fd   :  { %19189 = vmatmul.mubr.msk.f32.vlgmr.msra.gmra.mrb[14].mxu1 %vm249_vm1, %v19186_v5 }
 0x4fe   :  { %7455 = vmatpush1.msra.mxu1 %v7226_v36  ;;  %7518 = vmatprep.mubr.f32.mxu1 %v20218_v4 }
 0x4ff   :  { %19530 = vmatprep.subr.mxu1 %v20218_v4 }
 0x501   :  { %19190 = vmatmul.mubr.msk.f32.vlgmr.msra.gmra.mrb[16].mxu1 %vm249_vm1, %v19186_v5 }
 0x502   :  { %19531 = vmatpush3.msra.mxu1 %v7228_v34  ;;  %19532 = vmatprep.mubr.msk.f32.mxu1 %vm20225_vm3, %v20218_v4 }
 0x505   :  { %19533 = vmatmul.mubr.msk.f32.vlgmr.msra.gmra.mrb[18].mxu1 %vm249_vm1, %v19186_v5 }
 0x506   :  { %11646 = vmatprep.mubr.f32.mxu1 %v20218_v4 }
 0x5c8   :  { %v7307_v39 = vpop.f32.mrb[10].mxu1 }
 0x5c9   :  { %v21362_v40 = vmul.f32 %v7307_v39, %v20874_v57  ;;  %v7309_v42 = vpop.f32.mrb[11].mxu1  ;;  %v7652_v39 = vstv %s19192_s10 }
 0x5ca   :  { %v21365_v43 = vmul.f32 %v7309_v42, %v20876_v60  ;;  %v7649_v42 = vld [vmem:[%s22759_s6] sm:$0xff]  ;;  %s20230_s6 = smov 50  }
 0x5cb   :  { %v7623_v44 = vmul.f32 %v21362_v40, %v21362_v40 }
 0x5cc   :  { %v7613_v45 = vadd.f32 %v21365_v43, %v21362_v40  ;;  %v7624_v47 = vmul.f32 %v21365_v43, %v21365_v43  ;;  %v7378_v1 = vpop.f32.mrb[12].mxu1 }
 0x5cd   :  { %v21374_v48 = vmul.f32 %v7378_v1, %v20878_v10  ;;  %v7380_v6 = vpop.f32.mrb[13].mxu1  ;;  %v7655_v1 = vstv %s7650_s28  ;;  %s19246_s28 = sld [smem:[#allocation9 + $0x1]] }
 0x5ce   :  { %v7632_v13 = vadd.f32 %v7624_v47, %v7623_v44  ;;  %v21377_v9 = vmul.f32 %v7380_v6, %v20883_v14  ;;  %v7653_v44 = vmul.f32 %v7652_v39, %v7649_v42 }
 0x5cf   :  { %v7614_v11 = vadd.f32 %v7613_v45, %v21374_v48  ;;  %v7625_v50 = vmul.f32 %v21374_v48, %v21374_v48 }
 0x5d0   :  { %v7626_v17 = vmul.f32 %v21377_v9, %v21377_v9  ;;  %v7449_v51 = vpop.f32.mrb[14].mxu1 }
 0x5d1   :  { %v7633_v52 = vadd.f32 %v7632_v13, %v7625_v50  ;;  %v7615_v53 = vadd.f32 %v7614_v11, %v21377_v9  ;;  %v21386_v23 = vmul.f32 %v7449_v51, %v20900_v28  ;;  %v7451_v8 = vpop.f32.mrb[15].mxu1 }
 0x5d2   :  { %v21389_v55 = vmul.f32 %v7451_v8, %v20907_v3 }
 0x5d3   :  { %v7634_v56 = vadd.f32 %v7633_v52, %v7626_v17  ;;  %v7616_v59 = vadd.f32 %v7615_v53, %v21386_v23  ;;  %v7627_v61 = vmul.f32 %v21386_v23, %v21386_v23 }
 0x5d4   :  { %v7628_v62 = vmul.f32 %v21389_v55, %v21389_v55  ;;  %v7520_v16 = vpop.f32.mrb[16].mxu1 }
 0x5d5   :  { %v7635_v41 = vadd.f32 %v7634_v56, %v7627_v61  ;;  %v7617_v20 = vadd.f32 %v7616_v59, %v21389_v55  ;;  %v21398_v21 = vmul.f32 %v7520_v16, %v20909_v32  ;;  %v7522_v24 = vpop.f32.mrb[17].mxu1 }
 0x5d6   :  { %v21401_v27 = vmul.f32 %v7522_v24, %v20915_v7 }
 0x5d7   :  { %v7636_v29 = vadd.f32 %v7635_v41, %v7628_v62  ;;  %v7618_v12 = vadd.f32 %v7617_v20, %v21398_v21  ;;  %v7629_v37 = vmul.f32 %v21398_v21, %v21398_v21 }
 0x5d8   :  { %v7630_v35 = vmul.f32 %v21401_v27, %v21401_v27  ;;  %v7591_v54 = vpop.f32.mrb[18].mxu1 }
 0x5d9   :  { %v7637_v46 = vadd.f32 %v7636_v29, %v7629_v37  ;;  %v7619_v63 = vadd.f32 %v7618_v12, %v21401_v27  ;;  %v21415_v49 = vmul.f32 %v21412_v19, %v7591_v54  ;;  %v19534_v25 = vpop.f32.mrb[19].mxu1 }
 0x5db   :  { %v7631_v18 = vmul.f32 %v21415_v49, %v21415_v49  ;;  %v7620_v5 = vadd.f32 %v7619_v63, %v21415_v49  ;;  %v7638_v30 = vadd.f32 %v7637_v46, %v7630_v35 }
 0x5dd   :  { %7621 = vadd.xlane.f32.xlu0 %v7620_v5  ;;  %v7639_v15 = vadd.f32 %v7638_v30, %v7631_v18 }
 0x5df   :  { %7640 = vadd.xlane.f32.xlu1 %v7639_v15 }
 0x66a   :  { %v7622_v26 = vpop.xlane.xlu0 %7621 }
 0x66b   :  { %v7642_v2 = vmul.f32 0.001953125, %v7622_v26 }
 0x66c   :  { %v7641_v31 = vpop.xlane.xlu1 %7640 }
 0x66d   :  { %v7644_v0 = vmul.f32 %v7642_v2, %v7642_v2  ;;  %v7643_v33 = vmul.f32 0.001953125, %v7641_v31  ;;  %v7657_v45 = vmul.f32 %v7649_v42, %v7642_v2 }
 0x66f   :  { %v7645_v36 = vsub.f32 %v7643_v33, %v7644_v0 }
 0x671   :  { %v7646_v38 = vmax.f32 %v7645_v36, 0.0 }
 0x673   :  { %v7647_v34 = vadd.f32 1e-05, %v7646_v38 }
 0x675   :  { %20110 = vrsqrt.f32 %v7647_v34 }
 0x67f   :  { %v20111_v47 = vpop.eup %20110 }
 0x680   :  { %v7658_v6 = vmul.f32 %v20111_v47, %v7657_v45  ;;  %v7654_v13 = vmul.f32 %v20111_v47, %v7653_v44 }
 0x682   :  { %7660 = vrot.lane.b32.xlu0 %v7658_v6, %s20221_s18  ;;  %v7656_v11 = vadd.f32 %v7655_v1, %v7654_v13 }
 0x684   :  { %7667 = vperm.xlu1 %20103, %v7656_v11  }
 0x688   :  { %7761 = vrot.lane.b32.xlu1 %v20218_v4, %s20229_s30 }
 0x6f4   :  { %v7661_v50 = vpop.permute.xlu0 %7660 }
 0x6f5   :  { %v7663_v17 = vsub.f32 %v7649_v42, %v7661_v50 }
 0x6f7   :  { %v7664_v51 = vmul.f32 %v7663_v17, %v7652_v39 }
 0x6f9   :  { %7681 = vperm.xlu0 %20104, %v7664_v51   ;;  %v19193_v51 = vld [vmem:[%s22761_s8 + $0x8] sm:$0xff] }
 0x703   :  { %v7668_v52 = vpop.permute.xlu1 %7667 }
 0x704   :  { %v7670_v53 = vmul.f32 %v7668_v52, %v21362_v40  ;;  %v7671_v8 = vmul.f32 %v7668_v52, %v21365_v43  ;;  %v7672_v59 = vmul.f32 %v7668_v52, %v21374_v48  ;;  %v7673_v61 = vmul.f32 %v7668_v52, %v21377_v9 }
 0x705   :  { %v7674_v24 = vmul.f32 %v7668_v52, %v21386_v23  ;;  %v7675_v29 = vmul.f32 %v7668_v52, %v21389_v55  ;;  %v7676_v40 = vmul.f32 %v7668_v52, %v21398_v21  ;;  %v7677_v9 = vmul.f32 %v7668_v52, %v21401_v27 }
 0x706   :  { %v7678_v26 = vmul.f32 %v7668_v52, %v21415_v49 }
 0x778   :  { %v7682_v56 = vpop.permute.xlu0 %7681 }
 0x779   :  { %v7684_v62 = vadd.f32 %v7682_v56, %v7670_v53  ;;  %v7685_v16 = vadd.f32 %v7682_v56, %v7671_v8  ;;  %v7686_v41 = vadd.f32 %v7682_v56, %v7672_v59  ;;  %v7687_v20 = vadd.f32 %v7682_v56, %v7673_v61 }
 0x77a   :  { %v7688_v43 = vadd.f32 %v7682_v56, %v7674_v24  ;;  %v7689_v35 = vadd.f32 %v7682_v56, %v7675_v29  ;;  %v7690_v25 = vadd.f32 %v7682_v56, %v7676_v40  ;;  %v7691_v23 = vadd.f32 %v7682_v56, %v7677_v9 }
 0x77b   :  { %vm7693_vm13 = vcmp.ge.f32.partialorder %v7684_v62, 0.0  ;;  %vm7694_vm14 = vcmp.ge.f32.partialorder %v7685_v16, 0.0  ;;  %v7702_v12 = vmul.f32 0.2, %v7684_v62  ;;  %v7703_v37 = vmul.f32 0.2, %v7685_v16 }
 0x77c   :  { %v7704_v54 = vmul.f32 0.2, %v7686_v41  ;;  %v7705_v48 = vmul.f32 0.2, %v7687_v20  ;;  %vm7695_vm15 = vcmp.ge.f32.partialorder %v7686_v41, 0.0  ;;  %vm7696_vm10 = vcmp.ge.f32.partialorder %v7687_v20, 0.0 }
 0x77d   :  { %v7711_v46 = vsel %vm7693_vm13, %v7684_v62, %v7702_v12  ;;  %v7712_v63 = vsel %vm7694_vm14, %v7685_v16, %v7703_v37  ;;  %v7706_v5 = vmul.f32 0.2, %v7688_v43  ;;  %v7707_v21 = vmul.f32 0.2, %v7689_v35 }
 0x77e   :  { %v21435_v18 = vmul.f32 %v7711_v46, %v20874_v57  ;;  %v21438_v55 = vmul.f32 %v7712_v63, %v20876_v60  ;;  %v7713_v30 = vsel %vm7695_vm15, %v7686_v41, %v7704_v54  ;;  %v7714_v15 = vsel %vm7696_vm10, %v7687_v20, %v7705_v48  ;;  %v7748_v46 = vld [vmem:[%s22761_s8] sm:$0xff] }
 0x77f   :  { %vm7697_vm11 = vcmp.ge.f32.partialorder %v7688_v43, 0.0  ;;  %vm7698_vm12 = vcmp.ge.f32.partialorder %v7689_v35, 0.0  ;;  %v7692_v27 = vadd.f32 %v7682_v56, %v7678_v26  ;;  %v21446_v2 = vmul.f32 %v7713_v30, %v20878_v10 }
 0x780   :  { %7765 = vrot.lane.b32.xlu0 %v21438_v55, %s20229_s30  ;;  %7763 = vrot.lane.b32.xlu1 %v21435_v18, %s20229_s30  ;;  %v21449_v31 = vmul.f32 %v7714_v15, %v20883_v14  ;;  %v7708_v0 = vmul.f32 0.2, %v7690_v25  ;;  %v7709_v33 = vmul.f32 0.2, %v7691_v23  ;;  %v7715_v36 = vsel %vm7697_vm11, %v7688_v43, %v7706_v5 }
 0x781   :  { %v7716_v38 = vsel %vm7698_vm12, %v7689_v35, %v7707_v21  ;;  %vm7699_vm13 = vcmp.ge.f32.partialorder %v7690_v25, 0.0  ;;  %vm7700_vm14 = vcmp.ge.f32.partialorder %v7691_v23, 0.0  ;;  %v21456_v49 = vmul.f32 %v7715_v36, %v20900_v28 }
 0x782   :  { %v21459_v34 = vmul.f32 %v7716_v38, %v20907_v3  ;;  %v7710_v39 = vmul.f32 0.2, %v7692_v27  ;;  %v7717_v42 = vsel %vm7699_vm13, %v7690_v25, %v7708_v0  ;;  %v7718_v44 = vsel %vm7700_vm14, %v7691_v23, %v7709_v33 }
 0x783   :  { %vm7701_vm15 = vcmp.ge.f32.partialorder %v7692_v27, 0.0  ;;  %v21466_v45 = vmul.f32 %v7717_v42, %v20909_v32  ;;  %v21469_v47 = vmul.f32 %v7718_v44, %v20915_v7  ;;  %vm7781_vm10 = vcmask 392192  }
 0x784   :  { %7767 = vrot.lane.b32.xlu0 %v21446_v2, %s20229_s30  ;;  %7769 = vrot.lane.b32.xlu1 %v21449_v31, %s20229_s30  ;;  %v7719_v1 = vsel %vm7701_vm15, %v7692_v27, %v7710_v39  ;;  %vm8177_vm11 = vcmask 408576   ;;  %vm8575_vm12 = vcmask 375808   ;;  %vm8982_vm13 = vcmask 15360  }
 0x785   :  { %v21476_v6 = vmul.f32 %v21412_v19, %v7719_v1  ;;  %v7762_v19 = vpop.permute.xlu1 %7761  ;;  %vm9777_vm14 = vcmask 1031168   ;;  %vm10184_vm15 = vcmask 670720  }
 0x788   :  { %7771 = vrot.lane.b32.xlu0 %v21456_v49, %s20229_s30  ;;  %7773 = vrot.lane.b32.xlu1 %v21459_v34, %s20229_s30 }
 0x78c   :  { %7775 = vrot.lane.b32.xlu0 %v21466_v45, %s20229_s30  ;;  %7777 = vrot.lane.b32.xlu1 %v21469_v47, %s20229_s30 }
 0x790   :  { %7779 = vrot.lane.b32.xlu0 %v21476_v6, %s20229_s30  ;;  %8157 = vrot.lane.b32.xlu1 %v20218_v4, %s20230_s6 }
 0x794   :  { %8161 = vrot.lane.b32.xlu0 %v21438_v55, %s20230_s6  ;;  %8159 = vrot.lane.b32.xlu1 %v21435_v18, %s20230_s6 }
 0x798   :  { %8163 = vrot.lane.b32.xlu0 %v21446_v2, %s20230_s6  ;;  %8165 = vrot.lane.b32.xlu1 %v21449_v31, %s20230_s6 }
 0x79c   :  { %8167 = vrot.lane.b32.xlu0 %v21456_v49, %s20230_s6  ;;  %8169 = vrot.lane.b32.xlu1 %v21459_v34, %s20230_s6 }
 0x7a0   :  { %8171 = vrot.lane.b32.xlu0 %v21466_v45, %s20230_s6  ;;  %8173 = vrot.lane.b32.xlu1 %v21469_v47, %s20230_s6 }
 0x7a4   :  { %8175 = vrot.lane.b32.xlu0 %v21476_v6, %s20230_s6  ;;  %8555 = vrot.lane.b32.xlu1 %v20218_v4, %s20231_s1  ;;  %s20237_s6 = smov 96  }
 0x7a8   :  { %8559 = vrot.lane.b32.xlu0 %v21438_v55, %s20231_s1  ;;  %8557 = vrot.lane.b32.xlu1 %v21435_v18, %s20231_s1 }
 0x7ac   :  { %8561 = vrot.lane.b32.xlu0 %v21446_v2, %s20231_s1  ;;  %8563 = vrot.lane.b32.xlu1 %v21449_v31, %s20231_s1 }
 0x7b0   :  { %8565 = vrot.lane.b32.xlu0 %v21456_v49, %s20231_s1  ;;  %8567 = vrot.lane.b32.xlu1 %v21459_v34, %s20231_s1 }
 0x7b4   :  { %8569 = vrot.lane.b32.xlu0 %v21466_v45, %s20231_s1  ;;  %8571 = vrot.lane.b32.xlu1 %v21469_v47, %s20231_s1 }
 0x7b8   :  { %8573 = vrot.lane.b32.xlu0 %v21476_v6, %s20231_s1  ;;  %8962 = vrot.lane.b32.xlu1 %v20218_v4, %s20232_s20  ;;  %s20239_s1 = smov 92  }
 0x7bc   :  { %8966 = vrot.lane.b32.xlu0 %v21438_v55, %s20232_s20  ;;  %8964 = vrot.lane.b32.xlu1 %v21435_v18, %s20232_s20 }
 0x7c0   :  { %8968 = vrot.lane.b32.xlu0 %v21446_v2, %s20232_s20  ;;  %8970 = vrot.lane.b32.xlu1 %v21449_v31, %s20232_s20 }
 0x7c4   :  { %8972 = vrot.lane.b32.xlu0 %v21456_v49, %s20232_s20  ;;  %8974 = vrot.lane.b32.xlu1 %v21459_v34, %s20232_s20 }
 0x7c8   :  { %8976 = vrot.lane.b32.xlu0 %v21466_v45, %s20232_s20  ;;  %8978 = vrot.lane.b32.xlu1 %v21469_v47, %s20232_s20 }
 0x7cc   :  { %8980 = vrot.lane.b32.xlu0 %v21476_v6, %s20232_s20  ;;  %9759 = vrot.lane.b32.xlu1 %v21438_v55, %s20233_s3  ;;  %s20240_s20 = smov 4  }
 0x7d0   :  { %9761 = vrot.lane.b32.xlu0 %v21446_v2, %s20233_s3  ;;  %9757 = vrot.lane.b32.xlu1 %v21435_v18, %s20233_s3 }
 0x7d4   :  { %9763 = vrot.lane.b32.xlu0 %v21449_v31, %s20233_s3  ;;  %9765 = vrot.lane.b32.xlu1 %v21456_v49, %s20233_s3 }
 0x7d8   :  { %9767 = vrot.lane.b32.xlu0 %v21459_v34, %s20233_s3  ;;  %9769 = vrot.lane.b32.xlu1 %v21466_v45, %s20233_s3 }
 0x7dc   :  { %9771 = vrot.lane.b32.xlu0 %v21469_v47, %s20233_s3  ;;  %9773 = vrot.lane.b32.xlu1 %v21476_v6, %s20233_s3 }
 0x7e0   :  { %9775 = vrot.lane.b32.xlu0 %v20218_v4, %s20233_s3  ;;  %10166 = vrot.lane.b32.xlu1 %v21438_v55, %s20234_s21  ;;  %s20241_s3 = smov 124  }
 0x7e4   :  { %10168 = vrot.lane.b32.xlu0 %v21446_v2, %s20234_s21  ;;  %10164 = vrot.lane.b32.xlu1 %v21435_v18, %s20234_s21 }
 0x7e8   :  { %10170 = vrot.lane.b32.xlu0 %v21449_v31, %s20234_s21  ;;  %10172 = vrot.lane.b32.xlu1 %v21456_v49, %s20234_s21 }
 0x7ec   :  { %10174 = vrot.lane.b32.xlu0 %v21459_v34, %s20234_s21  ;;  %10176 = vrot.lane.b32.xlu1 %v21466_v45, %s20234_s21 }
 0x7f0   :  { %10178 = vrot.lane.b32.xlu0 %v21469_v47, %s20234_s21  ;;  %10180 = vrot.lane.b32.xlu1 %v21476_v6, %s20234_s21 }
 0x7f2   :  { %v7766_v13 = vpop.permute.xlu0 %7765  ;;  %v7764_v11 = vpop.permute.xlu1 %7763 }
 0x7f3   :  { %v7783_v50 = vsel %vm7781_vm10, %v7764_v11, %v7766_v13  ;;  %v7782_v17 = vsel %vm7781_vm10, %v7762_v19, %v7764_v11 }
 0x7f4   :  { %10182 = vrot.lane.b32.xlu0 %v20218_v4, %s20234_s21  ;;  %10573 = vrot.lane.b32.xlu1 %v21438_v55, %s20235_s23  ;;  %s20242_s21 = smov 36  }
 0x7f5   :  { %7803 = vmatprep.subr.mxu0 %v7783_v50 }
 0x7f6   :  { %7804 = vmatpush1.msra.mxu0 %v7782_v17  ;;  %v7768_v52 = vpop.permute.xlu0 %7767  ;;  %v7770_v53 = vpop.permute.xlu1 %7769 }
 0x7f7   :  { %19194 = vmatmul.mubr.msk.f32.vlgmr.msra.gmra.mrb[6].mxu0 %vm249_vm1, %v19193_v51  ;;  %v7785_v8 = vsel %vm7781_vm10, %v7768_v52, %v7770_v53  ;;  %v7784_v56 = vsel %vm7781_vm10, %v7766_v13, %v7768_v52  ;;  %v19204_v13 = vld [vmem:[%s22761_s8 + $0x10] sm:$0xff] }
 0x7f8   :  { %10575 = vrot.lane.b32.xlu0 %v21446_v2, %s20235_s23  ;;  %10571 = vrot.lane.b32.xlu1 %v21435_v18, %s20235_s23 }
 0x7f9   :  { %7874 = vmatprep.subr.mxu0 %v7785_v8  ;;  %7938 = vmatprep.mubr.f32.mxu0 %v20218_v4 }
 0x7fa   :  { %7875 = vmatpush1.msra.mxu0 %v7784_v56  ;;  %v7772_v59 = vpop.permute.xlu0 %7771  ;;  %v7774_v61 = vpop.permute.xlu1 %7773 }
 0x7fb   :  { %19195 = vmatmul.mubr.msk.f32.vlgmr.msra.gmra.mrb[8].mxu0 %vm249_vm1, %v19193_v51  ;;  %v7787_v62 = vsel %vm7781_vm10, %v7772_v59, %v7774_v61  ;;  %v7786_v16 = vsel %vm7781_vm10, %v7770_v53, %v7772_v59 }
 0x7fc   :  { %10577 = vrot.lane.b32.xlu0 %v21449_v31, %s20235_s23  ;;  %10579 = vrot.lane.b32.xlu1 %v21456_v49, %s20235_s23 }
 0x7fd   :  { %7945 = vmatprep.subr.mxu0 %v7787_v62  ;;  %8009 = vmatprep.mubr.f32.mxu0 %v20218_v4 }
 0x7fe   :  { %7946 = vmatpush1.msra.mxu0 %v7786_v16  ;;  %v7776_v41 = vpop.permute.xlu0 %7775  ;;  %v7778_v20 = vpop.permute.xlu1 %7777 }
 0x7ff   :  { %19196 = vmatmul.mubr.msk.f32.vlgmr.msra.gmra.mrb[10].mxu0 %vm249_vm1, %v19193_v51  ;;  %v7789_v24 = vsel %vm7781_vm10, %v7776_v41, %v7778_v20  ;;  %v7788_v29 = vsel %vm7781_vm10, %v7774_v61, %v7776_v41 }
 0x800   :  { %10581 = vrot.lane.b32.xlu0 %v21459_v34, %s20235_s23  ;;  %10583 = vrot.lane.b32.xlu1 %v21466_v45, %s20235_s23 }
 0x801   :  { %8016 = vmatprep.subr.mxu0 %v7789_v24  ;;  %8080 = vmatprep.mubr.f32.mxu0 %v20218_v4 }
 0x802   :  { %8017 = vmatpush1.msra.mxu0 %v7788_v29  ;;  %v7780_v12 = vpop.permute.xlu0 %7779  ;;  %v8158_v37 = vpop.permute.xlu1 %8157 }
 0x803   :  { %v7790_v40 = vsel %vm7781_vm10, %v7778_v20, %v7780_v12  ;;  %19197 = vmatmul.mubr.msk.f32.vlgmr.msra.gmra.mrb[12].mxu0 %vm249_vm1, %v19193_v51  ;;  %19535 = vmatprep.subr.mxu0 %v20218_v4  ;;  %vm10591_vm10 = vcmask 654336  }
 0x804   :  { %10585 = vrot.lane.b32.xlu0 %v21469_v47, %s20235_s23  ;;  %10587 = vrot.lane.b32.xlu1 %v21476_v6, %s20235_s23 }
 0x805   :  { %19536 = vmatpush3.msra.mxu0 %v7790_v40  ;;  %19537 = vmatprep.mubr.msk.f32.mxu0 %vm20225_vm3, %v20218_v4 }
 0x806   :  { %v8162_v43 = vpop.permute.xlu0 %8161  ;;  %v8160_v35 = vpop.permute.xlu1 %8159 }
 0x807   :  { %19538 = vmatmul.mubr.msk.f32.vlgmr.msra.gmra.mrb[14].mxu0 %vm249_vm1, %v19193_v51  ;;  %v8179_v54 = vsel %vm8177_vm11, %v8160_v35, %v8162_v43  ;;  %v8178_v48 = vsel %vm8177_vm11, %v8158_v37, %v8160_v35 }
 0x808   :  { %10589 = vrot.lane.b32.xlu0 %v20218_v4, %s20235_s23  ;;  %10980 = vrot.lane.b32.xlu1 %v21438_v55, %s20236_s5  ;;  %s20243_s23 = smov 32  }
 0x809   :  { %8199 = vmatprep.subr.mxu0 %v8179_v54  ;;  %8263 = vmatprep.mubr.f32.mxu0 %v20218_v4 }
 0x80a   :  { %8200 = vmatpush1.msra.mxu0 %v8178_v48  ;;  %v8164_v9 = vpop.permute.xlu0 %8163  ;;  %v8166_v63 = vpop.permute.xlu1 %8165 }
 0x80b   :  { %19199 = vmatmul.mubr.msk.f32.vlgmr.msra.gmra.mrb[6].mxu0 %vm249_vm1, %v7748_v46  ;;  %v8181_v25 = vsel %vm8177_vm11, %v8164_v9, %v8166_v63  ;;  %v8180_v23 = vsel %vm8177_vm11, %v8162_v43, %v8164_v9  ;;  %v19210_v43 = vld [vmem:[%s22761_s8 + $0x18] sm:$0xff] }
 0x80c   :  { %10982 = vrot.lane.b32.xlu0 %v21446_v2, %s20236_s5  ;;  %10978 = vrot.lane.b32.xlu1 %v21435_v18, %s20236_s5 }
 0x80d   :  { %8270 = vmatprep.subr.mxu0 %v8181_v25  ;;  %8334 = vmatprep.mubr.f32.mxu0 %v20218_v4 }
 0x80e   :  { %8271 = vmatpush1.msra.mxu0 %v8180_v23  ;;  %v8168_v5 = vpop.permute.xlu0 %8167  ;;  %v8170_v21 = vpop.permute.xlu1 %8169 }
 0x80f   :  { %19200 = vmatmul.mubr.msk.f32.vlgmr.msra.gmra.mrb[8].mxu0 %vm249_vm1, %v7748_v46  ;;  %v8183_v30 = vsel %vm8177_vm11, %v8168_v5, %v8170_v21  ;;  %v8182_v15 = vsel %vm8177_vm11, %v8166_v63, %v8168_v5 }
 0x810   :  { %10984 = vrot.lane.b32.xlu0 %v21449_v31, %s20236_s5  ;;  %10986 = vrot.lane.b32.xlu1 %v21456_v49, %s20236_s5 }
 0x811   :  { %8341 = vmatprep.subr.mxu0 %v8183_v30  ;;  %8405 = vmatprep.mubr.f32.mxu0 %v20218_v4 }
 0x812   :  { %8342 = vmatpush1.msra.mxu0 %v8182_v15  ;;  %v8172_v26 = vpop.permute.xlu0 %8171  ;;  %v8174_v27 = vpop.permute.xlu1 %8173 }
 0x813   :  { %19201 = vmatmul.mubr.msk.f32.vlgmr.msra.gmra.mrb[10].mxu0 %vm249_vm1, %v7748_v46  ;;  %v8185_v0 = vsel %vm8177_vm11, %v8172_v26, %v8174_v27  ;;  %v8184_v33 = vsel %vm8177_vm11, %v8170_v21, %v8172_v26 }
 0x814   :  { %10988 = vrot.lane.b32.xlu0 %v21459_v34, %s20236_s5  ;;  %10990 = vrot.lane.b32.xlu1 %v21466_v45, %s20236_s5 }
 0x815   :  { %8412 = vmatprep.subr.mxu0 %v8185_v0  ;;  %8476 = vmatprep.mubr.f32.mxu0 %v20218_v4 }
 0x816   :  { %8413 = vmatpush1.msra.mxu0 %v8184_v33  ;;  %v8176_v36 = vpop.permute.xlu0 %8175  ;;  %v8556_v38 = vpop.permute.xlu1 %8555 }
 0x817   :  { %v8186_v39 = vsel %vm8177_vm11, %v8174_v27, %v8176_v36  ;;  %19202 = vmatmul.mubr.msk.f32.vlgmr.msra.gmra.mrb[12].mxu0 %vm249_vm1, %v7748_v46  ;;  %19540 = vmatprep.subr.mxu0 %v20218_v4  ;;  %vm10998_vm11 = vcmask 637952  }
 0x818   :  { %10992 = vrot.lane.b32.xlu0 %v21469_v47, %s20236_s5  ;;  %10994 = vrot.lane.b32.xlu1 %v21476_v6, %s20236_s5 }
 0x819   :  { %19541 = vmatpush3.msra.mxu0 %v8186_v39  ;;  %19542 = vmatprep.mubr.msk.f32.mxu0 %vm20225_vm3, %v20218_v4 }
 0x81a   :  { %v8560_v42 = vpop.permute.xlu0 %8559  ;;  %v8558_v44 = vpop.permute.xlu1 %8557 }
 0x81b   :  { %19543 = vmatmul.mubr.msk.f32.vlgmr.msra.gmra.mrb[14].mxu0 %vm249_vm1, %v7748_v46  ;;  %v8577_v1 = vsel %vm8575_vm12, %v8558_v44, %v8560_v42  ;;  %v8576_v19 = vsel %vm8575_vm12, %v8556_v38, %v8558_v44  ;;  %v19216_v38 = vld [vmem:[%s22761_s8 + $0x20] sm:$0xff] }
 0x81c   :  { %10996 = vrot.lane.b32.xlu0 %v20218_v4, %s20236_s5  ;;  %8597 = vmatprep.subr.mxu0 %v8577_v1  ;;  %s20244_s5 = smov 28  }
 0x81d   :  { %8598 = vmatpush1.msra.mxu0 %v8576_v19  ;;  %8661 = vmatprep.mubr.f32.mxu0 %v20218_v4 }
 0x81e   :  { %v8562_v11 = vpop.permute.xlu0 %8561  ;;  %v8564_v50 = vpop.permute.xlu1 %8563 }
 0x81f   :  { %19205 = vmatmul.mubr.msk.f32.vlgmr.msra.gmra.mrb[6].mxu0 %vm249_vm1, %v19204_v13  ;;  %v8579_v17 = vsel %vm8575_vm12, %v8562_v11, %v8564_v50  ;;  %v8578_v51 = vsel %vm8575_vm12, %v8560_v42, %v8562_v11 }
 0x820   :  { %8668 = vmatprep.subr.mxu0 %v8579_v17  ;;  %8732 = vmatprep.mubr.f32.mxu0 %v20218_v4 }
 0x821   :  { %8669 = vmatpush1.msra.mxu0 %v8578_v51 }
 0x822   :  { %v8566_v52 = vpop.permute.xlu0 %8565  ;;  %v8568_v53 = vpop.permute.xlu1 %8567 }
 0x823   :  { %19206 = vmatmul.mubr.msk.f32.vlgmr.msra.gmra.mrb[8].mxu0 %vm249_vm1, %v19204_v13  ;;  %v8581_v8 = vsel %vm8575_vm12, %v8566_v52, %v8568_v53  ;;  %v8580_v56 = vsel %vm8575_vm12, %v8564_v50, %v8566_v52 }
 0x824   :  { %8739 = vmatprep.subr.mxu0 %v8581_v8  ;;  %8803 = vmatprep.mubr.f32.mxu0 %v20218_v4 }
 0x825   :  { %8740 = vmatpush1.msra.mxu0 %v8580_v56 }
 0x826   :  { %v8570_v59 = vpop.permute.xlu0 %8569  ;;  %v8572_v61 = vpop.permute.xlu1 %8571 }
 0x827   :  { %19207 = vmatmul.mubr.msk.f32.vlgmr.msra.gmra.mrb[10].mxu0 %vm249_vm1, %v19204_v13  ;;  %v8583_v62 = vsel %vm8575_vm12, %v8570_v59, %v8572_v61  ;;  %v8582_v16 = vsel %vm8575_vm12, %v8568_v53, %v8570_v59 }
 0x828   :  { %8810 = vmatprep.subr.mxu0 %v8583_v62  ;;  %8874 = vmatprep.mubr.f32.mxu0 %v20218_v4 }
 0x829   :  { %8811 = vmatpush1.msra.mxu0 %v8582_v16 }
 0x82a   :  { %v8574_v41 = vpop.permute.xlu0 %8573  ;;  %v8963_v20 = vpop.permute.xlu1 %8962  ;;  %19545 = vmatprep.subr.mxu0 %v20218_v4 }
 0x82b   :  { %v8584_v24 = vsel %vm8575_vm12, %v8572_v61, %v8574_v41  ;;  %19208 = vmatmul.mubr.msk.f32.vlgmr.msra.gmra.mrb[12].mxu0 %vm249_vm1, %v19204_v13 }
 0x82c   :  { %19546 = vmatpush3.msra.mxu0 %v8584_v24  ;;  %19547 = vmatprep.mubr.msk.f32.mxu0 %vm20225_vm3, %v20218_v4 }
 0x82e   :  { %v8967_v29 = vpop.permute.xlu0 %8966  ;;  %v8965_v12 = vpop.permute.xlu1 %8964 }
 0x82f   :  { %19548 = vmatmul.mubr.msk.f32.vlgmr.msra.gmra.mrb[14].mxu0 %vm249_vm1, %v19204_v13  ;;  %v8984_v37 = vsel %vm8982_vm13, %v8965_v12, %v8967_v29  ;;  %v8983_v40 = vsel %vm8982_vm13, %v8963_v20, %v8965_v12 }
 0x830   :  { %9004 = vmatprep.subr.mxu0 %v8984_v37  ;;  %9068 = vmatprep.mubr.f32.mxu0 %v20218_v4 }
 0x831   :  { %9005 = vmatpush1.msra.mxu0 %v8983_v40  ;;  %v19228_v40 = vld [vmem:[%s22761_s8 + $0x30] sm:$0xff] }
 0x832   :  { %v8969_v35 = vpop.permute.xlu0 %8968  ;;  %v8971_v54 = vpop.permute.xlu1 %8970 }
 0x833   :  { %19211 = vmatmul.mubr.msk.f32.vlgmr.msra.gmra.mrb[6].mxu0 %vm249_vm1, %v19210_v43  ;;  %v8986_v48 = vsel %vm8982_vm13, %v8969_v35, %v8971_v54  ;;  %v8985_v46 = vsel %vm8982_vm13, %v8967_v29, %v8969_v35 }
 0x834   :  { %9075 = vmatprep.subr.mxu0 %v8986_v48  ;;  %9139 = vmatprep.mubr.f32.mxu0 %v20218_v4 }
 0x835   :  { %9076 = vmatpush1.msra.mxu0 %v8985_v46 }
 0x836   :  { %v8973_v9 = vpop.permute.xlu0 %8972  ;;  %v8975_v63 = vpop.permute.xlu1 %8974 }
 0x837   :  { %19212 = vmatmul.mubr.msk.f32.vlgmr.msra.gmra.mrb[8].mxu0 %vm249_vm1, %v19210_v43  ;;  %v8988_v25 = vsel %vm8982_vm13, %v8973_v9, %v8975_v63  ;;  %v8987_v23 = vsel %vm8982_vm13, %v8971_v54, %v8973_v9 }
 0x838   :  { %9146 = vmatprep.subr.mxu0 %v8988_v25  ;;  %9210 = vmatprep.mubr.f32.mxu0 %v20218_v4 }
 0x839   :  { %9147 = vmatpush1.msra.mxu0 %v8987_v23 }
 0x83a   :  { %v8977_v5 = vpop.permute.xlu0 %8976  ;;  %v8979_v21 = vpop.permute.xlu1 %8978 }
 0x83b   :  { %19213 = vmatmul.mubr.msk.f32.vlgmr.msra.gmra.mrb[10].mxu0 %vm249_vm1, %v19210_v43  ;;  %v8990_v30 = vsel %vm8982_vm13, %v8977_v5, %v8979_v21  ;;  %v8989_v15 = vsel %vm8982_vm13, %v8975_v63, %v8977_v5 }
 0x83c   :  { %9217 = vmatprep.subr.mxu0 %v8990_v30  ;;  %9281 = vmatprep.mubr.f32.mxu0 %v20218_v4 }
 0x83d   :  { %9218 = vmatpush1.msra.mxu0 %v8989_v15 }
 0x83e   :  { %v8981_v26 = vpop.permute.xlu0 %8980  ;;  %v9760_v27 = vpop.permute.xlu1 %9759  ;;  %19550 = vmatprep.subr.mxu0 %v20218_v4 }
 0x83f   :  { %v8991_v0 = vsel %vm8982_vm13, %v8979_v21, %v8981_v26  ;;  %19214 = vmatmul.mubr.msk.f32.vlgmr.msra.gmra.mrb[12].mxu0 %vm249_vm1, %v19210_v43 }
 0x840   :  { %19551 = vmatpush3.msra.mxu0 %v8991_v0  ;;  %19552 = vmatprep.mubr.msk.f32.mxu0 %vm20225_vm3, %v20218_v4  ;;  %v19234_v0 = vld [vmem:[%s22761_s8 + $0x38] sm:$0xff] }
 0x841   :  { %9372 = vmatprep.subr.mxu0 %v21438_v55 }
 0x842   :  { %v9762_v33 = vpop.permute.xlu0 %9761  ;;  %v9758_v36 = vpop.permute.xlu1 %9757 }
 0x843   :  { %19553 = vmatmul.mubr.msk.f32.vlgmr.msra.gmra.mrb[14].mxu0 %vm249_vm1, %v19210_v43 }
 0x844   :  { %9373 = vmatpush1.msra.mxu0 %v21435_v18  ;;  %9436 = vmatprep.mubr.f32.mxu0 %v20218_v4 }
 0x845   :  { %9443 = vmatprep.subr.mxu0 %v21449_v31 }
 0x846   :  { %v9764_v39 = vpop.permute.xlu0 %9763  ;;  %v9766_v42 = vpop.permute.xlu1 %9765 }
 0x847   :  { %19217 = vmatmul.mubr.msk.f32.vlgmr.msra.gmra.mrb[6].mxu0 %vm249_vm1, %v19216_v38  ;;  %v9781_v19 = vsel %vm9777_vm14, %v9764_v39, %v9766_v42  ;;  %v9780_v50 = vsel %vm9777_vm14, %v9762_v33, %v9764_v39 }
 0x848   :  { %9444 = vmatpush1.msra.mxu0 %v21446_v2  ;;  %9507 = vmatprep.mubr.f32.mxu0 %v20218_v4 }
 0x849   :  { %9514 = vmatprep.subr.mxu0 %v21459_v34 }
 0x84a   :  { %v9768_v55 = vpop.permute.xlu0 %9767  ;;  %v9770_v18 = vpop.permute.xlu1 %9769 }
 0x84b   :  { %19218 = vmatmul.mubr.msk.f32.vlgmr.msra.gmra.mrb[8].mxu0 %vm249_vm1, %v19216_v38  ;;  %v9783_v17 = vsel %vm9777_vm14, %v9768_v55, %v9770_v18  ;;  %v9782_v53 = vsel %vm9777_vm14, %v9766_v42, %v9768_v55 }
 0x84c   :  { %9515 = vmatpush1.msra.mxu0 %v21456_v49  ;;  %9578 = vmatprep.mubr.f32.mxu0 %v20218_v4  ;;  %v9779_v49 = vsel %vm9777_vm14, %v9760_v27, %v9762_v33 }
 0x84d   :  { %9585 = vmatprep.subr.mxu0 %v21469_v47 }
 0x84e   :  { %v9772_v31 = vpop.permute.xlu0 %9771  ;;  %v9774_v44 = vpop.permute.xlu1 %9773 }
 0x84f   :  { %19219 = vmatmul.mubr.msk.f32.vlgmr.msra.gmra.mrb[10].mxu0 %vm249_vm1, %v19216_v38  ;;  %v9785_v8 = vsel %vm9777_vm14, %v9772_v31, %v9774_v44  ;;  %v9784_v61 = vsel %vm9777_vm14, %v9770_v18, %v9772_v31 }
 0x850   :  { %9586 = vmatpush1.msra.mxu0 %v21466_v45  ;;  %9649 = vmatprep.mubr.f32.mxu0 %v20218_v4  ;;  %v9778_v45 = vsel %vm9777_vm14, %v9758_v36, %v9760_v27 }
 0x851   :  { %19555 = vmatprep.subr.mxu0 %v20218_v4 }
 0x852   :  { %v9776_v2 = vpop.permute.xlu0 %9775  ;;  %v10167_v34 = vpop.permute.xlu1 %10166 }
 0x853   :  { %19220 = vmatmul.mubr.msk.f32.vlgmr.msra.gmra.mrb[12].mxu0 %vm249_vm1, %v19216_v38  ;;  %v9786_v41 = vsel %vm9777_vm14, %v9774_v44, %v9776_v2 }
 0x854   :  { %19556 = vmatpush3.msra.mxu0 %v21476_v6  ;;  %19557 = vmatprep.mubr.msk.f32.mxu0 %vm20225_vm3, %v20218_v4  ;;  %v19222_v6 = vld [vmem:[%s22761_s8 + $0x28] sm:$0xff] }
 0x855   :  { %9799 = vmatprep.subr.mxu0 %v9779_v49 }
 0x856   :  { %v10169_v47 = vpop.permute.xlu0 %10168  ;;  %v10165_v1 = vpop.permute.xlu1 %10164 }
 0x857   :  { %19558 = vmatmul.mubr.msk.f32.vlgmr.msra.gmra.mrb[14].mxu0 %vm249_vm1, %v19216_v38  ;;  %v10186_v20 = vsel %vm10184_vm15, %v10167_v34, %v10169_v47  ;;  %v10185_v12 = vsel %vm10184_vm15, %v10165_v1, %v10167_v34 }
 0x858   :  { %9800 = vmatpush1.msra.mxu0 %v9778_v45  ;;  %9863 = vmatprep.mubr.f32.mxu0 %v20218_v4 }
 0x859   :  { %9870 = vmatprep.subr.mxu0 %v9781_v19 }
 0x85a   :  { %v10171_v13 = vpop.permute.xlu0 %10170  ;;  %v10173_v11 = vpop.permute.xlu1 %10172 }
 0x85b   :  { %19223 = vmatmul.mubr.msk.f32.vlgmr.msra.gmra.mrb[6].mxu0 %vm249_vm1, %v19222_v6  ;;  %v10188_v37 = vsel %vm10184_vm15, %v10171_v13, %v10173_v11  ;;  %v10187_v35 = vsel %vm10184_vm15, %v10169_v47, %v10171_v13  ;;  %v19240_v13 = vld [vmem:[%s22761_s8 + $0x40] sm:$0xff]  ;;  %s15208_s8 = sld [smem:[#allocation10]] }
 0x85c   :  { %9871 = vmatpush1.msra.mxu0 %v9780_v50  ;;  %9934 = vmatprep.mubr.f32.mxu0 %v20218_v4 }
 0x85d   :  { %9941 = vmatprep.subr.mxu0 %v9783_v17 }
 0x85e   :  { %v10175_v51 = vpop.permute.xlu0 %10174  ;;  %v10177_v52 = vpop.permute.xlu1 %10176 }
 0x85f   :  { %19224 = vmatmul.mubr.msk.f32.vlgmr.msra.gmra.mrb[8].mxu0 %vm249_vm1, %v19222_v6  ;;  %v10190_v48 = vsel %vm10184_vm15, %v10175_v51, %v10177_v52  ;;  %v10189_v46 = vsel %vm10184_vm15, %v10173_v11, %v10175_v51 }
 0x860   :  { %9942 = vmatpush1.msra.mxu0 %v9782_v53  ;;  %10005 = vmatprep.mubr.f32.mxu0 %v20218_v4 }
 0x861   :  { %10012 = vmatprep.subr.mxu0 %v9785_v8 }
 0x862   :  { %v10179_v56 = vpop.permute.xlu0 %10178  ;;  %v10181_v59 = vpop.permute.xlu1 %10180 }
 0x863   :  { %19225 = vmatmul.mubr.msk.f32.vlgmr.msra.gmra.mrb[10].mxu0 %vm249_vm1, %v19222_v6  ;;  %v10192_v9 = vsel %vm10184_vm15, %v10179_v56, %v10181_v59  ;;  %v10191_v23 = vsel %vm10184_vm15, %v10177_v52, %v10179_v56 }
 0x864   :  { %10013 = vmatpush1.msra.mxu0 %v9784_v61  ;;  %10076 = vmatprep.mubr.f32.mxu0 %v20218_v4 }
 0x865   :  { %19560 = vmatprep.subr.mxu0 %v20218_v4 }
 0x866   :  { %v10183_v62 = vpop.permute.xlu0 %10182  ;;  %v10574_v16 = vpop.permute.xlu1 %10573 }
 0x867   :  { %19226 = vmatmul.mubr.msk.f32.vlgmr.msra.gmra.mrb[12].mxu0 %vm249_vm1, %v19222_v6  ;;  %v10193_v5 = vsel %vm10184_vm15, %v10181_v59, %v10183_v62 }
 0x868   :  { %19561 = vmatpush3.msra.mxu0 %v9786_v41  ;;  %19562 = vmatprep.mubr.msk.f32.mxu0 %vm20225_vm3, %v20218_v4 }
 0x869   :  { %10206 = vmatprep.subr.mxu0 %v10186_v20 }
 0x86a   :  { %v10576_v24 = vpop.permute.xlu0 %10575  ;;  %v10572_v29 = vpop.permute.xlu1 %10571 }
 0x86b   :  { %19563 = vmatmul.mubr.msk.f32.vlgmr.msra.gmra.mrb[14].mxu0 %vm249_vm1, %v19222_v6  ;;  %v10593_v15 = vsel %vm10591_vm10, %v10574_v16, %v10576_v24  ;;  %v10592_v26 = vsel %vm10591_vm10, %v10572_v29, %v10574_v16 }
 0x86c   :  { %10207 = vmatpush1.msra.mxu0 %v10185_v12  ;;  %10270 = vmatprep.mubr.f32.mxu0 %v20218_v4 }
 0x86d   :  { %10277 = vmatprep.subr.mxu0 %v10188_v37 }
 0x86e   :  { %v10578_v43 = vpop.permute.xlu0 %10577  ;;  %v10580_v54 = vpop.permute.xlu1 %10579 }
 0x86f   :  { %19229 = vmatmul.mubr.msk.f32.vlgmr.msra.gmra.mrb[6].mxu0 %vm249_vm1, %v19228_v40  ;;  %v10595_v27 = vsel %vm10591_vm10, %v10578_v43, %v10580_v54  ;;  %v10594_v38 = vsel %vm10591_vm10, %v10576_v24, %v10578_v43 }
 0x870   :  { %10278 = vmatpush1.msra.mxu0 %v10187_v35  ;;  %10341 = vmatprep.mubr.f32.mxu0 %v20218_v4 }
 0x871   :  { %10348 = vmatprep.subr.mxu0 %v10190_v48 }
 0x872   :  { %v10582_v63 = vpop.permute.xlu0 %10581  ;;  %v10584_v25 = vpop.permute.xlu1 %10583 }
 0x873   :  { %19230 = vmatmul.mubr.msk.f32.vlgmr.msra.gmra.mrb[8].mxu0 %vm249_vm1, %v19228_v40  ;;  %v10597_v39 = vsel %vm10591_vm10, %v10582_v63, %v10584_v25  ;;  %v10596_v18 = vsel %vm10591_vm10, %v10580_v54, %v10582_v63 }
 0x874   :  { %10349 = vmatpush1.msra.mxu0 %v10189_v46  ;;  %10412 = vmatprep.mubr.f32.mxu0 %v20218_v4 }
 0x875   :  { %10419 = vmatprep.subr.mxu0 %v10192_v9 }
 0x876   :  { %v10586_v21 = vpop.permute.xlu0 %10585  ;;  %v10588_v30 = vpop.permute.xlu1 %10587 }
 0x877   :  { %19231 = vmatmul.mubr.msk.f32.vlgmr.msra.gmra.mrb[10].mxu0 %vm249_vm1, %v19228_v40  ;;  %v10599_v31 = vsel %vm10591_vm10, %v10586_v21, %v10588_v30  ;;  %v10598_v44 = vsel %vm10591_vm10, %v10584_v25, %v10586_v21 }
 0x878   :  { %10420 = vmatpush1.msra.mxu0 %v10191_v23  ;;  %10483 = vmatprep.mubr.f32.mxu0 %v20218_v4 }
 0x879   :  { %19565 = vmatprep.subr.mxu0 %v20218_v4 }
 0x87a   :  { %v10590_v33 = vpop.permute.xlu0 %10589  ;;  %v10981_v36 = vpop.permute.xlu1 %10980 }
 0x87b   :  { %19232 = vmatmul.mubr.msk.f32.vlgmr.msra.gmra.mrb[12].mxu0 %vm249_vm1, %v19228_v40  ;;  %v10600_v49 = vsel %vm10591_vm10, %v10588_v30, %v10590_v33 }
 0x87c   :  { %19566 = vmatpush3.msra.mxu0 %v10193_v5  ;;  %19567 = vmatprep.mubr.msk.f32.mxu0 %vm20225_vm3, %v20218_v4 }
 0x87d   :  { %10613 = vmatprep.subr.mxu0 %v10593_v15 }
 0x87e   :  { %v10983_v42 = vpop.permute.xlu0 %10982  ;;  %v10979_v55 = vpop.permute.xlu1 %10978 }
 0x87f   :  { %19568 = vmatmul.mubr.msk.f32.vlgmr.msra.gmra.mrb[14].mxu0 %vm249_vm1, %v19228_v40  ;;  %v11000_v47 = vsel %vm10998_vm11, %v10981_v36, %v10983_v42  ;;  %v10999_v1 = vsel %vm10998_vm11, %v10979_v55, %v10981_v36 }
 0x880   :  { %10614 = vmatpush1.msra.mxu0 %v10592_v26  ;;  %10677 = vmatprep.mubr.f32.mxu0 %v20218_v4 }
 0x881   :  { %10684 = vmatprep.subr.mxu0 %v10595_v27 }
 0x882   :  { %v10985_v2 = vpop.permute.xlu0 %10984  ;;  %v10987_v34 = vpop.permute.xlu1 %10986 }
 0x883   :  { %19235 = vmatmul.mubr.msk.f32.vlgmr.msra.gmra.mrb[6].mxu0 %vm249_vm1, %v19234_v0  ;;  %v11002_v6 = vsel %vm10998_vm11, %v10985_v2, %v10987_v34  ;;  %v11001_v11 = vsel %vm10998_vm11, %v10983_v42, %v10985_v2 }
 0x884   :  { %10685 = vmatpush1.msra.mxu0 %v10594_v38  ;;  %10748 = vmatprep.mubr.f32.mxu0 %v20218_v4 }
 0x885   :  { %10755 = vmatprep.subr.mxu0 %v10597_v39 }
 0x886   :  { %v10989_v45 = vpop.permute.xlu0 %10988  ;;  %v10991_v19 = vpop.permute.xlu1 %10990 }
 0x887   :  { %19236 = vmatmul.mubr.msk.f32.vlgmr.msra.gmra.mrb[8].mxu0 %vm249_vm1, %v19234_v0  ;;  %v11004_v50 = vsel %vm10998_vm11, %v10989_v45, %v10991_v19  ;;  %v11003_v52 = vsel %vm10998_vm11, %v10987_v34, %v10989_v45 }
 0x888   :  { %10756 = vmatpush1.msra.mxu0 %v10596_v18  ;;  %10819 = vmatprep.mubr.f32.mxu0 %v20218_v4 }
 0x889   :  { %10826 = vmatprep.subr.mxu0 %v10599_v31 }
 0x88a   :  { %v10993_v17 = vpop.permute.xlu0 %10992  ;;  %v10995_v51 = vpop.permute.xlu1 %10994 }
 0x88b   :  { %19237 = vmatmul.mubr.msk.f32.vlgmr.msra.gmra.mrb[10].mxu0 %vm249_vm1, %v19234_v0  ;;  %v11006_v53 = vsel %vm10998_vm11, %v10993_v17, %v10995_v51  ;;  %v11005_v8 = vsel %vm10998_vm11, %v10991_v19, %v10993_v17 }
 0x88c   :  { %10827 = vmatpush1.msra.mxu0 %v10598_v44  ;;  %10890 = vmatprep.mubr.f32.mxu0 %v20218_v4 }
 0x88d   :  { %19570 = vmatprep.subr.mxu0 %v20218_v4 }
 0x88e   :  { %v10997_v56 = vpop.permute.xlu0 %10996 }
 0x88f   :  { %19238 = vmatmul.mubr.msk.f32.vlgmr.msra.gmra.mrb[12].mxu0 %vm249_vm1, %v19234_v0  ;;  %v11007_v59 = vsel %vm10998_vm11, %v10995_v51, %v10997_v56 }
 0x890   :  { %19571 = vmatpush3.msra.mxu0 %v10600_v49  ;;  %19572 = vmatprep.mubr.msk.f32.mxu0 %vm20225_vm3, %v20218_v4 }
 0x891   :  { %11020 = vmatprep.subr.mxu0 %v11000_v47  ;;  %v21837_v47 = vld [vmem:[%s22776_s26 + $0x8] ss:$0 sm:$0xff] }
 0x893   :  { %19573 = vmatmul.mubr.msk.f32.vlgmr.msra.gmra.mrb[14].mxu0 %vm249_vm1, %v19234_v0 }
 0x894   :  { %11021 = vmatpush1.msra.mxu0 %v10999_v1  ;;  %11084 = vmatprep.mubr.f32.mxu0 %v20218_v4 }
 0x895   :  { %11091 = vmatprep.subr.mxu0 %v11002_v6 }
 0x897   :  { %19241 = vmatmul.mubr.msk.f32.vlgmr.msra.gmra.mrb[6].mxu0 %vm249_vm1, %v19240_v13 }
 0x898   :  { %11092 = vmatpush1.msra.mxu0 %v11001_v11  ;;  %11155 = vmatprep.mubr.f32.mxu0 %v20218_v4 }
 0x899   :  { %11162 = vmatprep.subr.mxu0 %v11004_v50 }
 0x89b   :  { %19242 = vmatmul.mubr.msk.f32.vlgmr.msra.gmra.mrb[8].mxu0 %vm249_vm1, %v19240_v13 }
 0x89c   :  { %11163 = vmatpush1.msra.mxu0 %v11003_v52  ;;  %11226 = vmatprep.mubr.f32.mxu0 %v20218_v4 }
 0x89d   :  { %11233 = vmatprep.subr.mxu0 %v11006_v53 }
 0x89f   :  { %19243 = vmatmul.mubr.msk.f32.vlgmr.msra.gmra.mrb[10].mxu0 %vm249_vm1, %v19240_v13 }
 0x8a0   :  { %11234 = vmatpush1.msra.mxu0 %v11005_v8  ;;  %11297 = vmatprep.mubr.f32.mxu0 %v20218_v4 }
 0x8a1   :  { %19575 = vmatprep.subr.mxu0 %v20218_v4 }
 0x8a3   :  { %19244 = vmatmul.mubr.msk.f32.vlgmr.msra.gmra.mrb[12].mxu0 %vm249_vm1, %v19240_v13 }
 0x8a4   :  { %19576 = vmatpush3.msra.mxu0 %v11007_v59  ;;  %19577 = vmatprep.mubr.msk.f32.mxu0 %vm20225_vm3, %v20218_v4 }
 0x8a7   :  { %19578 = vmatmul.mubr.msk.f32.vlgmr.msra.gmra.mrb[14].mxu0 %vm249_vm1, %v19240_v13 }
 0x8a8   :  { %15424 = vmatprep.mubr.f32.mxu0 %v20218_v4 }
 0x96a   :  { %v11086_v61 = vpop.f32.mrb[6].mxu0 }
 0x96b   :  { %v21787_v62 = vmul.f32 %v11086_v61, %v20874_v57  ;;  %v11088_v16 = vpop.f32.mrb[7].mxu0  ;;  %v11431_v61 = vstv %s19246_s28 }
 0x96c   :  { %v21790_v41 = vmul.f32 %v11088_v16, %v20876_v60  ;;  %v11428_v16 = vld [vmem:[%s22762_s9] sm:$0xff]  ;;  %s20238_s9 = smov 100  }
 0x96d   :  { %v11402_v20 = vmul.f32 %v21787_v62, %v21787_v62 }
 0x96e   :  { %v11392_v24 = vadd.f32 %v21790_v41, %v21787_v62  ;;  %v11403_v29 = vmul.f32 %v21790_v41, %v21790_v41  ;;  %v11157_v12 = vpop.f32.mrb[8].mxu0 }
 0x96f   :  { %v21799_v37 = vmul.f32 %v11157_v12, %v20878_v10  ;;  %v11159_v40 = vpop.f32.mrb[9].mxu0  ;;  %v11434_v12 = vstv %s11429_s29 }
 0x970   :  { %v11411_v43 = vadd.f32 %v11403_v29, %v11402_v20  ;;  %v21802_v35 = vmul.f32 %v11159_v40, %v20883_v14  ;;  %v11432_v20 = vmul.f32 %v11431_v61, %v11428_v16 }
 0x971   :  { %v11393_v54 = vadd.f32 %v11392_v24, %v21799_v37  ;;  %v11404_v48 = vmul.f32 %v21799_v37, %v21799_v37 }
 0x972   :  { %v11405_v46 = vmul.f32 %v21802_v35, %v21802_v35  ;;  %v11228_v9 = vpop.f32.mrb[10].mxu0 }
 0x973   :  { %v11412_v63 = vadd.f32 %v11411_v43, %v11404_v48  ;;  %v11394_v25 = vadd.f32 %v11393_v54, %v21802_v35  ;;  %v21811_v23 = vmul.f32 %v11228_v9, %v20900_v28  ;;  %v11230_v5 = vpop.f32.mrb[11].mxu0 }
 0x974   :  { %v21814_v21 = vmul.f32 %v11230_v5, %v20907_v3 }
 0x975   :  { %v11413_v30 = vadd.f32 %v11412_v63, %v11405_v46  ;;  %v11395_v15 = vadd.f32 %v11394_v25, %v21811_v23  ;;  %v11406_v26 = vmul.f32 %v21811_v23, %v21811_v23 }
 0x976   :  { %v11407_v27 = vmul.f32 %v21814_v21, %v21814_v21  ;;  %v11299_v0 = vpop.f32.mrb[12].mxu0 }
 0x977   :  { %v11414_v33 = vadd.f32 %v11413_v30, %v11406_v26  ;;  %v11396_v36 = vadd.f32 %v11395_v15, %v21814_v21  ;;  %v21823_v38 = vmul.f32 %v11299_v0, %v20909_v32  ;;  %v11301_v39 = vpop.f32.mrb[13].mxu0 }
 0x978   :  { %v21826_v42 = vmul.f32 %v11301_v39, %v20915_v7 }
 0x979   :  { %v11415_v55 = vadd.f32 %v11414_v33, %v11407_v27  ;;  %v11397_v18 = vadd.f32 %v11396_v36, %v21823_v38  ;;  %v11408_v31 = vmul.f32 %v21823_v38, %v21823_v38 }
 0x97a   :  { %v11409_v44 = vmul.f32 %v21826_v42, %v21826_v42  ;;  %v11370_v2 = vpop.f32.mrb[14].mxu0 }
 0x97b   :  { %v11416_v34 = vadd.f32 %v11415_v55, %v11408_v31  ;;  %v11398_v49 = vadd.f32 %v11397_v18, %v21826_v42  ;;  %v21840_v1 = vmul.f32 %v21837_v47, %v11370_v2  ;;  %v19579_v45 = vpop.f32.mrb[15].mxu0 }
 0x97d   :  { %v11410_v19 = vmul.f32 %v21840_v1, %v21840_v1  ;;  %v11399_v6 = vadd.f32 %v11398_v49, %v21840_v1  ;;  %v11417_v13 = vadd.f32 %v11416_v34, %v11409_v44 }
 0x97f   :  { %11400 = vadd.xlane.f32.xlu1 %v11399_v6  ;;  %v11418_v11 = vadd.f32 %v11417_v13, %v11410_v19 }
 0x981   :  { %11419 = vadd.xlane.f32.xlu0 %v11418_v11 }
 0xa0c   :  { %v11401_v50 = vpop.xlane.xlu1 %11400 }
 0xa0d   :  { %v11421_v17 = vmul.f32 0.001953125, %v11401_v50 }
 0xa0e   :  { %v11420_v51 = vpop.xlane.xlu0 %11419 }
 0xa0f   :  { %v11423_v52 = vmul.f32 %v11421_v17, %v11421_v17  ;;  %v11422_v53 = vmul.f32 0.001953125, %v11420_v51  ;;  %v11436_v24 = vmul.f32 %v11428_v16, %v11421_v17 }
 0xa11   :  { %v11424_v8 = vsub.f32 %v11422_v53, %v11423_v52 }
 0xa13   :  { %v11425_v56 = vmax.f32 %v11424_v8, 0.0 }
 0xa15   :  { %v11426_v59 = vadd.f32 1e-05, %v11425_v56 }
 0xa17   :  { %20112 = vrsqrt.f32 %v11426_v59 }
 0xa21   :  { %v20113_v29 = vpop.eup %20112 }
 0xa22   :  { %v11437_v40 = vmul.f32 %v20113_v29, %v11436_v24  ;;  %v11433_v43 = vmul.f32 %v20113_v29, %v11432_v20 }
 0xa24   :  { %11439 = vrot.lane.b32.xlu0 %v11437_v40, %s20221_s18  ;;  %v11435_v54 = vadd.f32 %v11434_v12, %v11433_v43 }
 0xa26   :  { %11446 = vperm.xlu1 %20103, %v11435_v54  }
 0xa28   :  { %11540 = vrot.lane.b32.xlu0 %v20218_v4, %s20237_s6 }
 0xa2a   :  { %20105 = vset.pattern.permute.xlu1 %v20228_v22 }
 0xa96   :  { %v11440_v48 = vpop.permute.xlu0 %11439 }
 0xa97   :  { %v11442_v46 = vsub.f32 %v11428_v16, %v11440_v48 }
 0xa99   :  { %v11443_v9 = vmul.f32 %v11442_v46, %v11431_v61  ;;  %v19247_v46 = vld [vmem:[%s22764_s11 + $0x8] sm:$0xff] }
 0xa9b   :  { %11460 = vperm.xlu1 %20105, %v11443_v9  }
 0xa9f   :  { %20106 = vset.pattern.permute.xlu1 %v20227_v58 }
 0xaa5   :  { %v11447_v63 = vpop.permute.xlu1 %11446 }
 0xaa6   :  { %v11449_v25 = vmul.f32 %v11447_v63, %v21787_v62  ;;  %v11450_v5 = vmul.f32 %v11447_v63, %v21790_v41  ;;  %v11451_v15 = vmul.f32 %v11447_v63, %v21799_v37  ;;  %v11452_v26 = vmul.f32 %v11447_v63, %v21802_v35 }
 0xaa7   :  { %v11453_v58 = vmul.f32 %v11447_v63, %v21811_v23  ;;  %v11454_v39 = vmul.f32 %v11447_v63, %v21814_v21  ;;  %v11455_v62 = vmul.f32 %v11447_v63, %v21823_v38  ;;  %v11456_v35 = vmul.f32 %v11447_v63, %v21826_v42 }
 0xaa8   :  { %v11457_v11 = vmul.f32 %v11447_v63, %v21840_v1 }
 0xb1a   :  { %v11461_v30 = vpop.permute.xlu1 %11460 }
 0xb1b   :  { %v11463_v27 = vadd.f32 %v11461_v30, %v11449_v25  ;;  %v11464_v0 = vadd.f32 %v11461_v30, %v11450_v5  ;;  %v11465_v33 = vadd.f32 %v11461_v30, %v11451_v15  ;;  %v11466_v36 = vadd.f32 %v11461_v30, %v11452_v26 }
 0xb1c   :  { %v11467_v41 = vadd.f32 %v11461_v30, %v11453_v58  ;;  %v11468_v31 = vadd.f32 %v11461_v30, %v11454_v39  ;;  %v11469_v49 = vadd.f32 %v11461_v30, %v11455_v62  ;;  %v11470_v23 = vadd.f32 %v11461_v30, %v11456_v35 }
 0xb1d   :  { %vm11472_vm12 = vcmp.ge.f32.partialorder %v11463_v27, 0.0  ;;  %vm11473_vm13 = vcmp.ge.f32.partialorder %v11464_v0, 0.0  ;;  %v11481_v55 = vmul.f32 0.2, %v11463_v27  ;;  %v11482_v18 = vmul.f32 0.2, %v11464_v0 }
 0xb1e   :  { %v11483_v44 = vmul.f32 0.2, %v11465_v33  ;;  %v11484_v37 = vmul.f32 0.2, %v11466_v36  ;;  %vm11474_vm14 = vcmp.ge.f32.partialorder %v11465_v33, 0.0  ;;  %vm11475_vm15 = vcmp.ge.f32.partialorder %v11466_v36, 0.0 }
 0xb1f   :  { %v11490_v2 = vsel %vm11472_vm12, %v11463_v27, %v11481_v55  ;;  %v11491_v34 = vsel %vm11473_vm13, %v11464_v0, %v11482_v18  ;;  %v11485_v19 = vmul.f32 0.2, %v11467_v41  ;;  %v11486_v38 = vmul.f32 0.2, %v11468_v31 }
 0xb20   :  { %v21862_v45 = vmul.f32 %v11490_v2, %v20874_v57  ;;  %v21865_v21 = vmul.f32 %v11491_v34, %v20876_v60  ;;  %v11492_v6 = vsel %vm11474_vm14, %v11465_v33, %v11483_v44  ;;  %v11493_v13 = vsel %vm11475_vm15, %v11466_v36, %v11484_v37  ;;  %v11527_v37 = vld [vmem:[%s22764_s11] sm:$0xff] }
 0xb21   :  { %vm11476_vm10 = vcmp.ge.f32.partialorder %v11467_v41, 0.0  ;;  %vm11477_vm11 = vcmp.ge.f32.partialorder %v11468_v31, 0.0  ;;  %v11471_v42 = vadd.f32 %v11461_v30, %v11457_v11  ;;  %v21873_v50 = vmul.f32 %v11492_v6, %v20878_v10 }
 0xb22   :  { %11544 = vrot.lane.b32.xlu1 %v21865_v21, %s20237_s6  ;;  %11542 = vrot.lane.b32.xlu0 %v21862_v45, %s20237_s6  ;;  %v21876_v17 = vmul.f32 %v11493_v13, %v20883_v14  ;;  %v11487_v51 = vmul.f32 0.2, %v11469_v49  ;;  %v11488_v52 = vmul.f32 0.2, %v11470_v23  ;;  %v11494_v53 = vsel %vm11476_vm10, %v11467_v41, %v11485_v19 }
 0xb23   :  { %v11495_v8 = vsel %vm11477_vm11, %v11468_v31, %v11486_v38  ;;  %vm11478_vm12 = vcmp.ge.f32.partialorder %v11469_v49, 0.0  ;;  %vm11479_vm13 = vcmp.ge.f32.partialorder %v11470_v23, 0.0  ;;  %v21883_v1 = vmul.f32 %v11494_v53, %v20900_v28 }
 0xb24   :  { %v21886_v56 = vmul.f32 %v11495_v8, %v20907_v3  ;;  %v11489_v59 = vmul.f32 0.2, %v11471_v42  ;;  %v11496_v61 = vsel %vm11478_vm12, %v11469_v49, %v11487_v51  ;;  %v11497_v16 = vsel %vm11479_vm13, %v11470_v23, %v11488_v52 }
 0xb25   :  { %vm11480_vm14 = vcmp.ge.f32.partialorder %v11471_v42, 0.0  ;;  %v21893_v20 = vmul.f32 %v11496_v61, %v20909_v32  ;;  %v21896_v24 = vmul.f32 %v11497_v16, %v20915_v7  ;;  %vm11560_vm15 = vcmask 785408  }
 0xb26   :  { %11546 = vrot.lane.b32.xlu1 %v21873_v50, %s20237_s6  ;;  %11548 = vrot.lane.b32.xlu0 %v21876_v17, %s20237_s6  ;;  %v11498_v29 = vsel %vm11480_vm14, %v11471_v42, %v11489_v59  ;;  %vm11956_vm10 = vcmask 818176   ;;  %vm12354_vm11 = vcmask 752640   ;;  %vm12761_vm12 = vcmask 31744  }
 0xb27   :  { %v21903_v12 = vmul.f32 %v21837_v47, %v11498_v29  ;;  %v11541_v47 = vpop.permute.xlu0 %11540  ;;  %vm13556_vm13 = vcmask 1014784   ;;  %vm13963_vm14 = vcmask 293888  }
 0xb2a   :  { %11550 = vrot.lane.b32.xlu1 %v21883_v1, %s20237_s6  ;;  %11552 = vrot.lane.b32.xlu0 %v21886_v56, %s20237_s6 }
 0xb2e   :  { %11554 = vrot.lane.b32.xlu1 %v21893_v20, %s20237_s6  ;;  %11556 = vrot.lane.b32.xlu0 %v21896_v24, %s20237_s6 }
 0xb32   :  { %11558 = vrot.lane.b32.xlu1 %v21903_v12, %s20237_s6  ;;  %11936 = vrot.lane.b32.xlu0 %v20218_v4, %s20238_s9 }
 0xb36   :  { %11940 = vrot.lane.b32.xlu1 %v21865_v21, %s20238_s9  ;;  %11938 = vrot.lane.b32.xlu0 %v21862_v45, %s20238_s9 }
 0xb3a   :  { %11942 = vrot.lane.b32.xlu1 %v21873_v50, %s20238_s9  ;;  %11944 = vrot.lane.b32.xlu0 %v21876_v17, %s20238_s9 }
 0xb3e   :  { %11946 = vrot.lane.b32.xlu1 %v21883_v1, %s20238_s9  ;;  %11948 = vrot.lane.b32.xlu0 %v21886_v56, %s20238_s9 }
 0xb42   :  { %11950 = vrot.lane.b32.xlu1 %v21893_v20, %s20238_s9  ;;  %11952 = vrot.lane.b32.xlu0 %v21896_v24, %s20238_s9 }
 0xb46   :  { %11954 = vrot.lane.b32.xlu1 %v21903_v12, %s20238_s9  ;;  %12334 = vrot.lane.b32.xlu0 %v20218_v4, %s20239_s1 }
 0xb4a   :  { %12338 = vrot.lane.b32.xlu1 %v21865_v21, %s20239_s1  ;;  %12336 = vrot.lane.b32.xlu0 %v21862_v45, %s20239_s1 }
 0xb4e   :  { %12340 = vrot.lane.b32.xlu1 %v21873_v50, %s20239_s1  ;;  %12342 = vrot.lane.b32.xlu0 %v21876_v17, %s20239_s1 }
 0xb52   :  { %12344 = vrot.lane.b32.xlu1 %v21883_v1, %s20239_s1  ;;  %12346 = vrot.lane.b32.xlu0 %v21886_v56, %s20239_s1 }
 0xb56   :  { %12348 = vrot.lane.b32.xlu1 %v21893_v20, %s20239_s1  ;;  %12350 = vrot.lane.b32.xlu0 %v21896_v24, %s20239_s1 }
 0xb5a   :  { %12352 = vrot.lane.b32.xlu1 %v21903_v12, %s20239_s1  ;;  %12741 = vrot.lane.b32.xlu0 %v20218_v4, %s20240_s20 }
 0xb5e   :  { %12745 = vrot.lane.b32.xlu1 %v21865_v21, %s20240_s20  ;;  %12743 = vrot.lane.b32.xlu0 %v21862_v45, %s20240_s20 }
 0xb62   :  { %12747 = vrot.lane.b32.xlu1 %v21873_v50, %s20240_s20  ;;  %12749 = vrot.lane.b32.xlu0 %v21876_v17, %s20240_s20 }
 0xb66   :  { %12751 = vrot.lane.b32.xlu1 %v21883_v1, %s20240_s20  ;;  %12753 = vrot.lane.b32.xlu0 %v21886_v56, %s20240_s20 }
 0xb6a   :  { %12755 = vrot.lane.b32.xlu1 %v21893_v20, %s20240_s20  ;;  %12757 = vrot.lane.b32.xlu0 %v21896_v24, %s20240_s20 }
 0xb6e   :  { %12759 = vrot.lane.b32.xlu1 %v21903_v12, %s20240_s20  ;;  %13538 = vrot.lane.b32.xlu0 %v21865_v21, %s20241_s3 }
 0xb72   :  { %13540 = vrot.lane.b32.xlu1 %v21873_v50, %s20241_s3  ;;  %13536 = vrot.lane.b32.xlu0 %v21862_v45, %s20241_s3 }
 0xb76   :  { %13542 = vrot.lane.b32.xlu1 %v21876_v17, %s20241_s3  ;;  %13544 = vrot.lane.b32.xlu0 %v21883_v1, %s20241_s3 }
 0xb7a   :  { %13546 = vrot.lane.b32.xlu1 %v21886_v56, %s20241_s3  ;;  %13548 = vrot.lane.b32.xlu0 %v21893_v20, %s20241_s3 }
 0xb7e   :  { %13550 = vrot.lane.b32.xlu1 %v21896_v24, %s20241_s3  ;;  %13552 = vrot.lane.b32.xlu0 %v21903_v12, %s20241_s3 }
 0xb82   :  { %13554 = vrot.lane.b32.xlu1 %v20218_v4, %s20241_s3  ;;  %13945 = vrot.lane.b32.xlu0 %v21865_v21, %s20242_s21 }
 0xb86   :  { %13947 = vrot.lane.b32.xlu1 %v21873_v50, %s20242_s21  ;;  %13943 = vrot.lane.b32.xlu0 %v21862_v45, %s20242_s21 }
 0xb8a   :  { %13949 = vrot.lane.b32.xlu1 %v21876_v17, %s20242_s21  ;;  %13951 = vrot.lane.b32.xlu0 %v21883_v1, %s20242_s21 }
 0xb8e   :  { %13953 = vrot.lane.b32.xlu1 %v21886_v56, %s20242_s21  ;;  %13955 = vrot.lane.b32.xlu0 %v21893_v20, %s20242_s21 }
 0xb92   :  { %13957 = vrot.lane.b32.xlu1 %v21896_v24, %s20242_s21  ;;  %13959 = vrot.lane.b32.xlu0 %v21903_v12, %s20242_s21 }
 0xb94   :  { %v11545_v40 = vpop.permute.xlu1 %11544  ;;  %v11543_v43 = vpop.permute.xlu0 %11542 }
 0xb95   :  { %v11562_v54 = vsel %vm11560_vm15, %v11543_v43, %v11545_v40  ;;  %v11561_v48 = vsel %vm11560_vm15, %v11541_v47, %v11543_v43  ;;  %v19258_v47 = vld [vmem:[%s22764_s11 + $0x10] sm:$0xff] }
 0xb96   :  { %13961 = vrot.lane.b32.xlu1 %v20218_v4, %s20242_s21  ;;  %14352 = vrot.lane.b32.xlu0 %v21865_v21, %s20243_s23 }
 0xb97   :  { %11582 = vmatprep.subr.mxu1 %v11562_v54 }
 0xb98   :  { %11583 = vmatpush1.msra.mxu1 %v11561_v48  ;;  %v11547_v9 = vpop.permute.xlu1 %11546  ;;  %v11549_v63 = vpop.permute.xlu0 %11548 }
 0xb99   :  { %19248 = vmatmul.mubr.msk.f32.vlgmr.msra.gmra.mrb[20].mxu1 %vm249_vm1, %v19247_v46  ;;  %v11564_v25 = vsel %vm11560_vm15, %v11547_v9, %v11549_v63  ;;  %v11563_v5 = vsel %vm11560_vm15, %v11545_v40, %v11547_v9 }
 0xb9a   :  { %14354 = vrot.lane.b32.xlu1 %v21873_v50, %s20243_s23  ;;  %14350 = vrot.lane.b32.xlu0 %v21862_v45, %s20243_s23 }
 0xb9b   :  { %11653 = vmatprep.subr.mxu1 %v11564_v25  ;;  %11717 = vmatprep.mubr.f32.mxu1 %v20218_v4 }
 0xb9c   :  { %11654 = vmatpush1.msra.mxu1 %v11563_v5  ;;  %v11551_v30 = vpop.permute.xlu1 %11550  ;;  %v11553_v15 = vpop.permute.xlu0 %11552 }
 0xb9d   :  { %19249 = vmatmul.mubr.msk.f32.vlgmr.msra.gmra.mrb[22].mxu1 %vm249_vm1, %v19247_v46  ;;  %v11566_v26 = vsel %vm11560_vm15, %v11551_v30, %v11553_v15  ;;  %v11565_v27 = vsel %vm11560_vm15, %v11549_v63, %v11551_v30 }
 0xb9e   :  { %14356 = vrot.lane.b32.xlu1 %v21876_v17, %s20243_s23  ;;  %14358 = vrot.lane.b32.xlu0 %v21883_v1, %s20243_s23 }
 0xb9f   :  { %11724 = vmatprep.subr.mxu1 %v11566_v26  ;;  %11788 = vmatprep.mubr.f32.mxu1 %v20218_v4 }
 0xba0   :  { %11725 = vmatpush1.msra.mxu1 %v11565_v27  ;;  %v11555_v0 = vpop.permute.xlu1 %11554  ;;  %v11557_v33 = vpop.permute.xlu0 %11556 }
 0xba1   :  { %19250 = vmatmul.mubr.msk.f32.vlgmr.msra.gmra.mrb[24].mxu1 %vm249_vm1, %v19247_v46  ;;  %v11568_v36 = vsel %vm11560_vm15, %v11555_v0, %v11557_v33  ;;  %v11567_v58 = vsel %vm11560_vm15, %v11553_v15, %v11555_v0 }
 0xba2   :  { %14360 = vrot.lane.b32.xlu1 %v21886_v56, %s20243_s23  ;;  %14362 = vrot.lane.b32.xlu0 %v21893_v20, %s20243_s23 }
 0xba3   :  { %11795 = vmatprep.subr.mxu1 %v11568_v36  ;;  %11859 = vmatprep.mubr.f32.mxu1 %v20218_v4 }
 0xba4   :  { %11796 = vmatpush1.msra.mxu1 %v11567_v58  ;;  %v11559_v39 = vpop.permute.xlu1 %11558  ;;  %v11937_v55 = vpop.permute.xlu0 %11936 }
 0xba5   :  { %v11569_v18 = vsel %vm11560_vm15, %v11557_v33, %v11559_v39  ;;  %19251 = vmatmul.mubr.msk.f32.vlgmr.msra.gmra.mrb[26].mxu1 %vm249_vm1, %v19247_v46  ;;  %19580 = vmatprep.subr.mxu1 %v20218_v4  ;;  %vm14370_vm15 = vcmask 261120  }
 0xba6   :  { %14364 = vrot.lane.b32.xlu1 %v21896_v24, %s20243_s23  ;;  %14366 = vrot.lane.b32.xlu0 %v21903_v12, %s20243_s23 }
 0xba7   :  { %19581 = vmatpush3.msra.mxu1 %v11569_v18  ;;  %19582 = vmatprep.mubr.msk.f32.mxu1 %vm20225_vm3, %v20218_v4  ;;  %v19264_v18 = vld [vmem:[%s22764_s11 + $0x18] sm:$0xff] }
 0xba8   :  { %v11941_v62 = vpop.permute.xlu1 %11940  ;;  %v11939_v41 = vpop.permute.xlu0 %11938 }
 0xba9   :  { %19583 = vmatmul.mubr.msk.f32.vlgmr.msra.gmra.mrb[28].mxu1 %vm249_vm1, %v19247_v46  ;;  %v11958_v31 = vsel %vm11956_vm10, %v11939_v41, %v11941_v62  ;;  %v11957_v44 = vsel %vm11956_vm10, %v11937_v55, %v11939_v41 }
 0xbaa   :  { %14368 = vrot.lane.b32.xlu1 %v20218_v4, %s20243_s23  ;;  %14759 = vrot.lane.b32.xlu0 %v21865_v21, %s20244_s5 }
 0xbab   :  { %11978 = vmatprep.subr.mxu1 %v11958_v31  ;;  %12042 = vmatprep.mubr.f32.mxu1 %v20218_v4 }
 0xbac   :  { %11979 = vmatpush1.msra.mxu1 %v11957_v44  ;;  %v11943_v2 = vpop.permute.xlu1 %11942  ;;  %v11945_v35 = vpop.permute.xlu0 %11944 }
 0xbad   :  { %19253 = vmatmul.mubr.msk.f32.vlgmr.msra.gmra.mrb[20].mxu1 %vm249_vm1, %v11527_v37  ;;  %v11960_v34 = vsel %vm11956_vm10, %v11943_v2, %v11945_v35  ;;  %v11959_v49 = vsel %vm11956_vm10, %v11941_v62, %v11943_v2 }
 0xbae   :  { %14761 = vrot.lane.b32.xlu1 %v21873_v50, %s20244_s5  ;;  %14757 = vrot.lane.b32.xlu0 %v21862_v45, %s20244_s5 }
 0xbaf   :  { %12049 = vmatprep.subr.mxu1 %v11960_v34  ;;  %12113 = vmatprep.mubr.f32.mxu1 %v20218_v4 }
 0xbb0   :  { %12050 = vmatpush1.msra.mxu1 %v11959_v49  ;;  %v11947_v23 = vpop.permute.xlu1 %11946  ;;  %v11949_v19 = vpop.permute.xlu0 %11948 }
 0xbb1   :  { %19254 = vmatmul.mubr.msk.f32.vlgmr.msra.gmra.mrb[22].mxu1 %vm249_vm1, %v11527_v37  ;;  %v11962_v38 = vsel %vm11956_vm10, %v11947_v23, %v11949_v19  ;;  %v11961_v6 = vsel %vm11956_vm10, %v11945_v35, %v11947_v23 }
 0xbb2   :  { %14763 = vrot.lane.b32.xlu1 %v21876_v17, %s20244_s5  ;;  %14765 = vrot.lane.b32.xlu0 %v21883_v1, %s20244_s5 }
 0xbb3   :  { %12120 = vmatprep.subr.mxu1 %v11962_v38  ;;  %12184 = vmatprep.mubr.f32.mxu1 %v20218_v4 }
 0xbb4   :  { %12121 = vmatpush1.msra.mxu1 %v11961_v6  ;;  %v11951_v13 = vpop.permute.xlu1 %11950  ;;  %v11953_v11 = vpop.permute.xlu0 %11952 }
 0xbb5   :  { %19255 = vmatmul.mubr.msk.f32.vlgmr.msra.gmra.mrb[24].mxu1 %vm249_vm1, %v11527_v37  ;;  %v11964_v42 = vsel %vm11956_vm10, %v11951_v13, %v11953_v11  ;;  %v11963_v51 = vsel %vm11956_vm10, %v11949_v19, %v11951_v13 }
 0xbb6   :  { %14767 = vrot.lane.b32.xlu1 %v21886_v56, %s20244_s5  ;;  %14769 = vrot.lane.b32.xlu0 %v21893_v20, %s20244_s5 }
 0xbb7   :  { %12191 = vmatprep.subr.mxu1 %v11964_v42  ;;  %12255 = vmatprep.mubr.f32.mxu1 %v20218_v4 }
 0xbb8   :  { %12192 = vmatpush1.msra.mxu1 %v11963_v51  ;;  %v11955_v52 = vpop.permute.xlu1 %11954  ;;  %v12335_v53 = vpop.permute.xlu0 %12334 }
 0xbb9   :  { %v11965_v8 = vsel %vm11956_vm10, %v11953_v11, %v11955_v52  ;;  %19256 = vmatmul.mubr.msk.f32.vlgmr.msra.gmra.mrb[26].mxu1 %vm249_vm1, %v11527_v37  ;;  %19585 = vmatprep.subr.mxu1 %v20218_v4  ;;  %v19270_v52 = vld [vmem:[%s22764_s11 + $0x20] sm:$0xff]  ;;  %vm14777_vm10 = vcmask 228352  }
 0xbba   :  { %14771 = vrot.lane.b32.xlu1 %v21896_v24, %s20244_s5  ;;  %14773 = vrot.lane.b32.xlu0 %v21903_v12, %s20244_s5 }
 0xbbb   :  { %19586 = vmatpush3.msra.mxu1 %v11965_v8  ;;  %19587 = vmatprep.mubr.msk.f32.mxu1 %vm20225_vm3, %v20218_v4 }
 0xbbc   :  { %v12339_v59 = vpop.permute.xlu1 %12338  ;;  %v12337_v61 = vpop.permute.xlu0 %12336 }
 0xbbd   :  { %19588 = vmatmul.mubr.msk.f32.vlgmr.msra.gmra.mrb[28].mxu1 %vm249_vm1, %v11527_v37  ;;  %v12356_v16 = vsel %vm12354_vm11, %v12337_v61, %v12339_v59  ;;  %v12355_v29 = vsel %vm12354_vm11, %v12335_v53, %v12337_v61 }
 0xbbe   :  { %14775 = vrot.lane.b32.xlu1 %v20218_v4, %s20244_s5  ;;  %12376 = vmatprep.subr.mxu1 %v12356_v16 }
 0xbbf   :  { %12377 = vmatpush1.msra.mxu1 %v12355_v29  ;;  %12440 = vmatprep.mubr.f32.mxu1 %v20218_v4 }
 0xbc0   :  { %v12341_v40 = vpop.permute.xlu1 %12340  ;;  %v12343_v43 = vpop.permute.xlu0 %12342 }
 0xbc1   :  { %19259 = vmatmul.mubr.msk.f32.vlgmr.msra.gmra.mrb[20].mxu1 %vm249_vm1, %v19258_v47  ;;  %v12358_v54 = vsel %vm12354_vm11, %v12341_v40, %v12343_v43  ;;  %v12357_v48 = vsel %vm12354_vm11, %v12339_v59, %v12341_v40 }
 0xbc2   :  { %12447 = vmatprep.subr.mxu1 %v12358_v54  ;;  %12511 = vmatprep.mubr.f32.mxu1 %v20218_v4 }
 0xbc3   :  { %12448 = vmatpush1.msra.mxu1 %v12357_v48 }
 0xbc4   :  { %v12345_v46 = vpop.permute.xlu1 %12344  ;;  %v12347_v9 = vpop.permute.xlu0 %12346 }
 0xbc5   :  { %19260 = vmatmul.mubr.msk.f32.vlgmr.msra.gmra.mrb[22].mxu1 %vm249_vm1, %v19258_v47  ;;  %v12360_v63 = vsel %vm12354_vm11, %v12345_v46, %v12347_v9  ;;  %v12359_v25 = vsel %vm12354_vm11, %v12343_v43, %v12345_v46 }
 0xbc6   :  { %12518 = vmatprep.subr.mxu1 %v12360_v63  ;;  %12582 = vmatprep.mubr.f32.mxu1 %v20218_v4 }
 0xbc7   :  { %12519 = vmatpush1.msra.mxu1 %v12359_v25 }
 0xbc8   :  { %v12349_v5 = vpop.permute.xlu1 %12348  ;;  %v12351_v30 = vpop.permute.xlu0 %12350 }
 0xbc9   :  { %19261 = vmatmul.mubr.msk.f32.vlgmr.msra.gmra.mrb[24].mxu1 %vm249_vm1, %v19258_v47  ;;  %v12362_v15 = vsel %vm12354_vm11, %v12349_v5, %v12351_v30  ;;  %v12361_v26 = vsel %vm12354_vm11, %v12347_v9, %v12349_v5 }
 0xbca   :  { %12589 = vmatprep.subr.mxu1 %v12362_v15  ;;  %12653 = vmatprep.mubr.f32.mxu1 %v20218_v4 }
 0xbcb   :  { %12590 = vmatpush1.msra.mxu1 %v12361_v26 }
 0xbcc   :  { %v12353_v27 = vpop.permute.xlu1 %12352  ;;  %v12742_v0 = vpop.permute.xlu0 %12741  ;;  %19590 = vmatprep.subr.mxu1 %v20218_v4 }
 0xbcd   :  { %v12363_v33 = vsel %vm12354_vm11, %v12351_v30, %v12353_v27  ;;  %19262 = vmatmul.mubr.msk.f32.vlgmr.msra.gmra.mrb[26].mxu1 %vm249_vm1, %v19258_v47 }
 0xbce   :  { %19591 = vmatpush3.msra.mxu1 %v12363_v33  ;;  %19592 = vmatprep.mubr.msk.f32.mxu1 %vm20225_vm3, %v20218_v4 }
 0xbd0   :  { %v12746_v36 = vpop.permute.xlu1 %12745  ;;  %v12744_v58 = vpop.permute.xlu0 %12743 }
 0xbd1   :  { %19593 = vmatmul.mubr.msk.f32.vlgmr.msra.gmra.mrb[28].mxu1 %vm249_vm1, %v19258_v47  ;;  %v12763_v39 = vsel %vm12761_vm12, %v12744_v58, %v12746_v36  ;;  %v12762_v55 = vsel %vm12761_vm12, %v12742_v0, %v12744_v58 }
 0xbd2   :  { %12783 = vmatprep.subr.mxu1 %v12763_v39  ;;  %12847 = vmatprep.mubr.f32.mxu1 %v20218_v4  ;;  %v19282_v39 = vld [vmem:[%s22764_s11 + $0x30] sm:$0xff] }
 0xbd3   :  { %12784 = vmatpush1.msra.mxu1 %v12762_v55 }
 0xbd4   :  { %v12748_v62 = vpop.permute.xlu1 %12747  ;;  %v12750_v41 = vpop.permute.xlu0 %12749 }
 0xbd5   :  { %19265 = vmatmul.mubr.msk.f32.vlgmr.msra.gmra.mrb[20].mxu1 %vm249_vm1, %v19264_v18  ;;  %v12765_v31 = vsel %vm12761_vm12, %v12748_v62, %v12750_v41  ;;  %v12764_v44 = vsel %vm12761_vm12, %v12746_v36, %v12748_v62 }
 0xbd6   :  { %12854 = vmatprep.subr.mxu1 %v12765_v31  ;;  %12918 = vmatprep.mubr.f32.mxu1 %v20218_v4 }
 0xbd7   :  { %12855 = vmatpush1.msra.mxu1 %v12764_v44 }
 0xbd8   :  { %v12752_v37 = vpop.permute.xlu1 %12751  ;;  %v12754_v2 = vpop.permute.xlu0 %12753 }
 0xbd9   :  { %19266 = vmatmul.mubr.msk.f32.vlgmr.msra.gmra.mrb[22].mxu1 %vm249_vm1, %v19264_v18  ;;  %v12767_v35 = vsel %vm12761_vm12, %v12752_v37, %v12754_v2  ;;  %v12766_v34 = vsel %vm12761_vm12, %v12750_v41, %v12752_v37 }
 0xbda   :  { %12925 = vmatprep.subr.mxu1 %v12767_v35  ;;  %12989 = vmatprep.mubr.f32.mxu1 %v20218_v4 }
 0xbdb   :  { %12926 = vmatpush1.msra.mxu1 %v12766_v34 }
 0xbdc   :  { %v12756_v49 = vpop.permute.xlu1 %12755  ;;  %v12758_v23 = vpop.permute.xlu0 %12757 }
 0xbdd   :  { %19267 = vmatmul.mubr.msk.f32.vlgmr.msra.gmra.mrb[24].mxu1 %vm249_vm1, %v19264_v18  ;;  %v12769_v19 = vsel %vm12761_vm12, %v12756_v49, %v12758_v23  ;;  %v12768_v38 = vsel %vm12761_vm12, %v12754_v2, %v12756_v49 }
 0xbde   :  { %12996 = vmatprep.subr.mxu1 %v12769_v19  ;;  %13060 = vmatprep.mubr.f32.mxu1 %v20218_v4 }
 0xbdf   :  { %12997 = vmatpush1.msra.mxu1 %v12768_v38 }
 0xbe0   :  { %v12760_v6 = vpop.permute.xlu1 %12759  ;;  %v13539_v13 = vpop.permute.xlu0 %13538  ;;  %19595 = vmatprep.subr.mxu1 %v20218_v4 }
 0xbe1   :  { %v12770_v11 = vsel %vm12761_vm12, %v12758_v23, %v12760_v6  ;;  %19268 = vmatmul.mubr.msk.f32.vlgmr.msra.gmra.mrb[26].mxu1 %vm249_vm1, %v19264_v18 }
 0xbe2   :  { %19596 = vmatpush3.msra.mxu1 %v12770_v11  ;;  %19597 = vmatprep.mubr.msk.f32.mxu1 %vm20225_vm3, %v20218_v4 }
 0xbe3   :  { %13151 = vmatprep.subr.mxu1 %v21865_v21 }
 0xbe4   :  { %v13541_v42 = vpop.permute.xlu1 %13540  ;;  %v13537_v51 = vpop.permute.xlu0 %13536 }
 0xbe5   :  { %19598 = vmatmul.mubr.msk.f32.vlgmr.msra.gmra.mrb[28].mxu1 %vm249_vm1, %v19264_v18 }
 0xbe6   :  { %13152 = vmatpush1.msra.mxu1 %v21862_v45  ;;  %13215 = vmatprep.mubr.f32.mxu1 %v20218_v4 }
 0xbe7   :  { %13222 = vmatprep.subr.mxu1 %v21876_v17 }
 0xbe8   :  { %v13543_v53 = vpop.permute.xlu1 %13542  ;;  %v13545_v8 = vpop.permute.xlu0 %13544 }
 0xbe9   :  { %19271 = vmatmul.mubr.msk.f32.vlgmr.msra.gmra.mrb[20].mxu1 %vm249_vm1, %v19270_v52  ;;  %v13560_v16 = vsel %vm13556_vm13, %v13543_v53, %v13545_v8  ;;  %v13559_v40 = vsel %vm13556_vm13, %v13541_v42, %v13543_v53 }
 0xbea   :  { %13223 = vmatpush1.msra.mxu1 %v21873_v50  ;;  %13286 = vmatprep.mubr.f32.mxu1 %v20218_v4 }
 0xbeb   :  { %13293 = vmatprep.subr.mxu1 %v21886_v56 }
 0xbec   :  { %v13547_v21 = vpop.permute.xlu1 %13546  ;;  %v13549_v45 = vpop.permute.xlu0 %13548 }
 0xbed   :  { %19272 = vmatmul.mubr.msk.f32.vlgmr.msra.gmra.mrb[22].mxu1 %vm249_vm1, %v19270_v52  ;;  %v13562_v43 = vsel %vm13556_vm13, %v13547_v21, %v13549_v45  ;;  %v13561_v46 = vsel %vm13556_vm13, %v13545_v8, %v13547_v21 }
 0xbee   :  { %13294 = vmatpush1.msra.mxu1 %v21883_v1  ;;  %13357 = vmatprep.mubr.f32.mxu1 %v20218_v4  ;;  %v13558_v1 = vsel %vm13556_vm13, %v13539_v13, %v13541_v42 }
 0xbef   :  { %13364 = vmatprep.subr.mxu1 %v21896_v24 }
 0xbf0   :  { %v13551_v17 = vpop.permute.xlu1 %13550  ;;  %v13553_v59 = vpop.permute.xlu0 %13552 }
 0xbf1   :  { %19273 = vmatmul.mubr.msk.f32.vlgmr.msra.gmra.mrb[24].mxu1 %vm249_vm1, %v19270_v52  ;;  %v13564_v9 = vsel %vm13556_vm13, %v13551_v17, %v13553_v59  ;;  %v13563_v5 = vsel %vm13556_vm13, %v13549_v45, %v13551_v17 }
 0xbf2   :  { %13365 = vmatpush1.msra.mxu1 %v21893_v20  ;;  %13428 = vmatprep.mubr.f32.mxu1 %v20218_v4  ;;  %v13557_v20 = vsel %vm13556_vm13, %v13537_v51, %v13539_v13  ;;  %v19288_v13 = vld [vmem:[%s22764_s11 + $0x38] sm:$0xff] }
 0xbf3   :  { %19600 = vmatprep.subr.mxu1 %v20218_v4 }
 0xbf4   :  { %v13555_v50 = vpop.permute.xlu1 %13554  ;;  %v13946_v56 = vpop.permute.xlu0 %13945 }
 0xbf5   :  { %19274 = vmatmul.mubr.msk.f32.vlgmr.msra.gmra.mrb[26].mxu1 %vm249_vm1, %v19270_v52  ;;  %v13565_v26 = vsel %vm13556_vm13, %v13553_v59, %v13555_v50 }
 0xbf6   :  { %19601 = vmatpush3.msra.mxu1 %v21903_v12  ;;  %19602 = vmatprep.mubr.msk.f32.mxu1 %vm20225_vm3, %v20218_v4  ;;  %v19276_v12 = vld [vmem:[%s22764_s11 + $0x28] sm:$0xff] }
 0xbf7   :  { %13578 = vmatprep.subr.mxu1 %v13558_v1 }
 0xbf8   :  { %v13948_v24 = vpop.permute.xlu1 %13947  ;;  %v13944_v61 = vpop.permute.xlu0 %13943 }
 0xbf9   :  { %19603 = vmatmul.mubr.msk.f32.vlgmr.msra.gmra.mrb[28].mxu1 %vm249_vm1, %v19270_v52  ;;  %v13965_v27 = vsel %vm13963_vm14, %v13946_v56, %v13948_v24  ;;  %v13964_v36 = vsel %vm13963_vm14, %v13944_v61, %v13946_v56 }
 0xbfa   :  { %13579 = vmatpush1.msra.mxu1 %v13557_v20  ;;  %13642 = vmatprep.mubr.f32.mxu1 %v20218_v4 }
 0xbfb   :  { %13649 = vmatprep.subr.mxu1 %v13560_v16 }
 0xbfc   :  { %v13950_v29 = vpop.permute.xlu1 %13949  ;;  %v13952_v47 = vpop.permute.xlu0 %13951 }
 0xbfd   :  { %19277 = vmatmul.mubr.msk.f32.vlgmr.msra.gmra.mrb[20].mxu1 %vm249_vm1, %v19276_v12  ;;  %v13967_v58 = vsel %vm13963_vm14, %v13950_v29, %v13952_v47  ;;  %v13966_v18 = vsel %vm13963_vm14, %v13948_v24, %v13950_v29 }
 0xbfe   :  { %13650 = vmatpush1.msra.mxu1 %v13559_v40  ;;  %13713 = vmatprep.mubr.f32.mxu1 %v20218_v4 }
 0xbff   :  { %13720 = vmatprep.subr.mxu1 %v13562_v43 }
 0xc00   :  { %v13954_v54 = vpop.permute.xlu1 %13953  ;;  %v13956_v48 = vpop.permute.xlu0 %13955 }
 0xc01   :  { %19278 = vmatmul.mubr.msk.f32.vlgmr.msra.gmra.mrb[22].mxu1 %vm249_vm1, %v19276_v12  ;;  %v13969_v41 = vsel %vm13963_vm14, %v13954_v54, %v13956_v48  ;;  %v13968_v31 = vsel %vm13963_vm14, %v13952_v47, %v13954_v54 }
 0xc02   :  { %13721 = vmatpush1.msra.mxu1 %v13561_v46  ;;  %13784 = vmatprep.mubr.f32.mxu1 %v20218_v4 }
 0xc03   :  { %13791 = vmatprep.subr.mxu1 %v13564_v9 }
 0xc04   :  { %v13958_v63 = vpop.permute.xlu1 %13957  ;;  %v13960_v25 = vpop.permute.xlu0 %13959 }
 0xc05   :  { %19279 = vmatmul.mubr.msk.f32.vlgmr.msra.gmra.mrb[24].mxu1 %vm249_vm1, %v19276_v12  ;;  %v13971_v44 = vsel %vm13963_vm14, %v13958_v63, %v13960_v25  ;;  %v13970_v35 = vsel %vm13963_vm14, %v13956_v48, %v13958_v63 }
 0xc06   :  { %13792 = vmatpush1.msra.mxu1 %v13563_v5  ;;  %13855 = vmatprep.mubr.f32.mxu1 %v20218_v4 }
 0xc07   :  { %19605 = vmatprep.subr.mxu1 %v20218_v4 }
 0xc08   :  { %v13962_v30 = vpop.permute.xlu1 %13961  ;;  %v14353_v15 = vpop.permute.xlu0 %14352 }
 0xc09   :  { %19280 = vmatmul.mubr.msk.f32.vlgmr.msra.gmra.mrb[26].mxu1 %vm249_vm1, %v19276_v12  ;;  %v13972_v34 = vsel %vm13963_vm14, %v13960_v25, %v13962_v30 }
 0xc0a   :  { %19606 = vmatpush3.msra.mxu1 %v13565_v26  ;;  %19607 = vmatprep.mubr.msk.f32.mxu1 %vm20225_vm3, %v20218_v4 }
 0xc0b   :  { %13985 = vmatprep.subr.mxu1 %v13965_v27 }
 0xc0c   :  { %v14355_v0 = vpop.permute.xlu1 %14354  ;;  %v14351_v33 = vpop.permute.xlu0 %14350 }
 0xc0d   :  { %19608 = vmatmul.mubr.msk.f32.vlgmr.msra.gmra.mrb[28].mxu1 %vm249_vm1, %v19276_v12  ;;  %v14372_v19 = vsel %vm14370_vm15, %v14353_v15, %v14355_v0  ;;  %v14371_v38 = vsel %vm14370_vm15, %v14351_v33, %v14353_v15  ;;  %v19294_v12 = vld [vmem:[%s22764_s11 + $0x40] sm:$0xff] }
 0xc0e   :  { %13986 = vmatpush1.msra.mxu1 %v13964_v36  ;;  %14049 = vmatprep.mubr.f32.mxu1 %v20218_v4 }
 0xc0f   :  { %14056 = vmatprep.subr.mxu1 %v13967_v58 }
 0xc10   :  { %v14357_v55 = vpop.permute.xlu1 %14356  ;;  %v14359_v62 = vpop.permute.xlu0 %14358 }
 0xc11   :  { %19283 = vmatmul.mubr.msk.f32.vlgmr.msra.gmra.mrb[20].mxu1 %vm249_vm1, %v19282_v39  ;;  %v14374_v6 = vsel %vm14370_vm15, %v14357_v55, %v14359_v62  ;;  %v14373_v51 = vsel %vm14370_vm15, %v14355_v0, %v14357_v55 }
 0xc12   :  { %14057 = vmatpush1.msra.mxu1 %v13966_v18  ;;  %14120 = vmatprep.mubr.f32.mxu1 %v20218_v4 }
 0xc13   :  { %14127 = vmatprep.subr.mxu1 %v13969_v41 }
 0xc14   :  { %v14361_v37 = vpop.permute.xlu1 %14360  ;;  %v14363_v2 = vpop.permute.xlu0 %14362 }
 0xc15   :  { %19284 = vmatmul.mubr.msk.f32.vlgmr.msra.gmra.mrb[22].mxu1 %vm249_vm1, %v19282_v39  ;;  %v14376_v52 = vsel %vm14370_vm15, %v14361_v37, %v14363_v2  ;;  %v14375_v21 = vsel %vm14370_vm15, %v14359_v62, %v14361_v37 }
 0xc16   :  { %14128 = vmatpush1.msra.mxu1 %v13968_v31  ;;  %14191 = vmatprep.mubr.f32.mxu1 %v20218_v4 }
 0xc17   :  { %14198 = vmatprep.subr.mxu1 %v13971_v44 }
 0xc18   :  { %v14365_v49 = vpop.permute.xlu1 %14364  ;;  %v14367_v23 = vpop.permute.xlu0 %14366 }
 0xc19   :  { %19285 = vmatmul.mubr.msk.f32.vlgmr.msra.gmra.mrb[24].mxu1 %vm249_vm1, %v19282_v39  ;;  %v14378_v45 = vsel %vm14370_vm15, %v14365_v49, %v14367_v23  ;;  %v14377_v17 = vsel %vm14370_vm15, %v14363_v2, %v14365_v49 }
 0xc1a   :  { %14199 = vmatpush1.msra.mxu1 %v13970_v35  ;;  %14262 = vmatprep.mubr.f32.mxu1 %v20218_v4 }
 0xc1b   :  { %19610 = vmatprep.subr.mxu1 %v20218_v4 }
 0xc1c   :  { %v14369_v11 = vpop.permute.xlu1 %14368  ;;  %v14760_v42 = vpop.permute.xlu0 %14759 }
 0xc1d   :  { %19286 = vmatmul.mubr.msk.f32.vlgmr.msra.gmra.mrb[26].mxu1 %vm249_vm1, %v19282_v39  ;;  %v14379_v56 = vsel %vm14370_vm15, %v14367_v23, %v14369_v11 }
 0xc1e   :  { %19611 = vmatpush3.msra.mxu1 %v13972_v34  ;;  %19612 = vmatprep.mubr.msk.f32.mxu1 %vm20225_vm3, %v20218_v4 }
 0xc1f   :  { %14392 = vmatprep.subr.mxu1 %v14372_v19 }
 0xc20   :  { %v14762_v53 = vpop.permute.xlu1 %14761  ;;  %v14758_v8 = vpop.permute.xlu0 %14757 }
 0xc21   :  { %19613 = vmatmul.mubr.msk.f32.vlgmr.msra.gmra.mrb[28].mxu1 %vm249_vm1, %v19282_v39  ;;  %v14779_v1 = vsel %vm14777_vm10, %v14760_v42, %v14762_v53  ;;  %v14778_v24 = vsel %vm14777_vm10, %v14758_v8, %v14760_v42 }
 0xc22   :  { %14393 = vmatpush1.msra.mxu1 %v14371_v38  ;;  %14456 = vmatprep.mubr.f32.mxu1 %v20218_v4 }
 0xc23   :  { %14463 = vmatprep.subr.mxu1 %v14374_v6 }
 0xc24   :  { %v14764_v59 = vpop.permute.xlu1 %14763  ;;  %v14766_v50 = vpop.permute.xlu0 %14765 }
 0xc25   :  { %19289 = vmatmul.mubr.msk.f32.vlgmr.msra.gmra.mrb[20].mxu1 %vm249_vm1, %v19288_v13  ;;  %v14781_v16 = vsel %vm14777_vm10, %v14764_v59, %v14766_v50  ;;  %v14780_v29 = vsel %vm14777_vm10, %v14762_v53, %v14764_v59 }
 0xc26   :  { %14464 = vmatpush1.msra.mxu1 %v14373_v51  ;;  %14527 = vmatprep.mubr.f32.mxu1 %v20218_v4 }
 0xc27   :  { %14534 = vmatprep.subr.mxu1 %v14376_v52 }
 0xc28   :  { %v14768_v61 = vpop.permute.xlu1 %14767  ;;  %v14770_v20 = vpop.permute.xlu0 %14769 }
 0xc29   :  { %19290 = vmatmul.mubr.msk.f32.vlgmr.msra.gmra.mrb[22].mxu1 %vm249_vm1, %v19288_v13  ;;  %v14783_v47 = vsel %vm14777_vm10, %v14768_v61, %v14770_v20  ;;  %v14782_v54 = vsel %vm14777_vm10, %v14766_v50, %v14768_v61 }
 0xc2a   :  { %14535 = vmatpush1.msra.mxu1 %v14375_v21  ;;  %14598 = vmatprep.mubr.f32.mxu1 %v20218_v4 }
 0xc2b   :  { %14605 = vmatprep.subr.mxu1 %v14378_v45 }
 0xc2c   :  { %v14772_v40 = vpop.permute.xlu1 %14771  ;;  %v14774_v43 = vpop.permute.xlu0 %14773 }
 0xc2d   :  { %19291 = vmatmul.mubr.msk.f32.vlgmr.msra.gmra.mrb[24].mxu1 %vm249_vm1, %v19288_v13  ;;  %v14785_v48 = vsel %vm14777_vm10, %v14772_v40, %v14774_v43  ;;  %v14784_v46 = vsel %vm14777_vm10, %v14770_v20, %v14772_v40 }
 0xc2e   :  { %14606 = vmatpush1.msra.mxu1 %v14377_v17  ;;  %14669 = vmatprep.mubr.f32.mxu1 %v20218_v4 }
 0xc2f   :  { %19615 = vmatprep.subr.mxu1 %v20218_v4 }
 0xc30   :  { %v14776_v9 = vpop.permute.xlu1 %14775 }
 0xc31   :  { %19292 = vmatmul.mubr.msk.f32.vlgmr.msra.gmra.mrb[26].mxu1 %vm249_vm1, %v19288_v13  ;;  %v14786_v63 = vsel %vm14777_vm10, %v14774_v43, %v14776_v9 }
 0xc32   :  { %19616 = vmatpush3.msra.mxu1 %v14379_v56  ;;  %19617 = vmatprep.mubr.msk.f32.mxu1 %vm20225_vm3, %v20218_v4  ;;  %v22258_v56 = vld [vmem:[%s22776_s26 + $0x8] ss:$0 sm:$0xff] }
 0xc33   :  { %14799 = vmatprep.subr.mxu1 %v14779_v1 }
 0xc35   :  { %19618 = vmatmul.mubr.msk.f32.vlgmr.msra.gmra.mrb[28].mxu1 %vm249_vm1, %v19288_v13 }
 0xc36   :  { %14800 = vmatpush1.msra.mxu1 %v14778_v24  ;;  %14863 = vmatprep.mubr.f32.mxu1 %v20218_v4 }
 0xc37   :  { %14870 = vmatprep.subr.mxu1 %v14781_v16 }
 0xc39   :  { %19295 = vmatmul.mubr.msk.f32.vlgmr.msra.gmra.mrb[20].mxu1 %vm249_vm1, %v19294_v12 }
 0xc3a   :  { %14871 = vmatpush1.msra.mxu1 %v14780_v29  ;;  %14934 = vmatprep.mubr.f32.mxu1 %v20218_v4 }
 0xc3b   :  { %14941 = vmatprep.subr.mxu1 %v14783_v47 }
 0xc3d   :  { %19296 = vmatmul.mubr.msk.f32.vlgmr.msra.gmra.mrb[22].mxu1 %vm249_vm1, %v19294_v12 }
 0xc3e   :  { %14942 = vmatpush1.msra.mxu1 %v14782_v54  ;;  %15005 = vmatprep.mubr.f32.mxu1 %v20218_v4 }
 0xc3f   :  { %15012 = vmatprep.subr.mxu1 %v14785_v48 }
 0xc41   :  { %19297 = vmatmul.mubr.msk.f32.vlgmr.msra.gmra.mrb[24].mxu1 %vm249_vm1, %v19294_v12 }
 0xc42   :  { %15013 = vmatpush1.msra.mxu1 %v14784_v46  ;;  %15076 = vmatprep.mubr.f32.mxu1 %v20218_v4 }
 0xc43   :  { %19620 = vmatprep.subr.mxu1 %v20218_v4 }
 0xc45   :  { %19298 = vmatmul.mubr.msk.f32.vlgmr.msra.gmra.mrb[26].mxu1 %vm249_vm1, %v19294_v12 }
 0xc46   :  { %19621 = vmatpush3.msra.mxu1 %v14786_v63  ;;  %19622 = vmatprep.mubr.msk.f32.mxu1 %vm20225_vm3, %v20218_v4  ;;  %v15210_v63 = vstv %s19300_s2 }
 0xc49   :  { %19623 = vmatmul.mubr.msk.f32.vlgmr.msra.gmra.mrb[28].mxu1 %vm249_vm1, %v19294_v12 }
 0xd0c   :  { %v14865_v25 = vpop.f32.mrb[20].mxu1 }
 0xd0d   :  { %v22213_v5 = vmul.f32 %v14865_v25, %v20874_v57  ;;  %v14867_v30 = vpop.f32.mrb[21].mxu1  ;;  %v15207_v25 = vld [vmem:[%s22765_s12] sm:$0xff] }
 0xd0e   :  { %v22216_v15 = vmul.f32 %v14867_v30, %v20876_v60  ;;  %v15211_v30 = vmul.f32 %v15210_v63, %v15207_v25 }
 0xd0f   :  { %v15181_v26 = vmul.f32 %v22213_v5, %v22213_v5 }
 0xd10   :  { %v15171_v27 = vadd.f32 %v22216_v15, %v22213_v5  ;;  %v15182_v0 = vmul.f32 %v22216_v15, %v22216_v15  ;;  %v14936_v33 = vpop.f32.mrb[22].mxu1 }
 0xd11   :  { %v22225_v36 = vmul.f32 %v14936_v33, %v20878_v10  ;;  %v14938_v58 = vpop.f32.mrb[23].mxu1 }
 0xd12   :  { %v15190_v39 = vadd.f32 %v15182_v0, %v15181_v26  ;;  %v22228_v55 = vmul.f32 %v14938_v58, %v20883_v14  ;;  %v15213_v0 = vstv %s15208_s8 }
 0xd13   :  { %v15172_v18 = vadd.f32 %v15171_v27, %v22225_v36  ;;  %v15183_v62 = vmul.f32 %v22225_v36, %v22225_v36 }
 0xd14   :  { %v15184_v41 = vmul.f32 %v22228_v55, %v22228_v55  ;;  %v15007_v31 = vpop.f32.mrb[24].mxu1 }
 0xd15   :  { %v15191_v44 = vadd.f32 %v15190_v39, %v15183_v62  ;;  %v15173_v37 = vadd.f32 %v15172_v18, %v22228_v55  ;;  %v22237_v2 = vmul.f32 %v15007_v31, %v20900_v28  ;;  %v15009_v35 = vpop.f32.mrb[25].mxu1 }
 0xd16   :  { %v22240_v34 = vmul.f32 %v15009_v35, %v20907_v3 }
 0xd17   :  { %v15192_v49 = vadd.f32 %v15191_v44, %v15184_v41  ;;  %v15174_v23 = vadd.f32 %v15173_v37, %v22237_v2  ;;  %v15185_v19 = vmul.f32 %v22237_v2, %v22237_v2 }
 0xd18   :  { %v15186_v38 = vmul.f32 %v22240_v34, %v22240_v34  ;;  %v15078_v6 = vpop.f32.mrb[26].mxu1 }
 0xd19   :  { %v15193_v13 = vadd.f32 %v15192_v49, %v15185_v19  ;;  %v15175_v11 = vadd.f32 %v15174_v23, %v22240_v34  ;;  %v15168_v42 = vmul.f32 %v15078_v6, %v20909_v32  ;;  %v15080_v51 = vpop.f32.mrb[27].mxu1 }
 0xd1a   :  { %v22250_v52 = vmul.f32 %v15080_v51, %v20915_v7 }
 0xd1b   :  { %v15194_v53 = vadd.f32 %v15193_v13, %v15186_v38  ;;  %v15176_v8 = vadd.f32 %v15175_v11, %v15168_v42  ;;  %v15187_v21 = vmul.f32 %v15168_v42, %v15168_v42 }
 0xd1c   :  { %v15188_v45 = vmul.f32 %v22250_v52, %v22250_v52  ;;  %v15149_v17 = vpop.f32.mrb[28].mxu1 }
 0xd1d   :  { %v15195_v59 = vadd.f32 %v15194_v53, %v15187_v21  ;;  %v15177_v50 = vadd.f32 %v15176_v8, %v22250_v52  ;;  %v22261_v1 = vmul.f32 %v22258_v56, %v15149_v17  ;;  %v19624_v24 = vpop.f32.mrb[29].mxu1 }
 0xd1f   :  { %v15189_v61 = vmul.f32 %v22261_v1, %v22261_v1  ;;  %v15178_v20 = vadd.f32 %v15177_v50, %v22261_v1  ;;  %v15196_v16 = vadd.f32 %v15195_v59, %v15188_v45 }
 0xd21   :  { %15179 = vadd.xlane.f32.xlu0 %v15178_v20  ;;  %v15197_v12 = vadd.f32 %v15196_v16, %v15189_v61 }
 0xd23   :  { %15198 = vadd.xlane.f32.xlu1 %v15197_v12 }
 0xdae   :  { %v15180_v29 = vpop.xlane.xlu0 %15179 }
 0xdaf   :  { %v15200_v47 = vmul.f32 0.001953125, %v15180_v29 }
 0xdb0   :  { %v15199_v40 = vpop.xlane.xlu1 %15198 }
 0xdb1   :  { %v15202_v43 = vmul.f32 %v15200_v47, %v15200_v47  ;;  %v15201_v54 = vmul.f32 0.001953125, %v15199_v40  ;;  %v15215_v26 = vmul.f32 %v15207_v25, %v15200_v47 }
 0xdb3   :  { %v15203_v48 = vsub.f32 %v15201_v54, %v15202_v43 }
 0xdb5   :  { %v15204_v46 = vmax.f32 %v15203_v48, 0.0 }
 0xdb7   :  { %v15205_v9 = vadd.f32 1e-05, %v15204_v46 }
 0xdb9   :  { %20114 = vrsqrt.f32 %v15205_v9 }
 0xdc3   :  { %v20115_v27 = vpop.eup %20114 }
 0xdc4   :  { %v15216_v33 = vmul.f32 %v20115_v27, %v15215_v26  ;;  %v15212_v58 = vmul.f32 %v20115_v27, %v15211_v30 }
 0xdc6   :  { %15218 = vrot.lane.b32.xlu0 %v15216_v33, %s20221_s18  ;;  %v15214_v39 = vadd.f32 %v15213_v0, %v15212_v58 }
 0xdc8   :  { %15225 = vperm.xlu1 %20106, %v15214_v39  }
 0xdcc   :  { %15319 = vrot.lane.b32.xlu1 %v20218_v4, %s20219_s22 }
 0xe38   :  { %v15219_v18 = vpop.permute.xlu0 %15218 }
 0xe39   :  { %v15221_v62 = vsub.f32 %v15207_v25, %v15219_v18 }
 0xe3b   :  { %v15222_v41 = vmul.f32 %v15221_v62, %v15210_v63  ;;  %v19301_v62 = vld [vmem:[%s22767_s14 + $0x8] sm:$0xff] }
 0xe3d   :  { %15239 = vperm.xlu0 %20104, %v15222_v41  }
 0xe47   :  { %v15226_v31 = vpop.permute.xlu1 %15225 }
 0xe48   :  { %v15228_v44 = vmul.f32 %v15226_v31, %v22213_v5  ;;  %v15229_v37 = vmul.f32 %v15226_v31, %v22216_v15  ;;  %v15230_v49 = vmul.f32 %v15226_v31, %v22225_v36  ;;  %v15231_v23 = vmul.f32 %v15226_v31, %v22228_v55 }
 0xe49   :  { %v15232_v11 = vmul.f32 %v15226_v31, %v22237_v2  ;;  %v15233_v51 = vmul.f32 %v15226_v31, %v22240_v34  ;;  %v15234_v5 = vmul.f32 %v15226_v31, %v15168_v42  ;;  %v15235_v55 = vmul.f32 %v15226_v31, %v22250_v52 }
 0xe4a   :  { %v15236_v12 = vmul.f32 %v15226_v31, %v22261_v1 }
 0xebc   :  { %v15240_v35 = vpop.permute.xlu0 %15239 }
 0xebd   :  { %v15242_v19 = vadd.f32 %v15240_v35, %v15228_v44  ;;  %v15243_v38 = vadd.f32 %v15240_v35, %v15229_v37  ;;  %v15244_v6 = vadd.f32 %v15240_v35, %v15230_v49  ;;  %v15245_v13 = vadd.f32 %v15240_v35, %v15231_v23 }
 0xebe   :  { %v15246_v21 = vadd.f32 %v15240_v35, %v15232_v11  ;;  %v15247_v15 = vadd.f32 %v15240_v35, %v15233_v51  ;;  %v15248_v50 = vadd.f32 %v15240_v35, %v15234_v5  ;;  %v15249_v24 = vadd.f32 %v15240_v35, %v15235_v55 }
 0xebf   :  { %vm15251_vm11 = vcmp.ge.f32.partialorder %v15242_v19, 0.0  ;;  %vm15252_vm12 = vcmp.ge.f32.partialorder %v15243_v38, 0.0  ;;  %v15260_v53 = vmul.f32 0.2, %v15242_v19  ;;  %v15261_v8 = vmul.f32 0.2, %v15243_v38 }
 0xec0   :  { %v15262_v45 = vmul.f32 0.2, %v15244_v6  ;;  %v15263_v17 = vmul.f32 0.2, %v15245_v13  ;;  %vm15253_vm13 = vcmp.ge.f32.partialorder %v15244_v6, 0.0  ;;  %vm15254_vm14 = vcmp.ge.f32.partialorder %v15245_v13, 0.0 }
 0xec1   :  { %v15269_v36 = vsel %vm15251_vm11, %v15242_v19, %v15260_v53  ;;  %v15270_v59 = vsel %vm15252_vm12, %v15243_v38, %v15261_v8  ;;  %v15264_v61 = vmul.f32 0.2, %v15246_v21  ;;  %v15265_v42 = vmul.f32 0.2, %v15247_v15 }
 0xec2   :  { %v22280_v2 = vmul.f32 %v15269_v36, %v20874_v57  ;;  %v22283_v34 = vmul.f32 %v15270_v59, %v20876_v60  ;;  %v15271_v20 = vsel %vm15253_vm13, %v15244_v6, %v15262_v45  ;;  %v15272_v16 = vsel %vm15254_vm14, %v15245_v13, %v15263_v17  ;;  %v15306_v17 = vld [vmem:[%s22767_s14] sm:$0xff] }
 0xec3   :  { %vm15255_vm15 = vcmp.ge.f32.partialorder %v15246_v21, 0.0  ;;  %vm15256_vm10 = vcmp.ge.f32.partialorder %v15247_v15, 0.0  ;;  %v15250_v52 = vadd.f32 %v15240_v35, %v15236_v12  ;;  %v22291_v29 = vmul.f32 %v15271_v20, %v20878_v10 }
 0xec4   :  { %15323 = vrot.lane.b32.xlu0 %v22283_v34, %s20219_s22  ;;  %15321 = vrot.lane.b32.xlu1 %v22280_v2, %s20219_s22  ;;  %v22294_v47 = vmul.f32 %v15272_v16, %v20883_v14  ;;  %v15266_v40 = vmul.f32 0.2, %v15248_v50  ;;  %v15267_v43 = vmul.f32 0.2, %v15249_v24  ;;  %v15273_v54 = vsel %vm15255_vm15, %v15246_v21, %v15264_v61 }
 0xec5   :  { %v15274_v48 = vsel %vm15256_vm10, %v15247_v15, %v15265_v42  ;;  %vm15257_vm11 = vcmp.ge.f32.partialorder %v15248_v50, 0.0  ;;  %vm15258_vm12 = vcmp.ge.f32.partialorder %v15249_v24, 0.0  ;;  %v22301_v1 = vmul.f32 %v15273_v54, %v20900_v28 }
 0xec6   :  { %v22304_v46 = vmul.f32 %v15274_v48, %v20907_v3  ;;  %v15268_v9 = vmul.f32 0.2, %v15250_v52  ;;  %v15275_v63 = vsel %vm15257_vm11, %v15248_v50, %v15266_v40  ;;  %v15276_v25 = vsel %vm15258_vm12, %v15249_v24, %v15267_v43 }
 0xec7   :  { %vm15259_vm13 = vcmp.ge.f32.partialorder %v15250_v52, 0.0  ;;  %v22311_v30 = vmul.f32 %v15275_v63, %v20909_v32  ;;  %v22314_v26 = vmul.f32 %v15276_v25, %v20915_v7 }
 0xec8   :  { %15325 = vrot.lane.b32.xlu0 %v22291_v29, %s20219_s22  ;;  %15327 = vrot.lane.b32.xlu1 %v22294_v47, %s20219_s22  ;;  %v15277_v27 = vsel %vm15259_vm13, %v15250_v52, %v15268_v9 }
 0xec9   :  { %v22321_v0 = vmul.f32 %v22258_v56, %v15277_v27  ;;  %v15320_v56 = vpop.permute.xlu1 %15319 }
 0xecc   :  { %15329 = vrot.lane.b32.xlu0 %v22301_v1, %s20219_s22  ;;  %15331 = vrot.lane.b32.xlu1 %v22304_v46, %s20219_s22 }
 0xed0   :  { %15333 = vrot.lane.b32.xlu0 %v22311_v30, %s20219_s22  ;;  %15335 = vrot.lane.b32.xlu1 %v22314_v26, %s20219_s22 }
 0xed4   :  { %15337 = vrot.lane.b32.xlu0 %v22321_v0, %s20219_s22  ;;  %15714 = vrot.lane.b32.xlu1 %v20218_v4, %s20217_s13 }
 0xed8   :  { %15718 = vrot.lane.b32.xlu0 %v22283_v34, %s20217_s13  ;;  %15716 = vrot.lane.b32.xlu1 %v22280_v2, %s20217_s13 }
 0xedc   :  { %15720 = vrot.lane.b32.xlu0 %v22291_v29, %s20217_s13  ;;  %15722 = vrot.lane.b32.xlu1 %v22294_v47, %s20217_s13 }
 0xee0   :  { %15724 = vrot.lane.b32.xlu0 %v22301_v1, %s20217_s13  ;;  %15726 = vrot.lane.b32.xlu1 %v22304_v46, %s20217_s13 }
 0xee4   :  { %15728 = vrot.lane.b32.xlu0 %v22311_v30, %s20217_s13  ;;  %15730 = vrot.lane.b32.xlu1 %v22314_v26, %s20217_s13 }
 0xee8   :  { %15732 = vrot.lane.b32.xlu0 %v22321_v0, %s20217_s13  ;;  %16111 = vrot.lane.b32.xlu1 %v20218_v4, %s20220_s27 }
 0xeec   :  { %16115 = vrot.lane.b32.xlu0 %v22283_v34, %s20220_s27  ;;  %16113 = vrot.lane.b32.xlu1 %v22280_v2, %s20220_s27 }
 0xef0   :  { %16117 = vrot.lane.b32.xlu0 %v22291_v29, %s20220_s27  ;;  %16119 = vrot.lane.b32.xlu1 %v22294_v47, %s20220_s27 }
 0xef4   :  { %16121 = vrot.lane.b32.xlu0 %v22301_v1, %s20220_s27  ;;  %16123 = vrot.lane.b32.xlu1 %v22304_v46, %s20220_s27 }
 0xef8   :  { %16125 = vrot.lane.b32.xlu0 %v22311_v30, %s20220_s27  ;;  %16127 = vrot.lane.b32.xlu1 %v22314_v26, %s20220_s27 }
 0xefc   :  { %16129 = vrot.lane.b32.xlu0 %v22321_v0, %s20220_s27  ;;  %16517 = vrot.lane.b32.xlu1 %v20218_v4, %s20221_s18 }
 0xf00   :  { %16521 = vrot.lane.b32.xlu0 %v22283_v34, %s20221_s18  ;;  %16519 = vrot.lane.b32.xlu1 %v22280_v2, %s20221_s18 }
 0xf04   :  { %16523 = vrot.lane.b32.xlu0 %v22291_v29, %s20221_s18  ;;  %16525 = vrot.lane.b32.xlu1 %v22294_v47, %s20221_s18 }
 0xf08   :  { %16527 = vrot.lane.b32.xlu0 %v22301_v1, %s20221_s18  ;;  %16529 = vrot.lane.b32.xlu1 %v22304_v46, %s20221_s18 }
 0xf0c   :  { %16531 = vrot.lane.b32.xlu0 %v22311_v30, %s20221_s18  ;;  %16533 = vrot.lane.b32.xlu1 %v22314_v26, %s20221_s18 }
 0xf10   :  { %16535 = vrot.lane.b32.xlu0 %v22321_v0, %s20221_s18  ;;  %17313 = vrot.lane.b32.xlu1 %v22283_v34, %s20222_s16 }
 0xf14   :  { %17315 = vrot.lane.b32.xlu0 %v22291_v29, %s20222_s16  ;;  %17311 = vrot.lane.b32.xlu1 %v22280_v2, %s20222_s16 }
 0xf18   :  { %17317 = vrot.lane.b32.xlu0 %v22294_v47, %s20222_s16  ;;  %17319 = vrot.lane.b32.xlu1 %v22301_v1, %s20222_s16 }
 0xf1c   :  { %17321 = vrot.lane.b32.xlu0 %v22304_v46, %s20222_s16  ;;  %17323 = vrot.lane.b32.xlu1 %v22311_v30, %s20222_s16 }
 0xf20   :  { %17325 = vrot.lane.b32.xlu0 %v22314_v26, %s20222_s16  ;;  %17327 = vrot.lane.b32.xlu1 %v22321_v0, %s20222_s16 }
 0xf24   :  { %17329 = vrot.lane.b32.xlu0 %v20218_v4, %s20222_s16  ;;  %17719 = vrot.lane.b32.xlu1 %v22283_v34, %s20223_s7 }
 0xf28   :  { %17721 = vrot.lane.b32.xlu0 %v22291_v29, %s20223_s7  ;;  %17717 = vrot.lane.b32.xlu1 %v22280_v2, %s20223_s7 }
 0xf2c   :  { %17723 = vrot.lane.b32.xlu0 %v22294_v47, %s20223_s7  ;;  %17725 = vrot.lane.b32.xlu1 %v22301_v1, %s20223_s7 }
 0xf30   :  { %17727 = vrot.lane.b32.xlu0 %v22304_v46, %s20223_s7  ;;  %17729 = vrot.lane.b32.xlu1 %v22311_v30, %s20223_s7 }
 0xf34   :  { %17731 = vrot.lane.b32.xlu0 %v22314_v26, %s20223_s7  ;;  %17733 = vrot.lane.b32.xlu1 %v22321_v0, %s20223_s7 }
 0xf36   :  { %v15324_v33 = vpop.permute.xlu0 %15323  ;;  %v15322_v58 = vpop.permute.xlu1 %15321 }
 0xf37   :  { %v15339_v39 = vsel %vm230_vm2, %v15320_v56, %v15322_v58  ;;  %v15340_v18 = vsel %vm230_vm2, %v15322_v58, %v15324_v33  ;;  %v19312_v56 = vld [vmem:[%s22767_s14 + $0x10] sm:$0xff] }
 0xf38   :  { %17735 = vrot.lane.b32.xlu0 %v20218_v4, %s20223_s7  ;;  %18125 = vrot.lane.b32.xlu1 %v22283_v34, %s20224_s19 }
 0xf39   :  { %15360 = vmatprep.subr.mxu0 %v15340_v18 }
 0xf3a   :  { %15361 = vmatpush1.msra.mxu0 %v15339_v39  ;;  %v15326_v41 = vpop.permute.xlu0 %15325  ;;  %v15328_v31 = vpop.permute.xlu1 %15327 }
 0xf3b   :  { %v15341_v44 = vsel %vm230_vm2, %v15324_v33, %v15326_v41  ;;  %19302 = vmatmul.mubr.msk.f32.vlgmr.msra.gmra.mrb[16].mxu0 %vm249_vm1, %v19301_v62  ;;  %v15342_v37 = vsel %vm230_vm2, %v15326_v41, %v15328_v31 }
 0xf3c   :  { %18127 = vrot.lane.b32.xlu0 %v22291_v29, %s20224_s19  ;;  %18123 = vrot.lane.b32.xlu1 %v22280_v2, %s20224_s19 }
 0xf3d   :  { %15431 = vmatprep.subr.mxu0 %v15342_v37  ;;  %15495 = vmatprep.mubr.f32.mxu0 %v20218_v4 }
 0xf3e   :  { %15432 = vmatpush1.msra.mxu0 %v15341_v44  ;;  %v15330_v35 = vpop.permute.xlu0 %15329  ;;  %v15332_v49 = vpop.permute.xlu1 %15331 }
 0xf3f   :  { %v15343_v23 = vsel %vm230_vm2, %v15328_v31, %v15330_v35  ;;  %19303 = vmatmul.mubr.msk.f32.vlgmr.msra.gmra.mrb[18].mxu0 %vm249_vm1, %v19301_v62  ;;  %v15344_v19 = vsel %vm230_vm2, %v15330_v35, %v15332_v49 }
 0xf40   :  { %18129 = vrot.lane.b32.xlu0 %v22294_v47, %s20224_s19  ;;  %18131 = vrot.lane.b32.xlu1 %v22301_v1, %s20224_s19 }
 0xf41   :  { %15502 = vmatprep.subr.mxu0 %v15344_v19  ;;  %15566 = vmatprep.mubr.f32.mxu0 %v20218_v4 }
 0xf42   :  { %15503 = vmatpush1.msra.mxu0 %v15343_v23  ;;  %v15334_v38 = vpop.permute.xlu0 %15333  ;;  %v15336_v6 = vpop.permute.xlu1 %15335 }
 0xf43   :  { %v15345_v13 = vsel %vm230_vm2, %v15332_v49, %v15334_v38  ;;  %19304 = vmatmul.mubr.msk.f32.vlgmr.msra.gmra.mrb[20].mxu0 %vm249_vm1, %v19301_v62  ;;  %v15346_v11 = vsel %vm230_vm2, %v15334_v38, %v15336_v6 }
 0xf44   :  { %18133 = vrot.lane.b32.xlu0 %v22304_v46, %s20224_s19  ;;  %18135 = vrot.lane.b32.xlu1 %v22311_v30, %s20224_s19 }
 0xf45   :  { %15573 = vmatprep.subr.mxu0 %v15346_v11  ;;  %15637 = vmatprep.mubr.f32.mxu0 %v20218_v4 }
 0xf46   :  { %15574 = vmatpush1.msra.mxu0 %v15345_v13  ;;  %v15338_v51 = vpop.permute.xlu0 %15337  ;;  %v15715_v53 = vpop.permute.xlu1 %15714 }
 0xf47   :  { %v15347_v8 = vsel %vm230_vm2, %v15336_v6, %v15338_v51  ;;  %19305 = vmatmul.mubr.msk.f32.vlgmr.msra.gmra.mrb[22].mxu0 %vm249_vm1, %v19301_v62  ;;  %19625 = vmatprep.subr.mxu0 %v20218_v4 }
 0xf48   :  { %18137 = vrot.lane.b32.xlu0 %v22314_v26, %s20224_s19  ;;  %18139 = vrot.lane.b32.xlu1 %v22321_v0, %s20224_s19 }
 0xf49   :  { %19626 = vmatpush3.msra.mxu0 %v15347_v8  ;;  %19627 = vmatprep.mubr.msk.f32.mxu0 %vm20225_vm3, %v20218_v4  ;;  %v19318_v8 = vld [vmem:[%s22767_s14 + $0x18] sm:$0xff] }
 0xf4a   :  { %v15719_v5 = vpop.permute.xlu0 %15718  ;;  %v15717_v21 = vpop.permute.xlu1 %15716 }
 0xf4b   :  { %19628 = vmatmul.mubr.msk.f32.vlgmr.msra.gmra.mrb[24].mxu0 %vm249_vm1, %v19301_v62  ;;  %v15734_v15 = vsel %vm627_vm0, %v15715_v53, %v15717_v21  ;;  %v15735_v45 = vsel %vm627_vm0, %v15717_v21, %v15719_v5 }
 0xf4c   :  { %18141 = vrot.lane.b32.xlu0 %v20218_v4, %s20224_s19  ;;  %18531 = vrot.lane.b32.xlu1 %v22283_v34, %s20226_s24 }
 0xf4d   :  { %15755 = vmatprep.subr.mxu0 %v15735_v45  ;;  %15819 = vmatprep.mubr.f32.mxu0 %v20218_v4 }
 0xf4e   :  { %15756 = vmatpush1.msra.mxu0 %v15734_v15  ;;  %v15721_v36 = vpop.permute.xlu0 %15720  ;;  %v15723_v55 = vpop.permute.xlu1 %15722 }
 0xf4f   :  { %v15736_v59 = vsel %vm627_vm0, %v15719_v5, %v15721_v36  ;;  %19307 = vmatmul.mubr.msk.f32.vlgmr.msra.gmra.mrb[16].mxu0 %vm249_vm1, %v15306_v17  ;;  %v15737_v50 = vsel %vm627_vm0, %v15721_v36, %v15723_v55 }
 0xf50   :  { %18533 = vrot.lane.b32.xlu0 %v22291_v29, %s20226_s24  ;;  %18529 = vrot.lane.b32.xlu1 %v22280_v2, %s20226_s24 }
 0xf51   :  { %15826 = vmatprep.subr.mxu0 %v15737_v50  ;;  %15890 = vmatprep.mubr.f32.mxu0 %v20218_v4 }
 0xf52   :  { %15827 = vmatpush1.msra.mxu0 %v15736_v59  ;;  %v15725_v24 = vpop.permute.xlu0 %15724  ;;  %v15727_v61 = vpop.permute.xlu1 %15726 }
 0xf53   :  { %v15738_v42 = vsel %vm627_vm0, %v15723_v55, %v15725_v24  ;;  %19308 = vmatmul.mubr.msk.f32.vlgmr.msra.gmra.mrb[18].mxu0 %vm249_vm1, %v15306_v17  ;;  %v15739_v20 = vsel %vm627_vm0, %v15725_v24, %v15727_v61 }
 0xf54   :  { %18535 = vrot.lane.b32.xlu0 %v22294_v47, %s20226_s24  ;;  %18537 = vrot.lane.b32.xlu1 %v22301_v1, %s20226_s24 }
 0xf55   :  { %15897 = vmatprep.subr.mxu0 %v15739_v20  ;;  %15961 = vmatprep.mubr.f32.mxu0 %v20218_v4 }
 0xf56   :  { %15898 = vmatpush1.msra.mxu0 %v15738_v42  ;;  %v15729_v16 = vpop.permute.xlu0 %15728  ;;  %v15731_v12 = vpop.permute.xlu1 %15730 }
 0xf57   :  { %v15740_v52 = vsel %vm627_vm0, %v15727_v61, %v15729_v16  ;;  %19309 = vmatmul.mubr.msk.f32.vlgmr.msra.gmra.mrb[20].mxu0 %vm249_vm1, %v15306_v17  ;;  %v15741_v40 = vsel %vm627_vm0, %v15729_v16, %v15731_v12 }
 0xf58   :  { %18539 = vrot.lane.b32.xlu0 %v22304_v46, %s20226_s24  ;;  %18541 = vrot.lane.b32.xlu1 %v22311_v30, %s20226_s24 }
 0xf59   :  { %15968 = vmatprep.subr.mxu0 %v15741_v40  ;;  %16032 = vmatprep.mubr.f32.mxu0 %v20218_v4 }
 0xf5a   :  { %15969 = vmatpush1.msra.mxu0 %v15740_v52  ;;  %v15733_v43 = vpop.permute.xlu0 %15732  ;;  %v16112_v54 = vpop.permute.xlu1 %16111 }
 0xf5b   :  { %v15742_v48 = vsel %vm627_vm0, %v15731_v12, %v15733_v43  ;;  %19310 = vmatmul.mubr.msk.f32.vlgmr.msra.gmra.mrb[22].mxu0 %vm249_vm1, %v15306_v17  ;;  %19630 = vmatprep.subr.mxu0 %v20218_v4  ;;  %v19324_v43 = vld [vmem:[%s22767_s14 + $0x20] sm:$0xff] }
 0xf5c   :  { %18543 = vrot.lane.b32.xlu0 %v22314_v26, %s20226_s24  ;;  %18545 = vrot.lane.b32.xlu1 %v22321_v0, %s20226_s24 }
 0xf5d   :  { %19631 = vmatpush3.msra.mxu0 %v15742_v48  ;;  %19632 = vmatprep.mubr.msk.f32.mxu0 %vm20225_vm3, %v20218_v4 }
 0xf5e   :  { %v16116_v9 = vpop.permute.xlu0 %16115  ;;  %v16114_v63 = vpop.permute.xlu1 %16113 }
 0xf5f   :  { %19633 = vmatmul.mubr.msk.f32.vlgmr.msra.gmra.mrb[24].mxu0 %vm249_vm1, %v15306_v17  ;;  %v16131_v25 = vsel %vm1025_vm4, %v16112_v54, %v16114_v63  ;;  %v16132_v27 = vsel %vm1025_vm4, %v16114_v63, %v16116_v9 }
 0xf60   :  { %18547 = vrot.lane.b32.xlu0 %v20218_v4, %s20226_s24  ;;  %16152 = vmatprep.subr.mxu0 %v16132_v27 }
 0xf61   :  { %16153 = vmatpush1.msra.mxu0 %v16131_v25  ;;  %16216 = vmatprep.mubr.f32.mxu0 %v20218_v4 }
 0xf62   :  { %v16118_v33 = vpop.permute.xlu0 %16117  ;;  %v16120_v58 = vpop.permute.xlu1 %16119 }
 0xf63   :  { %v16133_v39 = vsel %vm1025_vm4, %v16116_v9, %v16118_v33  ;;  %19313 = vmatmul.mubr.msk.f32.vlgmr.msra.gmra.mrb[16].mxu0 %vm249_vm1, %v19312_v56  ;;  %v16134_v18 = vsel %vm1025_vm4, %v16118_v33, %v16120_v58 }
 0xf64   :  { %16223 = vmatprep.subr.mxu0 %v16134_v18  ;;  %16287 = vmatprep.mubr.f32.mxu0 %v20218_v4 }
 0xf65   :  { %16224 = vmatpush1.msra.mxu0 %v16133_v39 }
 0xf66   :  { %v16122_v62 = vpop.permute.xlu0 %16121  ;;  %v16124_v41 = vpop.permute.xlu1 %16123 }
 0xf67   :  { %v16135_v31 = vsel %vm1025_vm4, %v16120_v58, %v16122_v62  ;;  %19314 = vmatmul.mubr.msk.f32.vlgmr.msra.gmra.mrb[18].mxu0 %vm249_vm1, %v19312_v56  ;;  %v16136_v44 = vsel %vm1025_vm4, %v16122_v62, %v16124_v41 }
 0xf68   :  { %16294 = vmatprep.subr.mxu0 %v16136_v44  ;;  %16358 = vmatprep.mubr.f32.mxu0 %v20218_v4 }
 0xf69   :  { %16295 = vmatpush1.msra.mxu0 %v16135_v31 }
 0xf6a   :  { %v16126_v37 = vpop.permute.xlu0 %16125  ;;  %v16128_v35 = vpop.permute.xlu1 %16127 }
 0xf6b   :  { %v16137_v49 = vsel %vm1025_vm4, %v16124_v41, %v16126_v37  ;;  %19315 = vmatmul.mubr.msk.f32.vlgmr.msra.gmra.mrb[20].mxu0 %vm249_vm1, %v19312_v56  ;;  %v16138_v23 = vsel %vm1025_vm4, %v16126_v37, %v16128_v35 }
 0xf6c   :  { %16365 = vmatprep.subr.mxu0 %v16138_v23  ;;  %16429 = vmatprep.mubr.f32.mxu0 %v20218_v4 }
 0xf6d   :  { %16366 = vmatpush1.msra.mxu0 %v16137_v49 }
 0xf6e   :  { %v16130_v19 = vpop.permute.xlu0 %16129  ;;  %v16518_v38 = vpop.permute.xlu1 %16517  ;;  %19635 = vmatprep.subr.mxu0 %v20218_v4 }
 0xf6f   :  { %v16139_v6 = vsel %vm1025_vm4, %v16128_v35, %v16130_v19  ;;  %19316 = vmatmul.mubr.msk.f32.vlgmr.msra.gmra.mrb[22].mxu0 %vm249_vm1, %v19312_v56 }
 0xf70   :  { %19636 = vmatpush3.msra.mxu0 %v16139_v6  ;;  %19637 = vmatprep.mubr.msk.f32.mxu0 %vm20225_vm3, %v20218_v4 }
 0xf72   :  { %v16522_v13 = vpop.permute.xlu0 %16521  ;;  %v16520_v11 = vpop.permute.xlu1 %16519 }
 0xf73   :  { %19638 = vmatmul.mubr.msk.f32.vlgmr.msra.gmra.mrb[24].mxu0 %vm249_vm1, %v19312_v56  ;;  %v16537_v51 = vsel %vm1432_vm5, %v16518_v38, %v16520_v11  ;;  %v16538_v53 = vsel %vm1432_vm5, %v16520_v11, %v16522_v13 }
 0xf74   :  { %16558 = vmatprep.subr.mxu0 %v16538_v53  ;;  %16622 = vmatprep.mubr.f32.mxu0 %v20218_v4 }
 0xf75   :  { %16559 = vmatpush1.msra.mxu0 %v16537_v51  ;;  %v19336_v51 = vld [vmem:[%s22767_s14 + $0x30] sm:$0xff] }
 0xf76   :  { %v16524_v5 = vpop.permute.xlu0 %16523  ;;  %v16526_v21 = vpop.permute.xlu1 %16525 }
 0xf77   :  { %v16539_v15 = vsel %vm1432_vm5, %v16522_v13, %v16524_v5  ;;  %19319 = vmatmul.mubr.msk.f32.vlgmr.msra.gmra.mrb[16].mxu0 %vm249_vm1, %v19318_v8  ;;  %v16540_v45 = vsel %vm1432_vm5, %v16524_v5, %v16526_v21 }
 0xf78   :  { %16629 = vmatprep.subr.mxu0 %v16540_v45  ;;  %16693 = vmatprep.mubr.f32.mxu0 %v20218_v4 }
 0xf79   :  { %16630 = vmatpush1.msra.mxu0 %v16539_v15 }
 0xf7a   :  { %v16528_v17 = vpop.permute.xlu0 %16527  ;;  %v16530_v36 = vpop.permute.xlu1 %16529 }
 0xf7b   :  { %v16541_v55 = vsel %vm1432_vm5, %v16526_v21, %v16528_v17  ;;  %19320 = vmatmul.mubr.msk.f32.vlgmr.msra.gmra.mrb[18].mxu0 %vm249_vm1, %v19318_v8  ;;  %v16542_v59 = vsel %vm1432_vm5, %v16528_v17, %v16530_v36 }
 0xf7c   :  { %16700 = vmatprep.subr.mxu0 %v16542_v59  ;;  %16764 = vmatprep.mubr.f32.mxu0 %v20218_v4 }
 0xf7d   :  { %16701 = vmatpush1.msra.mxu0 %v16541_v55 }
 0xf7e   :  { %v16532_v50 = vpop.permute.xlu0 %16531  ;;  %v16534_v24 = vpop.permute.xlu1 %16533 }
 0xf7f   :  { %v16543_v61 = vsel %vm1432_vm5, %v16530_v36, %v16532_v50  ;;  %19321 = vmatmul.mubr.msk.f32.vlgmr.msra.gmra.mrb[20].mxu0 %vm249_vm1, %v19318_v8  ;;  %v16544_v42 = vsel %vm1432_vm5, %v16532_v50, %v16534_v24 }
 0xf80   :  { %16771 = vmatprep.subr.mxu0 %v16544_v42  ;;  %16835 = vmatprep.mubr.f32.mxu0 %v20218_v4 }
 0xf81   :  { %16772 = vmatpush1.msra.mxu0 %v16543_v61 }
 0xf82   :  { %v16536_v20 = vpop.permute.xlu0 %16535  ;;  %v17314_v16 = vpop.permute.xlu1 %17313  ;;  %19640 = vmatprep.subr.mxu0 %v20218_v4 }
 0xf83   :  { %v16545_v12 = vsel %vm1432_vm5, %v16534_v24, %v16536_v20  ;;  %19322 = vmatmul.mubr.msk.f32.vlgmr.msra.gmra.mrb[22].mxu0 %vm249_vm1, %v19318_v8 }
 0xf84   :  { %19641 = vmatpush3.msra.mxu0 %v16545_v12  ;;  %19642 = vmatprep.mubr.msk.f32.mxu0 %vm20225_vm3, %v20218_v4 }
 0xf85   :  { %16926 = vmatprep.subr.mxu0 %v22283_v34 }
 0xf86   :  { %v17316_v52 = vpop.permute.xlu0 %17315  ;;  %v17312_v40 = vpop.permute.xlu1 %17311 }
 0xf87   :  { %19643 = vmatmul.mubr.msk.f32.vlgmr.msra.gmra.mrb[24].mxu0 %vm249_vm1, %v19318_v8 }
 0xf88   :  { %16927 = vmatpush1.msra.mxu0 %v22280_v2  ;;  %16990 = vmatprep.mubr.f32.mxu0 %v20218_v4 }
 0xf89   :  { %16997 = vmatprep.subr.mxu0 %v22294_v47 }
 0xf8a   :  { %v17318_v54 = vpop.permute.xlu0 %17317  ;;  %v17320_v48 = vpop.permute.xlu1 %17319 }
 0xf8b   :  { %19325 = vmatmul.mubr.msk.f32.vlgmr.msra.gmra.mrb[16].mxu0 %vm249_vm1, %v19324_v43  ;;  %v17334_v25 = vsel %vm2227_vm6, %v17318_v54, %v17320_v48  ;;  %v17333_v33 = vsel %vm2227_vm6, %v17316_v52, %v17318_v54 }
 0xf8c   :  { %16998 = vmatpush1.msra.mxu0 %v22291_v29  ;;  %17061 = vmatprep.mubr.f32.mxu0 %v20218_v4 }
 0xf8d   :  { %17068 = vmatprep.subr.mxu0 %v22304_v46 }
 0xf8e   :  { %v17322_v34 = vpop.permute.xlu0 %17321  ;;  %v17324_v2 = vpop.permute.xlu1 %17323 }
 0xf8f   :  { %19326 = vmatmul.mubr.msk.f32.vlgmr.msra.gmra.mrb[18].mxu0 %vm249_vm1, %v19324_v43  ;;  %v17336_v58 = vsel %vm2227_vm6, %v17322_v34, %v17324_v2  ;;  %v17335_v62 = vsel %vm2227_vm6, %v17320_v48, %v17322_v34 }
 0xf90   :  { %17069 = vmatpush1.msra.mxu0 %v22301_v1  ;;  %17132 = vmatprep.mubr.f32.mxu0 %v20218_v4  ;;  %v17332_v1 = vsel %vm2227_vm6, %v17314_v16, %v17316_v52 }
 0xf91   :  { %17139 = vmatprep.subr.mxu0 %v22314_v26 }
 0xf92   :  { %v17326_v47 = vpop.permute.xlu0 %17325  ;;  %v17328_v9 = vpop.permute.xlu1 %17327 }
 0xf93   :  { %19327 = vmatmul.mubr.msk.f32.vlgmr.msra.gmra.mrb[20].mxu0 %vm249_vm1, %v19324_v43  ;;  %v17338_v41 = vsel %vm2227_vm6, %v17326_v47, %v17328_v9  ;;  %v17337_v37 = vsel %vm2227_vm6, %v17324_v2, %v17326_v47 }
 0xf94   :  { %17140 = vmatpush1.msra.mxu0 %v22311_v30  ;;  %17203 = vmatprep.mubr.f32.mxu0 %v20218_v4  ;;  %v17331_v30 = vsel %vm2227_vm6, %v17312_v40, %v17314_v16  ;;  %v19342_v16 = vld [vmem:[%s22767_s14 + $0x38] sm:$0xff] }
 0xf95   :  { %19645 = vmatprep.subr.mxu0 %v20218_v4 }
 0xf96   :  { %v17330_v29 = vpop.permute.xlu0 %17329  ;;  %v17720_v46 = vpop.permute.xlu1 %17719 }
 0xf97   :  { %19328 = vmatmul.mubr.msk.f32.vlgmr.msra.gmra.mrb[22].mxu0 %vm249_vm1, %v19324_v43  ;;  %v17339_v23 = vsel %vm2227_vm6, %v17328_v9, %v17330_v29 }
 0xf98   :  { %19646 = vmatpush3.msra.mxu0 %v22321_v0  ;;  %19647 = vmatprep.mubr.msk.f32.mxu0 %vm20225_vm3, %v20218_v4  ;;  %v19330_v0 = vld [vmem:[%s22767_s14 + $0x28] sm:$0xff] }
 0xf99   :  { %17352 = vmatprep.subr.mxu0 %v17332_v1 }
 0xf9a   :  { %v17722_v26 = vpop.permute.xlu0 %17721  ;;  %v17718_v63 = vpop.permute.xlu1 %17717 }
 0xf9b   :  { %19648 = vmatmul.mubr.msk.f32.vlgmr.msra.gmra.mrb[24].mxu0 %vm249_vm1, %v19324_v43  ;;  %v17738_v19 = vsel %vm2634_vm7, %v17720_v46, %v17722_v26  ;;  %v17737_v13 = vsel %vm2634_vm7, %v17718_v63, %v17720_v46 }
 0xf9c   :  { %17353 = vmatpush1.msra.mxu0 %v17331_v30  ;;  %17416 = vmatprep.mubr.f32.mxu0 %v20218_v4 }
 0xf9d   :  { %17423 = vmatprep.subr.mxu0 %v17334_v25 }
 0xf9e   :  { %v17724_v27 = vpop.permute.xlu0 %17723  ;;  %v17726_v56 = vpop.permute.xlu1 %17725 }
 0xf9f   :  { %19331 = vmatmul.mubr.msk.f32.vlgmr.msra.gmra.mrb[16].mxu0 %vm249_vm1, %v19330_v0  ;;  %v17740_v11 = vsel %vm2634_vm7, %v17724_v27, %v17726_v56  ;;  %v17739_v53 = vsel %vm2634_vm7, %v17722_v26, %v17724_v27 }
 0xfa0   :  { %17424 = vmatpush1.msra.mxu0 %v17333_v33  ;;  %17487 = vmatprep.mubr.f32.mxu0 %v20218_v4 }
 0xfa1   :  { %17494 = vmatprep.subr.mxu0 %v17336_v58 }
 0xfa2   :  { %v17728_v39 = vpop.permute.xlu0 %17727  ;;  %v17730_v18 = vpop.permute.xlu1 %17729 }
 0xfa3   :  { %19332 = vmatmul.mubr.msk.f32.vlgmr.msra.gmra.mrb[18].mxu0 %vm249_vm1, %v19330_v0  ;;  %v17742_v21 = vsel %vm2634_vm7, %v17728_v39, %v17730_v18  ;;  %v17741_v15 = vsel %vm2634_vm7, %v17726_v56, %v17728_v39 }
 0xfa4   :  { %17495 = vmatpush1.msra.mxu0 %v17335_v62  ;;  %17558 = vmatprep.mubr.f32.mxu0 %v20218_v4 }
 0xfa5   :  { %17565 = vmatprep.subr.mxu0 %v17338_v41 }
 0xfa6   :  { %v17732_v31 = vpop.permute.xlu0 %17731  ;;  %v17734_v44 = vpop.permute.xlu1 %17733 }
 0xfa7   :  { %19333 = vmatmul.mubr.msk.f32.vlgmr.msra.gmra.mrb[20].mxu0 %vm249_vm1, %v19330_v0  ;;  %v17744_v45 = vsel %vm2634_vm7, %v17732_v31, %v17734_v44  ;;  %v17743_v55 = vsel %vm2634_vm7, %v17730_v18, %v17732_v31 }
 0xfa8   :  { %17566 = vmatpush1.msra.mxu0 %v17337_v37  ;;  %17629 = vmatprep.mubr.f32.mxu0 %v20218_v4 }
 0xfa9   :  { %19650 = vmatprep.subr.mxu0 %v20218_v4 }
 0xfaa   :  { %v17736_v35 = vpop.permute.xlu0 %17735  ;;  %v18126_v49 = vpop.permute.xlu1 %18125 }
 0xfab   :  { %19334 = vmatmul.mubr.msk.f32.vlgmr.msra.gmra.mrb[22].mxu0 %vm249_vm1, %v19330_v0  ;;  %v17745_v59 = vsel %vm2634_vm7, %v17734_v44, %v17736_v35 }
 0xfac   :  { %19651 = vmatpush3.msra.mxu0 %v17339_v23  ;;  %19652 = vmatprep.mubr.msk.f32.mxu0 %vm20225_vm3, %v20218_v4 }
 0xfad   :  { %17758 = vmatprep.subr.mxu0 %v17738_v19 }
 0xfae   :  { %v18128_v38 = vpop.permute.xlu0 %18127  ;;  %v18124_v6 = vpop.permute.xlu1 %18123 }
 0xfaf   :  { %19653 = vmatmul.mubr.msk.f32.vlgmr.msra.gmra.mrb[24].mxu0 %vm249_vm1, %v19330_v0  ;;  %v18144_v61 = vsel %vm3041_vm8, %v18126_v49, %v18128_v38  ;;  %v18143_v42 = vsel %vm3041_vm8, %v18124_v6, %v18126_v49  ;;  %v19348_v0 = vld [vmem:[%s22767_s14 + $0x40] sm:$0xff] }
 0xfb0   :  { %17759 = vmatpush1.msra.mxu0 %v17737_v13  ;;  %17822 = vmatprep.mubr.f32.mxu0 %v20218_v4 }
 0xfb1   :  { %17829 = vmatprep.subr.mxu0 %v17740_v11 }
 0xfb2   :  { %v18130_v8 = vpop.permute.xlu0 %18129  ;;  %v18132_v5 = vpop.permute.xlu1 %18131 }
 0xfb3   :  { %19337 = vmatmul.mubr.msk.f32.vlgmr.msra.gmra.mrb[16].mxu0 %vm249_vm1, %v19336_v51  ;;  %v18146_v20 = vsel %vm3041_vm8, %v18130_v8, %v18132_v5  ;;  %v18145_v40 = vsel %vm3041_vm8, %v18128_v38, %v18130_v8 }
 0xfb4   :  { %17830 = vmatpush1.msra.mxu0 %v17739_v53  ;;  %17893 = vmatprep.mubr.f32.mxu0 %v20218_v4 }
 0xfb5   :  { %17900 = vmatprep.subr.mxu0 %v17742_v21 }
 0xfb6   :  { %v18134_v17 = vpop.permute.xlu0 %18133  ;;  %v18136_v36 = vpop.permute.xlu1 %18135 }
 0xfb7   :  { %19338 = vmatmul.mubr.msk.f32.vlgmr.msra.gmra.mrb[18].mxu0 %vm249_vm1, %v19336_v51  ;;  %v18148_v43 = vsel %vm3041_vm8, %v18134_v17, %v18136_v36  ;;  %v18147_v54 = vsel %vm3041_vm8, %v18132_v5, %v18134_v17 }
 0xfb8   :  { %17901 = vmatpush1.msra.mxu0 %v17741_v15  ;;  %17964 = vmatprep.mubr.f32.mxu0 %v20218_v4 }
 0xfb9   :  { %17971 = vmatprep.subr.mxu0 %v17744_v45 }
 0xfba   :  { %v18138_v50 = vpop.permute.xlu0 %18137  ;;  %v18140_v24 = vpop.permute.xlu1 %18139 }
 0xfbb   :  { %19339 = vmatmul.mubr.msk.f32.vlgmr.msra.gmra.mrb[20].mxu0 %vm249_vm1, %v19336_v51  ;;  %v18150_v2 = vsel %vm3041_vm8, %v18138_v50, %v18140_v24  ;;  %v18149_v47 = vsel %vm3041_vm8, %v18136_v36, %v18138_v50 }
 0xfbc   :  { %17972 = vmatpush1.msra.mxu0 %v17743_v55  ;;  %18035 = vmatprep.mubr.f32.mxu0 %v20218_v4 }
 0xfbd   :  { %19655 = vmatprep.subr.mxu0 %v20218_v4 }
 0xfbe   :  { %v18142_v12 = vpop.permute.xlu0 %18141  ;;  %v18532_v52 = vpop.permute.xlu1 %18531 }
 0xfbf   :  { %19340 = vmatmul.mubr.msk.f32.vlgmr.msra.gmra.mrb[22].mxu0 %vm249_vm1, %v19336_v51  ;;  %v18151_v46 = vsel %vm3041_vm8, %v18140_v24, %v18142_v12 }
 0xfc0   :  { %19656 = vmatpush3.msra.mxu0 %v17745_v59  ;;  %19657 = vmatprep.mubr.msk.f32.mxu0 %vm20225_vm3, %v20218_v4 }
 0xfc1   :  { %18164 = vmatprep.subr.mxu0 %v18144_v61 }
 0xfc2   :  { %v18534_v48 = vpop.permute.xlu0 %18533  ;;  %v18530_v34 = vpop.permute.xlu1 %18529 }
 0xfc3   :  { %19658 = vmatmul.mubr.msk.f32.vlgmr.msra.gmra.mrb[24].mxu0 %vm249_vm1, %v19336_v51  ;;  %v18550_v1 = vsel %vm3448_vm9, %v18532_v52, %v18534_v48  ;;  %v18549_v26 = vsel %vm3448_vm9, %v18530_v34, %v18532_v52 }
 0xfc4   :  { %18165 = vmatpush1.msra.mxu0 %v18143_v42  ;;  %18228 = vmatprep.mubr.f32.mxu0 %v20218_v4 }
 0xfc5   :  { %18235 = vmatprep.subr.mxu0 %v18146_v20 }
 0xfc6   :  { %v18536_v9 = vpop.permute.xlu0 %18535  ;;  %v18538_v29 = vpop.permute.xlu1 %18537 }
 0xfc7   :  { %19343 = vmatmul.mubr.msk.f32.vlgmr.msra.gmra.mrb[16].mxu0 %vm249_vm1, %v19342_v16  ;;  %v18552_v25 = vsel %vm3448_vm9, %v18536_v9, %v18538_v29  ;;  %v18551_v27 = vsel %vm3448_vm9, %v18534_v48, %v18536_v9 }
 0xfc8   :  { %18236 = vmatpush1.msra.mxu0 %v18145_v40  ;;  %18299 = vmatprep.mubr.f32.mxu0 %v20218_v4 }
 0xfc9   :  { %18306 = vmatprep.subr.mxu0 %v18148_v43 }
 0xfca   :  { %v18540_v63 = vpop.permute.xlu0 %18539  ;;  %v18542_v30 = vpop.permute.xlu1 %18541 }
 0xfcb   :  { %19344 = vmatmul.mubr.msk.f32.vlgmr.msra.gmra.mrb[18].mxu0 %vm249_vm1, %v19342_v16  ;;  %v18554_v56 = vsel %vm3448_vm9, %v18540_v63, %v18542_v30  ;;  %v18553_v39 = vsel %vm3448_vm9, %v18538_v29, %v18540_v63  ;;  %v22711_v29 = vld [vmem:[%s22776_s26 + $0x8] ss:$0 sm:$0xff]  ;;  %s18979_s26 = sld [smem:[#allocation12]] }
 0xfcc   :  { %18307 = vmatpush1.msra.mxu0 %v18147_v54  ;;  %18370 = vmatprep.mubr.f32.mxu0 %v20218_v4 }
 0xfcd   :  { %18377 = vmatprep.subr.mxu0 %v18150_v2 }
 0xfce   :  { %v18544_v33 = vpop.permute.xlu0 %18543  ;;  %v18546_v58 = vpop.permute.xlu1 %18545 }
 0xfcf   :  { %19345 = vmatmul.mubr.msk.f32.vlgmr.msra.gmra.mrb[20].mxu0 %vm249_vm1, %v19342_v16  ;;  %v18556_v18 = vsel %vm3448_vm9, %v18544_v33, %v18546_v58  ;;  %v18555_v62 = vsel %vm3448_vm9, %v18542_v30, %v18544_v33 }
 0xfd0   :  { %18378 = vmatpush1.msra.mxu0 %v18149_v47  ;;  %18441 = vmatprep.mubr.f32.mxu0 %v20218_v4 }
 0xfd1   :  { %19660 = vmatprep.subr.mxu0 %v20218_v4 }
 0xfd2   :  { %v18548_v41 = vpop.permute.xlu0 %18547 }
 0xfd3   :  { %19346 = vmatmul.mubr.msk.f32.vlgmr.msra.gmra.mrb[22].mxu0 %vm249_vm1, %v19342_v16  ;;  %v18557_v31 = vsel %vm3448_vm9, %v18546_v58, %v18548_v41  ;;  %v18981_v41 = vstv %s19354_s4 }
 0xfd4   :  { %19661 = vmatpush3.msra.mxu0 %v18151_v46  ;;  %19662 = vmatprep.mubr.msk.f32.mxu0 %vm20225_vm3, %v20218_v4 }
 0xfd5   :  { %18570 = vmatprep.subr.mxu0 %v18550_v1 }
 0xfd7   :  { %19663 = vmatmul.mubr.msk.f32.vlgmr.msra.gmra.mrb[24].mxu0 %vm249_vm1, %v19342_v16 }
 0xfd8   :  { %18571 = vmatpush1.msra.mxu0 %v18549_v26  ;;  %18634 = vmatprep.mubr.f32.mxu0 %v20218_v4 }
 0xfd9   :  { %18641 = vmatprep.subr.mxu0 %v18552_v25 }
 0xfdb   :  { %19349 = vmatmul.mubr.msk.f32.vlgmr.msra.gmra.mrb[16].mxu0 %vm249_vm1, %v19348_v0 }
 0xfdc   :  { %18642 = vmatpush1.msra.mxu0 %v18551_v27  ;;  %18705 = vmatprep.mubr.f32.mxu0 %v20218_v4 }
 0xfdd   :  { %18712 = vmatprep.subr.mxu0 %v18554_v56 }
 0xfdf   :  { %19350 = vmatmul.mubr.msk.f32.vlgmr.msra.gmra.mrb[18].mxu0 %vm249_vm1, %v19348_v0 }
 0xfe0   :  { %18713 = vmatpush1.msra.mxu0 %v18553_v39  ;;  %18776 = vmatprep.mubr.f32.mxu0 %v20218_v4 }
 0xfe1   :  { %18783 = vmatprep.subr.mxu0 %v18556_v18 }
 0xfe3   :  { %19351 = vmatmul.mubr.msk.f32.vlgmr.msra.gmra.mrb[20].mxu0 %vm249_vm1, %v19348_v0 }
 0xfe4   :  { %18784 = vmatpush1.msra.mxu0 %v18555_v62  ;;  %18847 = vmatprep.mubr.f32.mxu0 %v20218_v4 }
 0xfe5   :  { %19665 = vmatprep.subr.mxu0 %v20218_v4 }
 0xfe7   :  { %19352 = vmatmul.mubr.msk.f32.vlgmr.msra.gmra.mrb[22].mxu0 %vm249_vm1, %v19348_v0 }
 0xfe8   :  { %19666 = vmatpush3.msra.mxu0 %v18557_v31  ;;  %19667 = vmatprep.mubr.msk.f32.mxu0 %vm20225_vm3, %v20218_v4  ;;  %v18978_v31 = vld [vmem:[%s22768_s15] sm:$0xff]  ;;  %s20245_s15 = smov [#allocation13]  }
 0xfeb   :  { %19668 = vmatmul.mubr.msk.f32.vlgmr.msra.gmra.mrb[24].mxu0 %vm249_vm1, %v19348_v0 }
0x10ae   :  { %v18636_v44 = vpop.f32.mrb[16].mxu0 }
0x10af   :  { %v22681_v37 = vmul.f32 %v18636_v44, %v20874_v57  ;;  %v18638_v35 = vpop.f32.mrb[17].mxu0  ;;  %v18982_v44 = vmul.f32 %v18981_v41, %v18978_v31 }
0x10b0   :  { %v22684_v49 = vmul.f32 %v18638_v35, %v20876_v60 }
0x10b1   :  { %v18952_v23 = vmul.f32 %v22681_v37, %v22681_v37 }
0x10b2   :  { %v18942_v19 = vadd.f32 %v22684_v49, %v22681_v37  ;;  %v18953_v38 = vmul.f32 %v22684_v49, %v22684_v49  ;;  %v18707_v4 = vpop.f32.mrb[18].mxu0 }
0x10b3   :  { %v22693_v6 = vmul.f32 %v18707_v4, %v20878_v10  ;;  %v18709_v13 = vpop.f32.mrb[19].mxu0 }
0x10b4   :  { %v18961_v11 = vadd.f32 %v18953_v38, %v18952_v23  ;;  %v22696_v51 = vmul.f32 %v18709_v13, %v20883_v14 }
0x10b5   :  { %v18943_v53 = vadd.f32 %v18942_v19, %v22693_v6  ;;  %v18954_v8 = vmul.f32 %v22693_v6, %v22693_v6  ;;  %v18984_v19 = vstv %s18979_s26 }
0x10b6   :  { %v18955_v5 = vmul.f32 %v22696_v51, %v22696_v51  ;;  %v18778_v21 = vpop.f32.mrb[20].mxu0 }
0x10b7   :  { %v18962_v15 = vadd.f32 %v18961_v11, %v18954_v8  ;;  %v18944_v45 = vadd.f32 %v18943_v53, %v22696_v51  ;;  %v18937_v17 = vmul.f32 %v18778_v21, %v20900_v28  ;;  %v18780_v36 = vpop.f32.mrb[21].mxu0 }
0x10b8   :  { %v18938_v55 = vmul.f32 %v18780_v36, %v20907_v3 }
0x10b9   :  { %v18963_v59 = vadd.f32 %v18962_v15, %v18955_v5  ;;  %v18945_v50 = vadd.f32 %v18944_v45, %v18937_v17  ;;  %v18956_v24 = vmul.f32 %v18937_v17, %v18937_v17 }
0x10ba   :  { %v18957_v61 = vmul.f32 %v18938_v55, %v18938_v55  ;;  %v18849_v42 = vpop.f32.mrb[22].mxu0 }
0x10bb   :  { %v18964_v20 = vadd.f32 %v18963_v59, %v18956_v24  ;;  %v18946_v16 = vadd.f32 %v18945_v50, %v18938_v55  ;;  %v18939_v12 = vmul.f32 %v18849_v42, %v20909_v32  ;;  %v18851_v52 = vpop.f32.mrb[23].mxu0 }
0x10bc   :  { %v18940_v40 = vmul.f32 %v18851_v52, %v20915_v7 }
0x10bd   :  { %v18965_v43 = vadd.f32 %v18964_v20, %v18957_v61  ;;  %v18947_v54 = vadd.f32 %v18946_v16, %v18939_v12  ;;  %v18958_v48 = vmul.f32 %v18939_v12, %v18939_v12 }
0x10be   :  { %v18959_v34 = vmul.f32 %v18940_v40, %v18940_v40  ;;  %v18920_v2 = vpop.f32.mrb[24].mxu0 }
0x10bf   :  { %v18966_v47 = vadd.f32 %v18965_v43, %v18958_v48  ;;  %v18948_v9 = vadd.f32 %v18947_v54, %v18940_v40  ;;  %v18941_v46 = vmul.f32 %v22711_v29, %v18920_v2  ;;  %v19669_v1 = vpop.f32.mrb[25].mxu0 }
0x10c1   :  { %v18960_v26 = vmul.f32 %v18941_v46, %v18941_v46  ;;  %v18949_v63 = vadd.f32 %v18948_v9, %v18941_v46  ;;  %v18967_v30 = vadd.f32 %v18966_v47, %v18959_v34 }
0x10c3   :  { %18950 = vadd.xlane.f32.xlu1 %v18949_v63  ;;  %v18968_v25 = vadd.f32 %v18967_v30, %v18960_v26 }
0x10c5   :  { %18969 = vadd.xlane.f32.xlu0 %v18968_v25 }
0x1150   :  { %v18951_v0 = vpop.xlane.xlu1 %18950 }
0x1151   :  { %v18971_v27 = vmul.f32 0.001953125, %v18951_v0 }
0x1152   :  { %v18970_v56 = vpop.xlane.xlu0 %18969 }
0x1153   :  { %v18973_v33 = vmul.f32 %v18971_v27, %v18971_v27  ;;  %v18972_v58 = vmul.f32 0.001953125, %v18970_v56  ;;  %v18986_v35 = vmul.f32 %v18978_v31, %v18971_v27 }
0x1155   :  { %v18974_v39 = vsub.f32 %v18972_v58, %v18973_v33 }
0x1157   :  { %v18975_v18 = vmax.f32 %v18974_v39, 0.0 }
0x1159   :  { %v18976_v62 = vadd.f32 1e-05, %v18975_v18 }
0x115b   :  { %20116 = vrsqrt.f32 %v18976_v62 }
0x1165   :  { %v20117_v23 = vpop.eup %20116 }
0x1166   :  { %v18987_v38 = vmul.f32 %v20117_v23, %v18986_v35  ;;  %v18983_v4 = vmul.f32 %v20117_v23, %v18982_v44 }
0x1168   :  { %18989 = vrot.lane.b32.xlu0 %v18987_v38, %s20221_s18  ;;  %v18985_v13 = vadd.f32 %v18984_v19, %v18983_v4  ;;  %s19073_s18 = sshll.u32 %s20245_s15, 4  ;;  %s19074_s18 = int_to_ptr.vmem [resolvable:$true] %s19073_s18 }
0x1169   :  { %s20182_s2 = scalar_lea.vmem %s19074_s18, 1152  ;;  %p20187_p12 = scmp.lt.s32.totalorder %s19074_s18, %s19074_s18 }
0x116a   :  { %18996 = vperm.xlu1 %20106, %v18985_v13   ;;  %p20183_p11 = scmp.ne.s32.totalorder %s19074_s18, %s20182_s2  ;;  %p20188_p13 = scmp.lt.s32.totalorder %s20182_s2, %s20182_s2 }
0x116c   :  { %p20189_p0 = por %p20188_p13, %p20187_p12 }
0x116e   :  { %20107 = vset.pattern.permute.xlu1 %v20228_v22  ;;  %p20190_p1 = pnand %p20189_p0, %p20183_p11 }
0x11da   :  { %v18990_v11 = vpop.permute.xlu0 %18989 }
0x11db   :  { %v18992_v53 = vsub.f32 %v18978_v31, %v18990_v11 }
0x11dd   :  { %v18993_v8 = vmul.f32 %v18992_v53, %v18981_v41 }
0x11df   :  { %19010 = vperm.xlu1 %20107, %v18993_v8  }
0x11e9   :  { %v18997_v5 = vpop.permute.xlu1 %18996 }
0x11ea   :  { %v18999_v21 = vmul.f32 %v18997_v5, %v22681_v37  ;;  %v19000_v15 = vmul.f32 %v18997_v5, %v22684_v49  ;;  %v19001_v45 = vmul.f32 %v18997_v5, %v22693_v6  ;;  %v19002_v36 = vmul.f32 %v18997_v5, %v22696_v51 }
0x11eb   :  { %v19003_v59 = vmul.f32 %v18997_v5, %v18937_v17  ;;  %v19004_v50 = vmul.f32 %v18997_v5, %v18938_v55  ;;  %v19005_v24 = vmul.f32 %v18997_v5, %v18939_v12  ;;  %v19006_v61 = vmul.f32 %v18997_v5, %v18940_v40 }
0x11ec   :  { %v19007_v42 = vmul.f32 %v18997_v5, %v18941_v46 }
0x125e   :  { %v19011_v20 = vpop.permute.xlu1 %19010 }
0x125f   :  { %v19013_v22 = vadd.f32 %v19011_v20, %v18999_v21  ;;  %v19014_v16 = vadd.f32 %v19011_v20, %v19000_v15  ;;  %v19015_v52 = vadd.f32 %v19011_v20, %v19001_v45  ;;  %v19016_v43 = vadd.f32 %v19011_v20, %v19002_v36 }
0x1260   :  { %v19017_v54 = vadd.f32 %v19011_v20, %v19003_v59  ;;  %v19018_v48 = vadd.f32 %v19011_v20, %v19004_v50  ;;  %v19019_v34 = vadd.f32 %v19011_v20, %v19005_v24  ;;  %v19020_v37 = vadd.f32 %v19011_v20, %v19006_v61 }
0x1261   :  { %v19021_v2 = vadd.f32 %v19011_v20, %v19007_v42  ;;  %vm19022_vm0 = vcmp.ge.f32.partialorder %v19013_v22, 0.0  ;;  %vm19023_vm1 = vcmp.ge.f32.partialorder %v19014_v16, 0.0  ;;  %vm19024_vm2 = vcmp.ge.f32.partialorder %v19015_v52, 0.0 }
0x1262   :  { %vm19025_vm3 = vcmp.ge.f32.partialorder %v19016_v43, 0.0  ;;  %vm19026_vm4 = vcmp.ge.f32.partialorder %v19017_v54, 0.0  ;;  %vm19027_vm5 = vcmp.ge.f32.partialorder %v19018_v48, 0.0  ;;  %vm19028_vm6 = vcmp.ge.f32.partialorder %v19019_v34, 0.0 }
0x1263   :  { %vm19029_vm7 = vcmp.ge.f32.partialorder %v19020_v37, 0.0  ;;  %vm19030_vm8 = vcmp.ge.f32.partialorder %v19021_v2, 0.0  ;;  %v19031_v49 = vmul.f32 0.2, %v19013_v22  ;;  %v19032_v6 = vmul.f32 0.2, %v19014_v16 }
0x1264   :  { %v19033_v51 = vmul.f32 0.2, %v19015_v52  ;;  %v19034_v17 = vmul.f32 0.2, %v19016_v43  ;;  %v19035_v55 = vmul.f32 0.2, %v19017_v54 }
0x1265   :  { %v19036_v12 = vmul.f32 0.2, %v19018_v48  ;;  %v19037_v40 = vmul.f32 0.2, %v19019_v34  ;;  %v19038_v47 = vmul.f32 0.2, %v19020_v37  ;;  %v19040_v9 = vsel %vm19022_vm0, %v19013_v22, %v19031_v49 }
0x1266   :  { %v19039_v46 = vmul.f32 0.2, %v19021_v2  ;;  %v19041_v1 = vsel %vm19023_vm1, %v19014_v16, %v19032_v6  ;;  %v19042_v26 = vsel %vm19024_vm2, %v19015_v52, %v19033_v51  ;;  %v19043_v63 = vsel %vm19025_vm3, %v19016_v43, %v19034_v17 }
0x1267   :  { %v19044_v30 = vsel %vm19026_vm4, %v19017_v54, %v19035_v55  ;;  %v19045_v25 = vsel %vm19027_vm5, %v19018_v48, %v19036_v12  ;;  %v19046_v0 = vsel %vm19028_vm6, %v19019_v34, %v19037_v40  ;;  %v19047_v27 = vsel %vm19029_vm7, %v19020_v37, %v19038_v47 }
0x1268   :  { %v19048_v56 = vsel %vm19030_vm8, %v19021_v2, %v19039_v46  ;;  %v19049_v33 = vmul.f32 %v19040_v9, %v20874_v57  ;;  %v19050_v58 = vmul.f32 %v19041_v1, %v20876_v60  ;;  %v19051_v39 = vmul.f32 %v19042_v26, %v20878_v10 }
0x1269   :  { %v19052_v18 = vmul.f32 %v19043_v63, %v20883_v14  ;;  %v19053_v62 = vmul.f32 %v19044_v30, %v20900_v28  ;;  %v19054_v41 = vmul.f32 %v19045_v25, %v20907_v3  ;;  %v19055_v31 = vmul.f32 %v19046_v0, %v20909_v32 }
0x126a   :  { %v19056_v44 = vmul.f32 %v19047_v27, %v20915_v7  ;;  %v19057_v35 = vmul.f32 %v22711_v29, %v19048_v56  ;;  %19058 = vst [vmem:[#allocation13] sm:$0xff] %v19049_v33  ;;  %19059 = vst [vmem:[#allocation13 + $0x8] sm:$0xff] %v19050_v58 }
0x126b   :  { %19060 = vst [vmem:[#allocation13 + $0x10] sm:$0xff] %v19051_v39  ;;  %19061 = vst [vmem:[#allocation13 + $0x18] sm:$0xff] %v19052_v18 }
0x126c   :  { %19062 = vst [vmem:[#allocation13 + $0x20] sm:$0xff] %v19053_v62  ;;  %19063 = vst [vmem:[#allocation13 + $0x28] sm:$0xff] %v19054_v41 }
0x126d   :  { %19064 = vst [vmem:[#allocation13 + $0x30] sm:$0xff] %v19055_v31  ;;  %19065 = vst [vmem:[#allocation13 + $0x38] sm:$0xff] %v19056_v44 }
0x126e   :  { %19066 = vst [vmem:[#allocation13 + $0x40] sm:$0xff] %v19057_v35 }
0x126f   :  { %20193 = shalt.err (!%p20190_p1)
}
0x1270   :  { %s20194_s28 = scalar_lea.hbm %s22770_s17, 1152 }
0x1271   :  { %p20195_p2 = scmp.ne.s32.totalorder %s22770_s17, %s20194_s28  ;;  %p20198_p3 = scmp.lt.u32.totalorder %s20194_s28, %s22770_s17 }
0x1273   :  { %p20200_p4 = pnand %p20198_p3, %p20195_p2 }
0x1275   :  { %20203 = shalt.err (!%p20200_p4)
}
0x1276   :  { %19076 = dma.vmem_to_hbm [thread:$0]  %s19074_s18, 1152, %s22770_s17, [#allocation5]  }
0x1277   :  { %20210 = dma.done.wait [#allocation5], 1152  }
0x1278   :  { %20211 = vsyncadd [#allocation5], 4294966144 }
0x1279   :  { %19080 = vsyncpa [#allocation5], 1 }
0x127a   :  { %19081 = vsyncpa [#allocation6], 1 }
0x127b   :  { %19082 = vsyncpa [#allocation8], 1 }
0x127c   :  { %19083 = vsyncpa [#allocation11], 1 }

</bundles_post_ra>
